<compile_context>
chip_gen: v6e
topology: v6e:2x2x1
jax: 0.10.0
libtpu: 0.0.40
codegen_flags: <defaults>
</compile_context>

<pallas_src>
import jax
import jax.numpy as jnp
from jax import lax
from jax.experimental import pallas as pl
from jax.experimental.pallas import tpu as pltpu
import numpy as np


def fusion_forward_pallas(x, params):
    """x: (B, C, H, W) float32 (NCHW, matching PyTorch)."""
    B, C, H, W = x.shape
    C2 = C // 2
    HW = H * W
    KS = 7                       # spatial conv kernel size
    R = KS // 2                  # = 3
    # lane padding (each side) for the flattened 7x7 conv; must be >= R*W + R,
    # rounded up to a multiple of 128 so the pad concat is lane-aligned.
    PAD = ((R * W + R + 127) // 128) * 128

    # ---- lane-dense view of the activations: (B, C, H*W) -------------------
    # (free reshape: contiguous NCHW row-major == (B, C, H*W) row-major)
    x_flat = x.reshape(B, C, HW)

    # ---- parameters reshaped to kernel-friendly forms -----------------------
    # brightness + texture 1x1 convs stacked into one (8, C) MXU LHS
    # (rows 0/1 are the real weights, rows 2..7 zero padding for sublane align)
    w_brtx = jnp.zeros((8, C), jnp.float32)
    w_brtx = w_brtx.at[0, :].set(params["w_br"].reshape(C))
    w_brtx = w_brtx.at[1, :].set(params["w_tx"].reshape(C))

    w1t = params["w1"].reshape(C2, C).T.astype(jnp.float32)    # (C, C2), [c,j]=W1[j,c]
    b1 = params["b1"].reshape(1, C2).astype(jnp.float32)
    w2 = params["w2"].reshape(C, C2).astype(jnp.float32)       # (C, C2)
    b2 = params["b2"].reshape(C, 1).astype(jnp.float32)
    wsp = params["w_sp"].reshape(-1).astype(jnp.float32)       # (2*7*7,), [c,kh,kw]
    # scalar biases -> SMEM: [b_brightness, b_texture, b_spatial]
    bias = jnp.concatenate([params["b_br"].reshape(1),
                            params["b_tx"].reshape(1),
                            params["b_sp"].reshape(1)]).astype(jnp.float32)

    # Host-precomputed horizontal validity masks for the flattened conv:
    # row kw (dw = kw - 3) is 1.0 where the output column w has 0 <= w+dw < W
    # (zeroes out taps that would read across a row boundary in flat layout).
    col = np.tile(np.arange(W), H)                             # (HW,)
    wmask_np = np.zeros((8, HW), np.float32)                   # 8 rows for sublane align
    for kw in range(KS):
        dw = kw - R
        wmask_np[kw] = ((col + dw >= 0) & (col + dw < W)).astype(np.float32)
    wmask = jnp.asarray(wmask_np)

    def kernel(x_ref,        # (C, HW)   VMEM  lane-dense activations
               w_brtx_ref,   # (8, C)    VMEM  stacked br/tx 1x1 weights
               w1t_ref,      # (C, C2)   VMEM
               b1_ref,       # (1, C2)   VMEM
               w2_ref,       # (C, C2)   VMEM
               b2_ref,       # (C, 1)    VMEM
               wmask_ref,    # (8, HW)   VMEM  per-dw row-wrap masks
               wsp_ref,      # (2*49,)   SMEM  7x7 conv weights (flat, [c,kh,kw])
               bias_ref,     # (3,)      SMEM  [b_br, b_tx, b_sp]
               o_ref):       # (C, HW)   VMEM
        x = x_ref[...].astype(jnp.float32)                      # (C, HW)

        # ---- brightness & texture attention: fused 1x1 convs on the MXU ----
        y = jnp.dot(w_brtx_ref[...], x,
                    preferred_element_type=jnp.float32)         # (8, HW)
        br = jax.nn.sigmoid(y[0:1, :] + bias_ref[0])            # (1, HW)
        tx = jax.nn.sigmoid(y[1:2, :] + bias_ref[1])            # (1, HW)
        brtx = br * tx                                          # (1, HW)

        # ---- channel attention: GAP -> 1x1 -> ReLU -> 1x1 -> sigmoid -------
        pooled = jnp.mean(x, axis=1, keepdims=True)             # (C, 1)
        h1 = (pooled * w1t_ref[...]).sum(axis=0, keepdims=True) + b1_ref[...]
        h1 = jnp.maximum(h1, 0.0)                               # (1, C2)
        ca = jax.nn.sigmoid((w2_ref[...] * h1).sum(axis=1, keepdims=True)
                            + b2_ref[...])                      # (C, 1)

        # ---- spatial attention: 7x7 conv over [mean_c(x), max_c(x)] --------
        # done entirely in the flattened lane-dense layout: zero-pad the flat
        # planes along the lane axis (covers vertical out-of-bounds taps),
        # take one static lane-offset slice per tap, and fix horizontal
        # row-wrap with one precomputed mask multiply per kw.
        avg_flat = jnp.mean(x, axis=0, keepdims=True)           # (1, HW)
        max_flat = jnp.max(x, axis=0, keepdims=True)            # (1, HW)
        zpad = jnp.zeros((1, PAD), jnp.float32)
        pad_a = jnp.concatenate([zpad, avg_flat, zpad], axis=1)  # (1, HW+2*PAD)
        pad_m = jnp.concatenate([zpad, max_flat, zpad], axis=1)  # (1, HW+2*PAD)

        acc = jnp.full((1, HW), bias_ref[2], jnp.float32)
        for kw in range(KS):
            dw = kw - R
            acc_w = jnp.zeros((1, HW), jnp.float32)
            for kh in range(KS):
                dh = kh - R
                s = PAD + dh * W + dw
                acc_w = acc_w + (wsp_ref[kh * KS + kw] * pad_a[:, s:s + HW]
                                 + wsp_ref[KS * KS + kh * KS + kw]
                                   * pad_m[:, s:s + HW])
            if dw != 0:
                acc_w = acc_w * wmask_ref[kw:kw + 1, :]
            acc = acc + acc_w
        sp = jax.nn.sigmoid(acc)                                # (1, HW)

        # ---- fuse (same association as the reference: (x*combined)*ca) -----
        combined = brtx * sp                                    # (1, HW)
        o_ref[...] = (x * combined * ca).astype(o_ref.dtype)    # (C, HW)

    vmem = pl.BlockSpec(memory_space=pltpu.MemorySpace.VMEM)
    smem = pl.BlockSpec(memory_space=pltpu.MemorySpace.SMEM)

    out_flat = pl.pallas_call(
        kernel,
        out_shape=jax.ShapeDtypeStruct((B, C, HW), x.dtype),
        # One image per grid step; images are independent -> "parallel".
        # For large B, block several images per step to amortise the
        # ~0.35us/step overhead.
        grid=(B,),
        in_specs=[
            pl.BlockSpec((None, C, HW), lambda b: (b, 0, 0)),   # x, lane-dense
            vmem, vmem, vmem, vmem, vmem, vmem,                 # weights + masks
            smem, smem,                                         # wsp, biases
        ],
        out_specs=pl.BlockSpec((None, C, HW), lambda b: (b, 0, 0)),
        compiler_params=pltpu.CompilerParams(
            dimension_semantics=("parallel",),
            vmem_limit_bytes=32 * 1024 * 1024),
    )(x_flat, w_brtx, w1t, b1, w2, b2, wmask, wsp, bias)

    return out_flat.reshape(B, C, H, W)


# --------------------------- pure-JAX reference ------------------------------
def fusion_forward_ref(x, p):
    dn = ("NCHW", "OIHW", "NCHW")

    def conv1x1(inp, w, b):
        y = lax.conv_general_dilated(inp, w, (1, 1), "VALID", dimension_numbers=dn)
        return y + b.reshape(1, -1, 1, 1)

    br = jax.nn.sigmoid(conv1x1(x, p["w_br"], p["b_br"]))
    tx = jax.nn.sigmoid(conv1x1(x, p["w_tx"], p["b_tx"]))
    pooled = jnp.mean(x, axis=(2, 3), keepdims=True)
    h1 = jax.nn.relu(conv1x1(pooled, p["w1"], p["b1"]))
    ca = jax.nn.sigmoid(conv1x1(h1, p["w2"], p["b2"]))
    avg_o = jnp.mean(x, axis=1, keepdims=True)
    max_o = jnp.max(x, axis=1, keepdims=True)
    sp_in = jnp.concatenate([avg_o, max_o], axis=1)
    sp = lax.conv_general_dilated(sp_in, p["w_sp"], (1, 1), ((3, 3), (3, 3)),
                                  dimension_numbers=dn) + p["b_sp"].reshape(1, 1, 1, 1)
    sp = jax.nn.sigmoid(sp)
    combined = br * tx * sp
    return x * combined * ca


if __name__ == "__main__":
    B, C, H, W = 2, 4, 16, 16
    C2 = C // 2

    key = jax.random.PRNGKey(0)
    ks = jax.random.split(key, 12)

    params = {
        "w_br": 0.2 * jax.random.normal(ks[0], (1, C, 1, 1), jnp.float32),
        "b_br": 0.1 * jax.random.normal(ks[1], (1,), jnp.float32),
        "w_tx": 0.2 * jax.random.normal(ks[2], (1, C, 1, 1), jnp.float32),
        "b_tx": 0.1 * jax.random.normal(ks[3], (1,), jnp.float32),
        "w1":   0.2 * jax.random.normal(ks[4], (C2, C, 1, 1), jnp.float32),
        "b1":   0.1 * jax.random.normal(ks[5], (C2,), jnp.float32),
        "w2":   0.2 * jax.random.normal(ks[6], (C, C2, 1, 1), jnp.float32),
        "b2":   0.1 * jax.random.normal(ks[7], (C,), jnp.float32),
        "w_sp": 0.1 * jax.random.normal(ks[8], (1, 2, 7, 7), jnp.float32),
        "b_sp": 0.1 * jax.random.normal(ks[9], (1,), jnp.float32),
        # fusion_weights = ones(3) exists in __init__ but is unused in forward().
    }

    x = jax.random.normal(ks[10], (B, C, H, W), jnp.float32)

    out = jax.block_until_ready(fusion_forward_pallas(x, params))
    ref = jax.block_until_ready(fusion_forward_ref(x, params))

    # 1e-4 tolerance: covers the MXU f32 path of the fused 1x1 convs vs the
    # XLA conv reference; structural/layout bugs would show up as O(1) errors.
    np.testing.assert_allclose(np.asarray(out), np.asarray(ref),
                               rtol=1e-4, atol=1e-4)
    print("KERNEL_OK")
</pallas_src>

<mosaic_0001>
module attributes {stable_mosaic.version = 11 : i64} {
  func.func @kernel(%arg0: i32, %arg1: memref<1x4x256xf32, #tpu.memory_space<vmem>>, %arg2: memref<8x4xf32, #tpu.memory_space<vmem>>, %arg3: memref<4x2xf32, #tpu.memory_space<vmem>>, %arg4: memref<1x2xf32, #tpu.memory_space<vmem>>, %arg5: memref<4x2xf32, #tpu.memory_space<vmem>>, %arg6: memref<4x1xf32, #tpu.memory_space<vmem>>, %arg7: memref<8x256xf32, #tpu.memory_space<vmem>>, %arg8: memref<98xf32, #tpu.memory_space<smem>>, %arg9: memref<3xf32, #tpu.memory_space<smem>>, %arg10: memref<1x4x256xf32, #tpu.memory_space<vmem>>) attributes {dimension_semantics = [#tpu.dimension_semantics<parallel>], iteration_bounds = array<i64: 2>, scalar_prefetch = 0 : i64, scratch_operands = 0 : i64, tpu.core_type = #tpu.core_type<tc>, window_params = [{transform_indices = @transform_0, window_bounds = array<i64: 1, 4, 256>}, {pipeline_mode = #tpu.pipeline_mode<synchronous>, transform_indices = @transform_1, window_bounds = array<i64: 8, 4>}, {pipeline_mode = #tpu.pipeline_mode<synchronous>, transform_indices = @transform_2, window_bounds = array<i64: 4, 2>}, {pipeline_mode = #tpu.pipeline_mode<synchronous>, transform_indices = @transform_3, window_bounds = array<i64: 1, 2>}, {pipeline_mode = #tpu.pipeline_mode<synchronous>, transform_indices = @transform_4, window_bounds = array<i64: 4, 2>}, {pipeline_mode = #tpu.pipeline_mode<synchronous>, transform_indices = @transform_5, window_bounds = array<i64: 4, 1>}, {pipeline_mode = #tpu.pipeline_mode<synchronous>, transform_indices = @transform_6, window_bounds = array<i64: 8, 256>}, {transform_indices = @transform_7, window_bounds = array<i64: 98>}, {transform_indices = @transform_8, window_bounds = array<i64: 3>}, {transform_indices = @transform_9, window_bounds = array<i64: 1, 4, 256>}]} {
    %c0 = arith.constant 0 : index
    %c0_0 = arith.constant 0 : index
    %c0_1 = arith.constant 0 : index
    %0 = vector.load %arg1[%c0, %c0_0, %c0_1] : memref<1x4x256xf32, #tpu.memory_space<vmem>>, vector<1x4x256xf32>
    %1 = vector.shape_cast %0 : vector<1x4x256xf32> to vector<4x256xf32>
    %c0_2 = arith.constant 0 : index
    %c0_3 = arith.constant 0 : index
    %2 = vector.load %arg2[%c0_2, %c0_3] : memref<8x4xf32, #tpu.memory_space<vmem>>, vector<8x4xf32>
    %cst = arith.constant dense<0.000000e+00> : vector<8x256xf32>
    %3 = tpu.matmul %2, %1, %cst {dimension_numbers = #tpu.dot_dimension_numbers<[1], [0], [0], [1], [0, 0, 1, 1], [], []>} : vector<8x4xf32>, vector<4x256xf32>, vector<8x256xf32> -> vector<8x256xf32>
    %4 = vector.extract_strided_slice %3 {offsets = [0, 0], sizes = [1, 256], strides = [1, 1]} : vector<8x256xf32> to vector<1x256xf32>
    %c0_4 = arith.constant 0 : index
    %5 = memref.load %arg9[%c0_4] : memref<3xf32, #tpu.memory_space<smem>>
    %6 = vector.broadcast %5 : f32 to vector<1x256xf32>
    %7 = arith.addf %4, %6 : vector<1x256xf32>
    %8 = arith.negf %7 : vector<1x256xf32>
    %9 = math.exp %8 : vector<1x256xf32>
    %cst_5 = arith.constant 1.000000e+00 : f32
    %10 = vector.broadcast %cst_5 : f32 to vector<1x256xf32>
    %11 = arith.addf %10, %9 : vector<1x256xf32>
    %12 = arith.divf %10, %11 : vector<1x256xf32>
    %13 = vector.extract_strided_slice %3 {offsets = [1, 0], sizes = [1, 256], strides = [1, 1]} : vector<8x256xf32> to vector<1x256xf32>
    %c1 = arith.constant 1 : index
    %14 = memref.load %arg9[%c1] : memref<3xf32, #tpu.memory_space<smem>>
    %15 = vector.broadcast %14 : f32 to vector<1x256xf32>
    %16 = arith.addf %13, %15 : vector<1x256xf32>
    %17 = arith.negf %16 : vector<1x256xf32>
    %18 = math.exp %17 : vector<1x256xf32>
    %cst_6 = arith.constant 1.000000e+00 : f32
    %19 = vector.broadcast %cst_6 : f32 to vector<1x256xf32>
    %20 = arith.addf %19, %18 : vector<1x256xf32>
    %21 = arith.divf %19, %20 : vector<1x256xf32>
    %22 = arith.mulf %12, %21 : vector<1x256xf32>
    %cst_7 = arith.constant dense<0.000000e+00> : vector<4xf32>
    %23 = vector.multi_reduction <add>, %1, %cst_7 [1] : vector<4x256xf32> to vector<4xf32>
    %24 = vector.shape_cast %23 : vector<4xf32> to vector<4x1xf32>
    %cst_8 = arith.constant 2.560000e+02 : f32
    %25 = vector.broadcast %cst_8 : f32 to vector<4x1xf32>
    %26 = arith.divf %24, %25 : vector<4x1xf32>
    %c0_9 = arith.constant 0 : index
    %c0_10 = arith.constant 0 : index
    %27 = vector.load %arg3[%c0_9, %c0_10] : memref<4x2xf32, #tpu.memory_space<vmem>>, vector<4x2xf32>
    %28 = vector.broadcast %26 : vector<4x1xf32> to vector<4x2xf32>
    %29 = arith.mulf %28, %27 : vector<4x2xf32>
    %cst_11 = arith.constant dense<0.000000e+00> : vector<2xf32>
    %30 = vector.multi_reduction <add>, %29, %cst_11 [0] : vector<4x2xf32> to vector<2xf32>
    %31 = vector.shape_cast %30 : vector<2xf32> to vector<1x2xf32>
    %c0_12 = arith.constant 0 : index
    %c0_13 = arith.constant 0 : index
    %32 = vector.load %arg4[%c0_12, %c0_13] : memref<1x2xf32, #tpu.memory_space<vmem>>, vector<1x2xf32>
    %33 = arith.addf %31, %32 : vector<1x2xf32>
    %cst_14 = arith.constant 0.000000e+00 : f32
    %34 = vector.broadcast %cst_14 : f32 to vector<1x2xf32>
    %35 = arith.maximumf %33, %34 : vector<1x2xf32>
    %c0_15 = arith.constant 0 : index
    %c0_16 = arith.constant 0 : index
    %36 = vector.load %arg5[%c0_15, %c0_16] : memref<4x2xf32, #tpu.memory_space<vmem>>, vector<4x2xf32>
    %37 = vector.broadcast %35 : vector<1x2xf32> to vector<4x2xf32>
    %38 = arith.mulf %36, %37 : vector<4x2xf32>
    %cst_17 = arith.constant dense<0.000000e+00> : vector<4xf32>
    %39 = vector.multi_reduction <add>, %38, %cst_17 [1] : vector<4x2xf32> to vector<4xf32>
    %40 = vector.shape_cast %39 : vector<4xf32> to vector<4x1xf32>
    %c0_18 = arith.constant 0 : index
    %c0_19 = arith.constant 0 : index
    %41 = vector.load %arg6[%c0_18, %c0_19] : memref<4x1xf32, #tpu.memory_space<vmem>>, vector<4x1xf32>
    %42 = arith.addf %40, %41 : vector<4x1xf32>
    %43 = arith.negf %42 : vector<4x1xf32>
    %44 = math.exp %43 : vector<4x1xf32>
    %cst_20 = arith.constant 1.000000e+00 : f32
    %45 = vector.broadcast %cst_20 : f32 to vector<4x1xf32>
    %46 = arith.addf %45, %44 : vector<4x1xf32>
    %47 = arith.divf %45, %46 : vector<4x1xf32>
    %cst_21 = arith.constant dense<0.000000e+00> : vector<256xf32>
    %48 = vector.multi_reduction <add>, %1, %cst_21 [0] : vector<4x256xf32> to vector<256xf32>
    %49 = vector.shape_cast %48 : vector<256xf32> to vector<1x256xf32>
    %cst_22 = arith.constant 4.000000e+00 : f32
    %50 = vector.broadcast %cst_22 : f32 to vector<1x256xf32>
    %51 = arith.divf %49, %50 : vector<1x256xf32>
    %cst_23 = arith.constant dense<0xFF800000> : vector<256xf32>
    %52 = vector.multi_reduction <maximumf>, %1, %cst_23 [0] : vector<4x256xf32> to vector<256xf32>
    %53 = vector.shape_cast %52 : vector<256xf32> to vector<1x256xf32>
    %cst_24 = arith.constant 0.000000e+00 : f32
    %54 = vector.broadcast %cst_24 : f32 to vector<1x128xf32>
    %55 = tpu.concatenate %54, %51, %54 in 1 : vector<1x128xf32>, vector<1x256xf32>, vector<1x128xf32> -> vector<1x512xf32>
    %56 = tpu.concatenate %54, %53, %54 in 1 : vector<1x128xf32>, vector<1x256xf32>, vector<1x128xf32> -> vector<1x512xf32>
    %c2 = arith.constant 2 : index
    %57 = memref.load %arg9[%c2] : memref<3xf32, #tpu.memory_space<smem>>
    %58 = vector.broadcast %57 : f32 to vector<1x256xf32>
    %cst_25 = arith.constant 0.000000e+00 : f32
    %59 = vector.broadcast %cst_25 : f32 to vector<1x256xf32>
    %c0_26 = arith.constant 0 : index
    %60 = memref.load %arg8[%c0_26] : memref<98xf32, #tpu.memory_space<smem>>
    %61 = vector.extract_strided_slice %55 {offsets = [0, 77], sizes = [1, 256], strides = [1, 1]} : vector<1x512xf32> to vector<1x256xf32>
    %62 = vector.broadcast %60 : f32 to vector<1x256xf32>
    %63 = arith.mulf %62, %61 : vector<1x256xf32>
    %c49 = arith.constant 49 : index
    %64 = memref.load %arg8[%c49] : memref<98xf32, #tpu.memory_space<smem>>
    %65 = vector.extract_strided_slice %56 {offsets = [0, 77], sizes = [1, 256], strides = [1, 1]} : vector<1x512xf32> to vector<1x256xf32>
    %66 = vector.broadcast %64 : f32 to vector<1x256xf32>
    %67 = arith.mulf %66, %65 : vector<1x256xf32>
    %68 = arith.addf %63, %67 : vector<1x256xf32>
    %69 = arith.addf %59, %68 : vector<1x256xf32>
    %c7 = arith.constant 7 : index
    %70 = memref.load %arg8[%c7] : memref<98xf32, #tpu.memory_space<smem>>
    %71 = vector.extract_strided_slice %55 {offsets = [0, 93], sizes = [1, 256], strides = [1, 1]} : vector<1x512xf32> to vector<1x256xf32>
    %72 = vector.broadcast %70 : f32 to vector<1x256xf32>
    %73 = arith.mulf %72, %71 : vector<1x256xf32>
    %c56 = arith.constant 56 : index
    %74 = memref.load %arg8[%c56] : memref<98xf32, #tpu.memory_space<smem>>
    %75 = vector.extract_strided_slice %56 {offsets = [0, 93], sizes = [1, 256], strides = [1, 1]} : vector<1x512xf32> to vector<1x256xf32>
    %76 = vector.broadcast %74 : f32 to vector<1x256xf32>
    %77 = arith.mulf %76, %75 : vector<1x256xf32>
    %78 = arith.addf %73, %77 : vector<1x256xf32>
    %79 = arith.addf %69, %78 : vector<1x256xf32>
    %c14 = arith.constant 14 : index
    %80 = memref.load %arg8[%c14] : memref<98xf32, #tpu.memory_space<smem>>
    %81 = vector.extract_strided_slice %55 {offsets = [0, 109], sizes = [1, 256], strides = [1, 1]} : vector<1x512xf32> to vector<1x256xf32>
    %82 = vector.broadcast %80 : f32 to vector<1x256xf32>
    %83 = arith.mulf %82, %81 : vector<1x256xf32>
    %c63 = arith.constant 63 : index
    %84 = memref.load %arg8[%c63] : memref<98xf32, #tpu.memory_space<smem>>
    %85 = vector.extract_strided_slice %56 {offsets = [0, 109], sizes = [1, 256], strides = [1, 1]} : vector<1x512xf32> to vector<1x256xf32>
    %86 = vector.broadcast %84 : f32 to vector<1x256xf32>
    %87 = arith.mulf %86, %85 : vector<1x256xf32>
    %88 = arith.addf %83, %87 : vector<1x256xf32>
    %89 = arith.addf %79, %88 : vector<1x256xf32>
    %c21 = arith.constant 21 : index
    %90 = memref.load %arg8[%c21] : memref<98xf32, #tpu.memory_space<smem>>
    %91 = vector.extract_strided_slice %55 {offsets = [0, 125], sizes = [1, 256], strides = [1, 1]} : vector<1x512xf32> to vector<1x256xf32>
    %92 = vector.broadcast %90 : f32 to vector<1x256xf32>
    %93 = arith.mulf %92, %91 : vector<1x256xf32>
    %c70 = arith.constant 70 : index
    %94 = memref.load %arg8[%c70] : memref<98xf32, #tpu.memory_space<smem>>
    %95 = vector.extract_strided_slice %56 {offsets = [0, 125], sizes = [1, 256], strides = [1, 1]} : vector<1x512xf32> to vector<1x256xf32>
    %96 = vector.broadcast %94 : f32 to vector<1x256xf32>
    %97 = arith.mulf %96, %95 : vector<1x256xf32>
    %98 = arith.addf %93, %97 : vector<1x256xf32>
    %99 = arith.addf %89, %98 : vector<1x256xf32>
    %c28 = arith.constant 28 : index
    %100 = memref.load %arg8[%c28] : memref<98xf32, #tpu.memory_space<smem>>
    %101 = vector.extract_strided_slice %55 {offsets = [0, 141], sizes = [1, 256], strides = [1, 1]} : vector<1x512xf32> to vector<1x256xf32>
    %102 = vector.broadcast %100 : f32 to vector<1x256xf32>
    %103 = arith.mulf %102, %101 : vector<1x256xf32>
    %c77 = arith.constant 77 : index
    %104 = memref.load %arg8[%c77] : memref<98xf32, #tpu.memory_space<smem>>
    %105 = vector.extract_strided_slice %56 {offsets = [0, 141], sizes = [1, 256], strides = [1, 1]} : vector<1x512xf32> to vector<1x256xf32>
    %106 = vector.broadcast %104 : f32 to vector<1x256xf32>
    %107 = arith.mulf %106, %105 : vector<1x256xf32>
    %108 = arith.addf %103, %107 : vector<1x256xf32>
    %109 = arith.addf %99, %108 : vector<1x256xf32>
    %c35 = arith.constant 35 : index
    %110 = memref.load %arg8[%c35] : memref<98xf32, #tpu.memory_space<smem>>
    %111 = vector.extract_strided_slice %55 {offsets = [0, 157], sizes = [1, 256], strides = [1, 1]} : vector<1x512xf32> to vector<1x256xf32>
    %112 = vector.broadcast %110 : f32 to vector<1x256xf32>
    %113 = arith.mulf %112, %111 : vector<1x256xf32>
    %c84 = arith.constant 84 : index
    %114 = memref.load %arg8[%c84] : memref<98xf32, #tpu.memory_space<smem>>
    %115 = vector.extract_strided_slice %56 {offsets = [0, 157], sizes = [1, 256], strides = [1, 1]} : vector<1x512xf32> to vector<1x256xf32>
    %116 = vector.broadcast %114 : f32 to vector<1x256xf32>
    %117 = arith.mulf %116, %115 : vector<1x256xf32>
    %118 = arith.addf %113, %117 : vector<1x256xf32>
    %119 = arith.addf %109, %118 : vector<1x256xf32>
    %c42 = arith.constant 42 : index
    %120 = memref.load %arg8[%c42] : memref<98xf32, #tpu.memory_space<smem>>
    %121 = vector.extract_strided_slice %55 {offsets = [0, 173], sizes = [1, 256], strides = [1, 1]} : vector<1x512xf32> to vector<1x256xf32>
    %122 = vector.broadcast %120 : f32 to vector<1x256xf32>
    %123 = arith.mulf %122, %121 : vector<1x256xf32>
    %c91 = arith.constant 91 : index
    %124 = memref.load %arg8[%c91] : memref<98xf32, #tpu.memory_space<smem>>
    %125 = vector.extract_strided_slice %56 {offsets = [0, 173], sizes = [1, 256], strides = [1, 1]} : vector<1x512xf32> to vector<1x256xf32>
    %126 = vector.broadcast %124 : f32 to vector<1x256xf32>
    %127 = arith.mulf %126, %125 : vector<1x256xf32>
    %128 = arith.addf %123, %127 : vector<1x256xf32>
    %129 = arith.addf %119, %128 : vector<1x256xf32>
    %c0_27 = arith.constant 0 : index
    %c0_28 = arith.constant 0 : index
    %130 = vector.load %arg7[%c0_27, %c0_28] : memref<8x256xf32, #tpu.memory_space<vmem>>, vector<1x256xf32>
    %131 = arith.mulf %129, %130 : vector<1x256xf32>
    %132 = arith.addf %58, %131 : vector<1x256xf32>
    %cst_29 = arith.constant 0.000000e+00 : f32
    %133 = vector.broadcast %cst_29 : f32 to vector<1x256xf32>
    %c1_30 = arith.constant 1 : index
    %134 = memref.load %arg8[%c1_30] : memref<98xf32, #tpu.memory_space<smem>>
    %135 = vector.extract_strided_slice %55 {offsets = [0, 78], sizes = [1, 256], strides = [1, 1]} : vector<1x512xf32> to vector<1x256xf32>
    %136 = vector.broadcast %134 : f32 to vector<1x256xf32>
    %137 = arith.mulf %136, %135 : vector<1x256xf32>
    %c50 = arith.constant 50 : index
    %138 = memref.load %arg8[%c50] : memref<98xf32, #tpu.memory_space<smem>>
    %139 = vector.extract_strided_slice %56 {offsets = [0, 78], sizes = [1, 256], strides = [1, 1]} : vector<1x512xf32> to vector<1x256xf32>
    %140 = vector.broadcast %138 : f32 to vector<1x256xf32>
    %141 = arith.mulf %140, %139 : vector<1x256xf32>
    %142 = arith.addf %137, %141 : vector<1x256xf32>
    %143 = arith.addf %133, %142 : vector<1x256xf32>
    %c8 = arith.constant 8 : index
    %144 = memref.load %arg8[%c8] : memref<98xf32, #tpu.memory_space<smem>>
    %145 = vector.extract_strided_slice %55 {offsets = [0, 94], sizes = [1, 256], strides = [1, 1]} : vector<1x512xf32> to vector<1x256xf32>
    %146 = vector.broadcast %144 : f32 to vector<1x256xf32>
    %147 = arith.mulf %146, %145 : vector<1x256xf32>
    %c57 = arith.constant 57 : index
    %148 = memref.load %arg8[%c57] : memref<98xf32, #tpu.memory_space<smem>>
    %149 = vector.extract_strided_slice %56 {offsets = [0, 94], sizes = [1, 256], strides = [1, 1]} : vector<1x512xf32> to vector<1x256xf32>
    %150 = vector.broadcast %148 : f32 to vector<1x256xf32>
    %151 = arith.mulf %150, %149 : vector<1x256xf32>
    %152 = arith.addf %147, %151 : vector<1x256xf32>
    %153 = arith.addf %143, %152 : vector<1x256xf32>
    %c15 = arith.constant 15 : index
    %154 = memref.load %arg8[%c15] : memref<98xf32, #tpu.memory_space<smem>>
    %155 = vector.extract_strided_slice %55 {offsets = [0, 110], sizes = [1, 256], strides = [1, 1]} : vector<1x512xf32> to vector<1x256xf32>
    %156 = vector.broadcast %154 : f32 to vector<1x256xf32>
    %157 = arith.mulf %156, %155 : vector<1x256xf32>
    %c64 = arith.constant 64 : index
    %158 = memref.load %arg8[%c64] : memref<98xf32, #tpu.memory_space<smem>>
    %159 = vector.extract_strided_slice %56 {offsets = [0, 110], sizes = [1, 256], strides = [1, 1]} : vector<1x512xf32> to vector<1x256xf32>
    %160 = vector.broadcast %158 : f32 to vector<1x256xf32>
    %161 = arith.mulf %160, %159 : vector<1x256xf32>
    %162 = arith.addf %157, %161 : vector<1x256xf32>
    %163 = arith.addf %153, %162 : vector<1x256xf32>
    %c22 = arith.constant 22 : index
    %164 = memref.load %arg8[%c22] : memref<98xf32, #tpu.memory_space<smem>>
    %165 = vector.extract_strided_slice %55 {offsets = [0, 126], sizes = [1, 256], strides = [1, 1]} : vector<1x512xf32> to vector<1x256xf32>
    %166 = vector.broadcast %164 : f32 to vector<1x256xf32>
    %167 = arith.mulf %166, %165 : vector<1x256xf32>
    %c71 = arith.constant 71 : index
    %168 = memref.load %arg8[%c71] : memref<98xf32, #tpu.memory_space<smem>>
    %169 = vector.extract_strided_slice %56 {offsets = [0, 126], sizes = [1, 256], strides = [1, 1]} : vector<1x512xf32> to vector<1x256xf32>
    %170 = vector.broadcast %168 : f32 to vector<1x256xf32>
    %171 = arith.mulf %170, %169 : vector<1x256xf32>
    %172 = arith.addf %167, %171 : vector<1x256xf32>
    %173 = arith.addf %163, %172 : vector<1x256xf32>
    %c29 = arith.constant 29 : index
    %174 = memref.load %arg8[%c29] : memref<98xf32, #tpu.memory_space<smem>>
    %175 = vector.extract_strided_slice %55 {offsets = [0, 142], sizes = [1, 256], strides = [1, 1]} : vector<1x512xf32> to vector<1x256xf32>
    %176 = vector.broadcast %174 : f32 to vector<1x256xf32>
    %177 = arith.mulf %176, %175 : vector<1x256xf32>
    %c78 = arith.constant 78 : index
    %178 = memref.load %arg8[%c78] : memref<98xf32, #tpu.memory_space<smem>>
    %179 = vector.extract_strided_slice %56 {offsets = [0, 142], sizes = [1, 256], strides = [1, 1]} : vector<1x512xf32> to vector<1x256xf32>
    %180 = vector.broadcast %178 : f32 to vector<1x256xf32>
    %181 = arith.mulf %180, %179 : vector<1x256xf32>
    %182 = arith.addf %177, %181 : vector<1x256xf32>
    %183 = arith.addf %173, %182 : vector<1x256xf32>
    %c36 = arith.constant 36 : index
    %184 = memref.load %arg8[%c36] : memref<98xf32, #tpu.memory_space<smem>>
    %185 = vector.extract_strided_slice %55 {offsets = [0, 158], sizes = [1, 256], strides = [1, 1]} : vector<1x512xf32> to vector<1x256xf32>
    %186 = vector.broadcast %184 : f32 to vector<1x256xf32>
    %187 = arith.mulf %186, %185 : vector<1x256xf32>
    %c85 = arith.constant 85 : index
    %188 = memref.load %arg8[%c85] : memref<98xf32, #tpu.memory_space<smem>>
    %189 = vector.extract_strided_slice %56 {offsets = [0, 158], sizes = [1, 256], strides = [1, 1]} : vector<1x512xf32> to vector<1x256xf32>
    %190 = vector.broadcast %188 : f32 to vector<1x256xf32>
    %191 = arith.mulf %190, %189 : vector<1x256xf32>
    %192 = arith.addf %187, %191 : vector<1x256xf32>
    %193 = arith.addf %183, %192 : vector<1x256xf32>
    %c43 = arith.constant 43 : index
    %194 = memref.load %arg8[%c43] : memref<98xf32, #tpu.memory_space<smem>>
    %195 = vector.extract_strided_slice %55 {offsets = [0, 174], sizes = [1, 256], strides = [1, 1]} : vector<1x512xf32> to vector<1x256xf32>
    %196 = vector.broadcast %194 : f32 to vector<1x256xf32>
    %197 = arith.mulf %196, %195 : vector<1x256xf32>
    %c92 = arith.constant 92 : index
    %198 = memref.load %arg8[%c92] : memref<98xf32, #tpu.memory_space<smem>>
    %199 = vector.extract_strided_slice %56 {offsets = [0, 174], sizes = [1, 256], strides = [1, 1]} : vector<1x512xf32> to vector<1x256xf32>
    %200 = vector.broadcast %198 : f32 to vector<1x256xf32>
    %201 = arith.mulf %200, %199 : vector<1x256xf32>
    %202 = arith.addf %197, %201 : vector<1x256xf32>
    %203 = arith.addf %193, %202 : vector<1x256xf32>
    %c1_31 = arith.constant 1 : index
    %c0_32 = arith.constant 0 : index
    %204 = vector.load %arg7[%c1_31, %c0_32] : memref<8x256xf32, #tpu.memory_space<vmem>>, vector<1x256xf32>
    %205 = arith.mulf %203, %204 : vector<1x256xf32>
    %206 = arith.addf %132, %205 : vector<1x256xf32>
    %cst_33 = arith.constant 0.000000e+00 : f32
    %207 = vector.broadcast %cst_33 : f32 to vector<1x256xf32>
    %c2_34 = arith.constant 2 : index
    %208 = memref.load %arg8[%c2_34] : memref<98xf32, #tpu.memory_space<smem>>
    %209 = vector.extract_strided_slice %55 {offsets = [0, 79], sizes = [1, 256], strides = [1, 1]} : vector<1x512xf32> to vector<1x256xf32>
    %210 = vector.broadcast %208 : f32 to vector<1x256xf32>
    %211 = arith.mulf %210, %209 : vector<1x256xf32>
    %c51 = arith.constant 51 : index
    %212 = memref.load %arg8[%c51] : memref<98xf32, #tpu.memory_space<smem>>
    %213 = vector.extract_strided_slice %56 {offsets = [0, 79], sizes = [1, 256], strides = [1, 1]} : vector<1x512xf32> to vector<1x256xf32>
    %214 = vector.broadcast %212 : f32 to vector<1x256xf32>
    %215 = arith.mulf %214, %213 : vector<1x256xf32>
    %216 = arith.addf %211, %215 : vector<1x256xf32>
    %217 = arith.addf %207, %216 : vector<1x256xf32>
    %c9 = arith.constant 9 : index
    %218 = memref.load %arg8[%c9] : memref<98xf32, #tpu.memory_space<smem>>
    %219 = vector.extract_strided_slice %55 {offsets = [0, 95], sizes = [1, 256], strides = [1, 1]} : vector<1x512xf32> to vector<1x256xf32>
    %220 = vector.broadcast %218 : f32 to vector<1x256xf32>
    %221 = arith.mulf %220, %219 : vector<1x256xf32>
    %c58 = arith.constant 58 : index
    %222 = memref.load %arg8[%c58] : memref<98xf32, #tpu.memory_space<smem>>
    %223 = vector.extract_strided_slice %56 {offsets = [0, 95], sizes = [1, 256], strides = [1, 1]} : vector<1x512xf32> to vector<1x256xf32>
    %224 = vector.broadcast %222 : f32 to vector<1x256xf32>
    %225 = arith.mulf %224, %223 : vector<1x256xf32>
    %226 = arith.addf %221, %225 : vector<1x256xf32>
    %227 = arith.addf %217, %226 : vector<1x256xf32>
    %c16 = arith.constant 16 : index
    %228 = memref.load %arg8[%c16] : memref<98xf32, #tpu.memory_space<smem>>
    %229 = vector.extract_strided_slice %55 {offsets = [0, 111], sizes = [1, 256], strides = [1, 1]} : vector<1x512xf32> to vector<1x256xf32>
    %230 = vector.broadcast %228 : f32 to vector<1x256xf32>
    %231 = arith.mulf %230, %229 : vector<1x256xf32>
    %c65 = arith.constant 65 : index
    %232 = memref.load %arg8[%c65] : memref<98xf32, #tpu.memory_space<smem>>
    %233 = vector.extract_strided_slice %56 {offsets = [0, 111], sizes = [1, 256], strides = [1, 1]} : vector<1x512xf32> to vector<1x256xf32>
    %234 = vector.broadcast %232 : f32 to vector<1x256xf32>
    %235 = arith.mulf %234, %233 : vector<1x256xf32>
    %236 = arith.addf %231, %235 : vector<1x256xf32>
    %237 = arith.addf %227, %236 : vector<1x256xf32>
    %c23 = arith.constant 23 : index
    %238 = memref.load %arg8[%c23] : memref<98xf32, #tpu.memory_space<smem>>
    %239 = vector.extract_strided_slice %55 {offsets = [0, 127], sizes = [1, 256], strides = [1, 1]} : vector<1x512xf32> to vector<1x256xf32>
    %240 = vector.broadcast %238 : f32 to vector<1x256xf32>
    %241 = arith.mulf %240, %239 : vector<1x256xf32>
    %c72 = arith.constant 72 : index
    %242 = memref.load %arg8[%c72] : memref<98xf32, #tpu.memory_space<smem>>
    %243 = vector.extract_strided_slice %56 {offsets = [0, 127], sizes = [1, 256], strides = [1, 1]} : vector<1x512xf32> to vector<1x256xf32>
    %244 = vector.broadcast %242 : f32 to vector<1x256xf32>
    %245 = arith.mulf %244, %243 : vector<1x256xf32>
    %246 = arith.addf %241, %245 : vector<1x256xf32>
    %247 = arith.addf %237, %246 : vector<1x256xf32>
    %c30 = arith.constant 30 : index
    %248 = memref.load %arg8[%c30] : memref<98xf32, #tpu.memory_space<smem>>
    %249 = vector.extract_strided_slice %55 {offsets = [0, 143], sizes = [1, 256], strides = [1, 1]} : vector<1x512xf32> to vector<1x256xf32>
    %250 = vector.broadcast %248 : f32 to vector<1x256xf32>
    %251 = arith.mulf %250, %249 : vector<1x256xf32>
    %c79 = arith.constant 79 : index
    %252 = memref.load %arg8[%c79] : memref<98xf32, #tpu.memory_space<smem>>
    %253 = vector.extract_strided_slice %56 {offsets = [0, 143], sizes = [1, 256], strides = [1, 1]} : vector<1x512xf32> to vector<1x256xf32>
    %254 = vector.broadcast %252 : f32 to vector<1x256xf32>
    %255 = arith.mulf %254, %253 : vector<1x256xf32>
    %256 = arith.addf %251, %255 : vector<1x256xf32>
    %257 = arith.addf %247, %256 : vector<1x256xf32>
    %c37 = arith.constant 37 : index
    %258 = memref.load %arg8[%c37] : memref<98xf32, #tpu.memory_space<smem>>
    %259 = vector.extract_strided_slice %55 {offsets = [0, 159], sizes = [1, 256], strides = [1, 1]} : vector<1x512xf32> to vector<1x256xf32>
    %260 = vector.broadcast %258 : f32 to vector<1x256xf32>
    %261 = arith.mulf %260, %259 : vector<1x256xf32>
    %c86 = arith.constant 86 : index
    %262 = memref.load %arg8[%c86] : memref<98xf32, #tpu.memory_space<smem>>
    %263 = vector.extract_strided_slice %56 {offsets = [0, 159], sizes = [1, 256], strides = [1, 1]} : vector<1x512xf32> to vector<1x256xf32>
    %264 = vector.broadcast %262 : f32 to vector<1x256xf32>
    %265 = arith.mulf %264, %263 : vector<1x256xf32>
    %266 = arith.addf %261, %265 : vector<1x256xf32>
    %267 = arith.addf %257, %266 : vector<1x256xf32>
    %c44 = arith.constant 44 : index
    %268 = memref.load %arg8[%c44] : memref<98xf32, #tpu.memory_space<smem>>
    %269 = vector.extract_strided_slice %55 {offsets = [0, 175], sizes = [1, 256], strides = [1, 1]} : vector<1x512xf32> to vector<1x256xf32>
    %270 = vector.broadcast %268 : f32 to vector<1x256xf32>
    %271 = arith.mulf %270, %269 : vector<1x256xf32>
    %c93 = arith.constant 93 : index
    %272 = memref.load %arg8[%c93] : memref<98xf32, #tpu.memory_space<smem>>
    %273 = vector.extract_strided_slice %56 {offsets = [0, 175], sizes = [1, 256], strides = [1, 1]} : vector<1x512xf32> to vector<1x256xf32>
    %274 = vector.broadcast %272 : f32 to vector<1x256xf32>
    %275 = arith.mulf %274, %273 : vector<1x256xf32>
    %276 = arith.addf %271, %275 : vector<1x256xf32>
    %277 = arith.addf %267, %276 : vector<1x256xf32>
    %c2_35 = arith.constant 2 : index
    %c0_36 = arith.constant 0 : index
    %278 = vector.load %arg7[%c2_35, %c0_36] : memref<8x256xf32, #tpu.memory_space<vmem>>, vector<1x256xf32>
    %279 = arith.mulf %277, %278 : vector<1x256xf32>
    %280 = arith.addf %206, %279 : vector<1x256xf32>
    %cst_37 = arith.constant 0.000000e+00 : f32
    %281 = vector.broadcast %cst_37 : f32 to vector<1x256xf32>
    %c3 = arith.constant 3 : index
    %282 = memref.load %arg8[%c3] : memref<98xf32, #tpu.memory_space<smem>>
    %283 = vector.extract_strided_slice %55 {offsets = [0, 80], sizes = [1, 256], strides = [1, 1]} : vector<1x512xf32> to vector<1x256xf32>
    %284 = vector.broadcast %282 : f32 to vector<1x256xf32>
    %285 = arith.mulf %284, %283 : vector<1x256xf32>
    %c52 = arith.constant 52 : index
    %286 = memref.load %arg8[%c52] : memref<98xf32, #tpu.memory_space<smem>>
    %287 = vector.extract_strided_slice %56 {offsets = [0, 80], sizes = [1, 256], strides = [1, 1]} : vector<1x512xf32> to vector<1x256xf32>
    %288 = vector.broadcast %286 : f32 to vector<1x256xf32>
    %289 = arith.mulf %288, %287 : vector<1x256xf32>
    %290 = arith.addf %285, %289 : vector<1x256xf32>
    %291 = arith.addf %281, %290 : vector<1x256xf32>
    %c10 = arith.constant 10 : index
    %292 = memref.load %arg8[%c10] : memref<98xf32, #tpu.memory_space<smem>>
    %293 = vector.extract_strided_slice %55 {offsets = [0, 96], sizes = [1, 256], strides = [1, 1]} : vector<1x512xf32> to vector<1x256xf32>
    %294 = vector.broadcast %292 : f32 to vector<1x256xf32>
    %295 = arith.mulf %294, %293 : vector<1x256xf32>
    %c59 = arith.constant 59 : index
    %296 = memref.load %arg8[%c59] : memref<98xf32, #tpu.memory_space<smem>>
    %297 = vector.extract_strided_slice %56 {offsets = [0, 96], sizes = [1, 256], strides = [1, 1]} : vector<1x512xf32> to vector<1x256xf32>
    %298 = vector.broadcast %296 : f32 to vector<1x256xf32>
    %299 = arith.mulf %298, %297 : vector<1x256xf32>
    %300 = arith.addf %295, %299 : vector<1x256xf32>
    %301 = arith.addf %291, %300 : vector<1x256xf32>
    %c17 = arith.constant 17 : index
    %302 = memref.load %arg8[%c17] : memref<98xf32, #tpu.memory_space<smem>>
    %303 = vector.extract_strided_slice %55 {offsets = [0, 112], sizes = [1, 256], strides = [1, 1]} : vector<1x512xf32> to vector<1x256xf32>
    %304 = vector.broadcast %302 : f32 to vector<1x256xf32>
    %305 = arith.mulf %304, %303 : vector<1x256xf32>
    %c66 = arith.constant 66 : index
    %306 = memref.load %arg8[%c66] : memref<98xf32, #tpu.memory_space<smem>>
    %307 = vector.extract_strided_slice %56 {offsets = [0, 112], sizes = [1, 256], strides = [1, 1]} : vector<1x512xf32> to vector<1x256xf32>
    %308 = vector.broadcast %306 : f32 to vector<1x256xf32>
    %309 = arith.mulf %308, %307 : vector<1x256xf32>
    %310 = arith.addf %305, %309 : vector<1x256xf32>
    %311 = arith.addf %301, %310 : vector<1x256xf32>
    %c24 = arith.constant 24 : index
    %312 = memref.load %arg8[%c24] : memref<98xf32, #tpu.memory_space<smem>>
    %313 = vector.extract_strided_slice %55 {offsets = [0, 128], sizes = [1, 256], strides = [1, 1]} : vector<1x512xf32> to vector<1x256xf32>
    %314 = vector.broadcast %312 : f32 to vector<1x256xf32>
    %315 = arith.mulf %314, %313 : vector<1x256xf32>
    %c73 = arith.constant 73 : index
    %316 = memref.load %arg8[%c73] : memref<98xf32, #tpu.memory_space<smem>>
    %317 = vector.extract_strided_slice %56 {offsets = [0, 128], sizes = [1, 256], strides = [1, 1]} : vector<1x512xf32> to vector<1x256xf32>
    %318 = vector.broadcast %316 : f32 to vector<1x256xf32>
    %319 = arith.mulf %318, %317 : vector<1x256xf32>
    %320 = arith.addf %315, %319 : vector<1x256xf32>
    %321 = arith.addf %311, %320 : vector<1x256xf32>
    %c31 = arith.constant 31 : index
    %322 = memref.load %arg8[%c31] : memref<98xf32, #tpu.memory_space<smem>>
    %323 = vector.extract_strided_slice %55 {offsets = [0, 144], sizes = [1, 256], strides = [1, 1]} : vector<1x512xf32> to vector<1x256xf32>
    %324 = vector.broadcast %322 : f32 to vector<1x256xf32>
    %325 = arith.mulf %324, %323 : vector<1x256xf32>
    %c80 = arith.constant 80 : index
    %326 = memref.load %arg8[%c80] : memref<98xf32, #tpu.memory_space<smem>>
    %327 = vector.extract_strided_slice %56 {offsets = [0, 144], sizes = [1, 256], strides = [1, 1]} : vector<1x512xf32> to vector<1x256xf32>
    %328 = vector.broadcast %326 : f32 to vector<1x256xf32>
    %329 = arith.mulf %328, %327 : vector<1x256xf32>
    %330 = arith.addf %325, %329 : vector<1x256xf32>
    %331 = arith.addf %321, %330 : vector<1x256xf32>
    %c38 = arith.constant 38 : index
    %332 = memref.load %arg8[%c38] : memref<98xf32, #tpu.memory_space<smem>>
    %333 = vector.extract_strided_slice %55 {offsets = [0, 160], sizes = [1, 256], strides = [1, 1]} : vector<1x512xf32> to vector<1x256xf32>
    %334 = vector.broadcast %332 : f32 to vector<1x256xf32>
    %335 = arith.mulf %334, %333 : vector<1x256xf32>
    %c87 = arith.constant 87 : index
    %336 = memref.load %arg8[%c87] : memref<98xf32, #tpu.memory_space<smem>>
    %337 = vector.extract_strided_slice %56 {offsets = [0, 160], sizes = [1, 256], strides = [1, 1]} : vector<1x512xf32> to vector<1x256xf32>
    %338 = vector.broadcast %336 : f32 to vector<1x256xf32>
    %339 = arith.mulf %338, %337 : vector<1x256xf32>
    %340 = arith.addf %335, %339 : vector<1x256xf32>
    %341 = arith.addf %331, %340 : vector<1x256xf32>
    %c45 = arith.constant 45 : index
    %342 = memref.load %arg8[%c45] : memref<98xf32, #tpu.memory_space<smem>>
    %343 = vector.extract_strided_slice %55 {offsets = [0, 176], sizes = [1, 256], strides = [1, 1]} : vector<1x512xf32> to vector<1x256xf32>
    %344 = vector.broadcast %342 : f32 to vector<1x256xf32>
    %345 = arith.mulf %344, %343 : vector<1x256xf32>
    %c94 = arith.constant 94 : index
    %346 = memref.load %arg8[%c94] : memref<98xf32, #tpu.memory_space<smem>>
    %347 = vector.extract_strided_slice %56 {offsets = [0, 176], sizes = [1, 256], strides = [1, 1]} : vector<1x512xf32> to vector<1x256xf32>
    %348 = vector.broadcast %346 : f32 to vector<1x256xf32>
    %349 = arith.mulf %348, %347 : vector<1x256xf32>
    %350 = arith.addf %345, %349 : vector<1x256xf32>
    %351 = arith.addf %341, %350 : vector<1x256xf32>
    %352 = arith.addf %280, %351 : vector<1x256xf32>
    %cst_38 = arith.constant 0.000000e+00 : f32
    %353 = vector.broadcast %cst_38 : f32 to vector<1x256xf32>
    %c4 = arith.constant 4 : index
    %354 = memref.load %arg8[%c4] : memref<98xf32, #tpu.memory_space<smem>>
    %355 = vector.extract_strided_slice %55 {offsets = [0, 81], sizes = [1, 256], strides = [1, 1]} : vector<1x512xf32> to vector<1x256xf32>
    %356 = vector.broadcast %354 : f32 to vector<1x256xf32>
    %357 = arith.mulf %356, %355 : vector<1x256xf32>
    %c53 = arith.constant 53 : index
    %358 = memref.load %arg8[%c53] : memref<98xf32, #tpu.memory_space<smem>>
    %359 = vector.extract_strided_slice %56 {offsets = [0, 81], sizes = [1, 256], strides = [1, 1]} : vector<1x512xf32> to vector<1x256xf32>
    %360 = vector.broadcast %358 : f32 to vector<1x256xf32>
    %361 = arith.mulf %360, %359 : vector<1x256xf32>
    %362 = arith.addf %357, %361 : vector<1x256xf32>
    %363 = arith.addf %353, %362 : vector<1x256xf32>
    %c11 = arith.constant 11 : index
    %364 = memref.load %arg8[%c11] : memref<98xf32, #tpu.memory_space<smem>>
    %365 = vector.extract_strided_slice %55 {offsets = [0, 97], sizes = [1, 256], strides = [1, 1]} : vector<1x512xf32> to vector<1x256xf32>
    %366 = vector.broadcast %364 : f32 to vector<1x256xf32>
    %367 = arith.mulf %366, %365 : vector<1x256xf32>
    %c60 = arith.constant 60 : index
    %368 = memref.load %arg8[%c60] : memref<98xf32, #tpu.memory_space<smem>>
    %369 = vector.extract_strided_slice %56 {offsets = [0, 97], sizes = [1, 256], strides = [1, 1]} : vector<1x512xf32> to vector<1x256xf32>
    %370 = vector.broadcast %368 : f32 to vector<1x256xf32>
    %371 = arith.mulf %370, %369 : vector<1x256xf32>
    %372 = arith.addf %367, %371 : vector<1x256xf32>
    %373 = arith.addf %363, %372 : vector<1x256xf32>
    %c18 = arith.constant 18 : index
    %374 = memref.load %arg8[%c18] : memref<98xf32, #tpu.memory_space<smem>>
    %375 = vector.extract_strided_slice %55 {offsets = [0, 113], sizes = [1, 256], strides = [1, 1]} : vector<1x512xf32> to vector<1x256xf32>
    %376 = vector.broadcast %374 : f32 to vector<1x256xf32>
    %377 = arith.mulf %376, %375 : vector<1x256xf32>
    %c67 = arith.constant 67 : index
    %378 = memref.load %arg8[%c67] : memref<98xf32, #tpu.memory_space<smem>>
    %379 = vector.extract_strided_slice %56 {offsets = [0, 113], sizes = [1, 256], strides = [1, 1]} : vector<1x512xf32> to vector<1x256xf32>
    %380 = vector.broadcast %378 : f32 to vector<1x256xf32>
    %381 = arith.mulf %380, %379 : vector<1x256xf32>
    %382 = arith.addf %377, %381 : vector<1x256xf32>
    %383 = arith.addf %373, %382 : vector<1x256xf32>
    %c25 = arith.constant 25 : index
    %384 = memref.load %arg8[%c25] : memref<98xf32, #tpu.memory_space<smem>>
    %385 = vector.extract_strided_slice %55 {offsets = [0, 129], sizes = [1, 256], strides = [1, 1]} : vector<1x512xf32> to vector<1x256xf32>
    %386 = vector.broadcast %384 : f32 to vector<1x256xf32>
    %387 = arith.mulf %386, %385 : vector<1x256xf32>
    %c74 = arith.constant 74 : index
    %388 = memref.load %arg8[%c74] : memref<98xf32, #tpu.memory_space<smem>>
    %389 = vector.extract_strided_slice %56 {offsets = [0, 129], sizes = [1, 256], strides = [1, 1]} : vector<1x512xf32> to vector<1x256xf32>
    %390 = vector.broadcast %388 : f32 to vector<1x256xf32>
    %391 = arith.mulf %390, %389 : vector<1x256xf32>
    %392 = arith.addf %387, %391 : vector<1x256xf32>
    %393 = arith.addf %383, %392 : vector<1x256xf32>
    %c32 = arith.constant 32 : index
    %394 = memref.load %arg8[%c32] : memref<98xf32, #tpu.memory_space<smem>>
    %395 = vector.extract_strided_slice %55 {offsets = [0, 145], sizes = [1, 256], strides = [1, 1]} : vector<1x512xf32> to vector<1x256xf32>
    %396 = vector.broadcast %394 : f32 to vector<1x256xf32>
    %397 = arith.mulf %396, %395 : vector<1x256xf32>
    %c81 = arith.constant 81 : index
    %398 = memref.load %arg8[%c81] : memref<98xf32, #tpu.memory_space<smem>>
    %399 = vector.extract_strided_slice %56 {offsets = [0, 145], sizes = [1, 256], strides = [1, 1]} : vector<1x512xf32> to vector<1x256xf32>
    %400 = vector.broadcast %398 : f32 to vector<1x256xf32>
    %401 = arith.mulf %400, %399 : vector<1x256xf32>
    %402 = arith.addf %397, %401 : vector<1x256xf32>
    %403 = arith.addf %393, %402 : vector<1x256xf32>
    %c39 = arith.constant 39 : index
    %404 = memref.load %arg8[%c39] : memref<98xf32, #tpu.memory_space<smem>>
    %405 = vector.extract_strided_slice %55 {offsets = [0, 161], sizes = [1, 256], strides = [1, 1]} : vector<1x512xf32> to vector<1x256xf32>
    %406 = vector.broadcast %404 : f32 to vector<1x256xf32>
    %407 = arith.mulf %406, %405 : vector<1x256xf32>
    %c88 = arith.constant 88 : index
    %408 = memref.load %arg8[%c88] : memref<98xf32, #tpu.memory_space<smem>>
    %409 = vector.extract_strided_slice %56 {offsets = [0, 161], sizes = [1, 256], strides = [1, 1]} : vector<1x512xf32> to vector<1x256xf32>
    %410 = vector.broadcast %408 : f32 to vector<1x256xf32>
    %411 = arith.mulf %410, %409 : vector<1x256xf32>
    %412 = arith.addf %407, %411 : vector<1x256xf32>
    %413 = arith.addf %403, %412 : vector<1x256xf32>
    %c46 = arith.constant 46 : index
    %414 = memref.load %arg8[%c46] : memref<98xf32, #tpu.memory_space<smem>>
    %415 = vector.extract_strided_slice %55 {offsets = [0, 177], sizes = [1, 256], strides = [1, 1]} : vector<1x512xf32> to vector<1x256xf32>
    %416 = vector.broadcast %414 : f32 to vector<1x256xf32>
    %417 = arith.mulf %416, %415 : vector<1x256xf32>
    %c95 = arith.constant 95 : index
    %418 = memref.load %arg8[%c95] : memref<98xf32, #tpu.memory_space<smem>>
    %419 = vector.extract_strided_slice %56 {offsets = [0, 177], sizes = [1, 256], strides = [1, 1]} : vector<1x512xf32> to vector<1x256xf32>
    %420 = vector.broadcast %418 : f32 to vector<1x256xf32>
    %421 = arith.mulf %420, %419 : vector<1x256xf32>
    %422 = arith.addf %417, %421 : vector<1x256xf32>
    %423 = arith.addf %413, %422 : vector<1x256xf32>
    %c4_39 = arith.constant 4 : index
    %c0_40 = arith.constant 0 : index
    %424 = vector.load %arg7[%c4_39, %c0_40] : memref<8x256xf32, #tpu.memory_space<vmem>>, vector<1x256xf32>
    %425 = arith.mulf %423, %424 : vector<1x256xf32>
    %426 = arith.addf %352, %425 : vector<1x256xf32>
    %cst_41 = arith.constant 0.000000e+00 : f32
    %427 = vector.broadcast %cst_41 : f32 to vector<1x256xf32>
    %c5 = arith.constant 5 : index
    %428 = memref.load %arg8[%c5] : memref<98xf32, #tpu.memory_space<smem>>
    %429 = vector.extract_strided_slice %55 {offsets = [0, 82], sizes = [1, 256], strides = [1, 1]} : vector<1x512xf32> to vector<1x256xf32>
    %430 = vector.broadcast %428 : f32 to vector<1x256xf32>
    %431 = arith.mulf %430, %429 : vector<1x256xf32>
    %c54 = arith.constant 54 : index
    %432 = memref.load %arg8[%c54] : memref<98xf32, #tpu.memory_space<smem>>
    %433 = vector.extract_strided_slice %56 {offsets = [0, 82], sizes = [1, 256], strides = [1, 1]} : vector<1x512xf32> to vector<1x256xf32>
    %434 = vector.broadcast %432 : f32 to vector<1x256xf32>
    %435 = arith.mulf %434, %433 : vector<1x256xf32>
    %436 = arith.addf %431, %435 : vector<1x256xf32>
    %437 = arith.addf %427, %436 : vector<1x256xf32>
    %c12 = arith.constant 12 : index
    %438 = memref.load %arg8[%c12] : memref<98xf32, #tpu.memory_space<smem>>
    %439 = vector.extract_strided_slice %55 {offsets = [0, 98], sizes = [1, 256], strides = [1, 1]} : vector<1x512xf32> to vector<1x256xf32>
    %440 = vector.broadcast %438 : f32 to vector<1x256xf32>
    %441 = arith.mulf %440, %439 : vector<1x256xf32>
    %c61 = arith.constant 61 : index
    %442 = memref.load %arg8[%c61] : memref<98xf32, #tpu.memory_space<smem>>
    %443 = vector.extract_strided_slice %56 {offsets = [0, 98], sizes = [1, 256], strides = [1, 1]} : vector<1x512xf32> to vector<1x256xf32>
    %444 = vector.broadcast %442 : f32 to vector<1x256xf32>
    %445 = arith.mulf %444, %443 : vector<1x256xf32>
    %446 = arith.addf %441, %445 : vector<1x256xf32>
    %447 = arith.addf %437, %446 : vector<1x256xf32>
    %c19 = arith.constant 19 : index
    %448 = memref.load %arg8[%c19] : memref<98xf32, #tpu.memory_space<smem>>
    %449 = vector.extract_strided_slice %55 {offsets = [0, 114], sizes = [1, 256], strides = [1, 1]} : vector<1x512xf32> to vector<1x256xf32>
    %450 = vector.broadcast %448 : f32 to vector<1x256xf32>
    %451 = arith.mulf %450, %449 : vector<1x256xf32>
    %c68 = arith.constant 68 : index
    %452 = memref.load %arg8[%c68] : memref<98xf32, #tpu.memory_space<smem>>
    %453 = vector.extract_strided_slice %56 {offsets = [0, 114], sizes = [1, 256], strides = [1, 1]} : vector<1x512xf32> to vector<1x256xf32>
    %454 = vector.broadcast %452 : f32 to vector<1x256xf32>
    %455 = arith.mulf %454, %453 : vector<1x256xf32>
    %456 = arith.addf %451, %455 : vector<1x256xf32>
    %457 = arith.addf %447, %456 : vector<1x256xf32>
    %c26 = arith.constant 26 : index
    %458 = memref.load %arg8[%c26] : memref<98xf32, #tpu.memory_space<smem>>
    %459 = vector.extract_strided_slice %55 {offsets = [0, 130], sizes = [1, 256], strides = [1, 1]} : vector<1x512xf32> to vector<1x256xf32>
    %460 = vector.broadcast %458 : f32 to vector<1x256xf32>
    %461 = arith.mulf %460, %459 : vector<1x256xf32>
    %c75 = arith.constant 75 : index
    %462 = memref.load %arg8[%c75] : memref<98xf32, #tpu.memory_space<smem>>
    %463 = vector.extract_strided_slice %56 {offsets = [0, 130], sizes = [1, 256], strides = [1, 1]} : vector<1x512xf32> to vector<1x256xf32>
    %464 = vector.broadcast %462 : f32 to vector<1x256xf32>
    %465 = arith.mulf %464, %463 : vector<1x256xf32>
    %466 = arith.addf %461, %465 : vector<1x256xf32>
    %467 = arith.addf %457, %466 : vector<1x256xf32>
    %c33 = arith.constant 33 : index
    %468 = memref.load %arg8[%c33] : memref<98xf32, #tpu.memory_space<smem>>
    %469 = vector.extract_strided_slice %55 {offsets = [0, 146], sizes = [1, 256], strides = [1, 1]} : vector<1x512xf32> to vector<1x256xf32>
    %470 = vector.broadcast %468 : f32 to vector<1x256xf32>
    %471 = arith.mulf %470, %469 : vector<1x256xf32>
    %c82 = arith.constant 82 : index
    %472 = memref.load %arg8[%c82] : memref<98xf32, #tpu.memory_space<smem>>
    %473 = vector.extract_strided_slice %56 {offsets = [0, 146], sizes = [1, 256], strides = [1, 1]} : vector<1x512xf32> to vector<1x256xf32>
    %474 = vector.broadcast %472 : f32 to vector<1x256xf32>
    %475 = arith.mulf %474, %473 : vector<1x256xf32>
    %476 = arith.addf %471, %475 : vector<1x256xf32>
    %477 = arith.addf %467, %476 : vector<1x256xf32>
    %c40 = arith.constant 40 : index
    %478 = memref.load %arg8[%c40] : memref<98xf32, #tpu.memory_space<smem>>
    %479 = vector.extract_strided_slice %55 {offsets = [0, 162], sizes = [1, 256], strides = [1, 1]} : vector<1x512xf32> to vector<1x256xf32>
    %480 = vector.broadcast %478 : f32 to vector<1x256xf32>
    %481 = arith.mulf %480, %479 : vector<1x256xf32>
    %c89 = arith.constant 89 : index
    %482 = memref.load %arg8[%c89] : memref<98xf32, #tpu.memory_space<smem>>
    %483 = vector.extract_strided_slice %56 {offsets = [0, 162], sizes = [1, 256], strides = [1, 1]} : vector<1x512xf32> to vector<1x256xf32>
    %484 = vector.broadcast %482 : f32 to vector<1x256xf32>
    %485 = arith.mulf %484, %483 : vector<1x256xf32>
    %486 = arith.addf %481, %485 : vector<1x256xf32>
    %487 = arith.addf %477, %486 : vector<1x256xf32>
    %c47 = arith.constant 47 : index
    %488 = memref.load %arg8[%c47] : memref<98xf32, #tpu.memory_space<smem>>
    %489 = vector.extract_strided_slice %55 {offsets = [0, 178], sizes = [1, 256], strides = [1, 1]} : vector<1x512xf32> to vector<1x256xf32>
    %490 = vector.broadcast %488 : f32 to vector<1x256xf32>
    %491 = arith.mulf %490, %489 : vector<1x256xf32>
    %c96 = arith.constant 96 : index
    %492 = memref.load %arg8[%c96] : memref<98xf32, #tpu.memory_space<smem>>
    %493 = vector.extract_strided_slice %56 {offsets = [0, 178], sizes = [1, 256], strides = [1, 1]} : vector<1x512xf32> to vector<1x256xf32>
    %494 = vector.broadcast %492 : f32 to vector<1x256xf32>
    %495 = arith.mulf %494, %493 : vector<1x256xf32>
    %496 = arith.addf %491, %495 : vector<1x256xf32>
    %497 = arith.addf %487, %496 : vector<1x256xf32>
    %c5_42 = arith.constant 5 : index
    %c0_43 = arith.constant 0 : index
    %498 = vector.load %arg7[%c5_42, %c0_43] : memref<8x256xf32, #tpu.memory_space<vmem>>, vector<1x256xf32>
    %499 = arith.mulf %497, %498 : vector<1x256xf32>
    %500 = arith.addf %426, %499 : vector<1x256xf32>
    %cst_44 = arith.constant 0.000000e+00 : f32
    %501 = vector.broadcast %cst_44 : f32 to vector<1x256xf32>
    %c6 = arith.constant 6 : index
    %502 = memref.load %arg8[%c6] : memref<98xf32, #tpu.memory_space<smem>>
    %503 = vector.extract_strided_slice %55 {offsets = [0, 83], sizes = [1, 256], strides = [1, 1]} : vector<1x512xf32> to vector<1x256xf32>
    %504 = vector.broadcast %502 : f32 to vector<1x256xf32>
    %505 = arith.mulf %504, %503 : vector<1x256xf32>
    %c55 = arith.constant 55 : index
    %506 = memref.load %arg8[%c55] : memref<98xf32, #tpu.memory_space<smem>>
    %507 = vector.extract_strided_slice %56 {offsets = [0, 83], sizes = [1, 256], strides = [1, 1]} : vector<1x512xf32> to vector<1x256xf32>
    %508 = vector.broadcast %506 : f32 to vector<1x256xf32>
    %509 = arith.mulf %508, %507 : vector<1x256xf32>
    %510 = arith.addf %505, %509 : vector<1x256xf32>
    %511 = arith.addf %501, %510 : vector<1x256xf32>
    %c13 = arith.constant 13 : index
    %512 = memref.load %arg8[%c13] : memref<98xf32, #tpu.memory_space<smem>>
    %513 = vector.extract_strided_slice %55 {offsets = [0, 99], sizes = [1, 256], strides = [1, 1]} : vector<1x512xf32> to vector<1x256xf32>
    %514 = vector.broadcast %512 : f32 to vector<1x256xf32>
    %515 = arith.mulf %514, %513 : vector<1x256xf32>
    %c62 = arith.constant 62 : index
    %516 = memref.load %arg8[%c62] : memref<98xf32, #tpu.memory_space<smem>>
    %517 = vector.extract_strided_slice %56 {offsets = [0, 99], sizes = [1, 256], strides = [1, 1]} : vector<1x512xf32> to vector<1x256xf32>
    %518 = vector.broadcast %516 : f32 to vector<1x256xf32>
    %519 = arith.mulf %518, %517 : vector<1x256xf32>
    %520 = arith.addf %515, %519 : vector<1x256xf32>
    %521 = arith.addf %511, %520 : vector<1x256xf32>
    %c20 = arith.constant 20 : index
    %522 = memref.load %arg8[%c20] : memref<98xf32, #tpu.memory_space<smem>>
    %523 = vector.extract_strided_slice %55 {offsets = [0, 115], sizes = [1, 256], strides = [1, 1]} : vector<1x512xf32> to vector<1x256xf32>
    %524 = vector.broadcast %522 : f32 to vector<1x256xf32>
    %525 = arith.mulf %524, %523 : vector<1x256xf32>
    %c69 = arith.constant 69 : index
    %526 = memref.load %arg8[%c69] : memref<98xf32, #tpu.memory_space<smem>>
    %527 = vector.extract_strided_slice %56 {offsets = [0, 115], sizes = [1, 256], strides = [1, 1]} : vector<1x512xf32> to vector<1x256xf32>
    %528 = vector.broadcast %526 : f32 to vector<1x256xf32>
    %529 = arith.mulf %528, %527 : vector<1x256xf32>
    %530 = arith.addf %525, %529 : vector<1x256xf32>
    %531 = arith.addf %521, %530 : vector<1x256xf32>
    %c27 = arith.constant 27 : index
    %532 = memref.load %arg8[%c27] : memref<98xf32, #tpu.memory_space<smem>>
    %533 = vector.extract_strided_slice %55 {offsets = [0, 131], sizes = [1, 256], strides = [1, 1]} : vector<1x512xf32> to vector<1x256xf32>
    %534 = vector.broadcast %532 : f32 to vector<1x256xf32>
    %535 = arith.mulf %534, %533 : vector<1x256xf32>
    %c76 = arith.constant 76 : index
    %536 = memref.load %arg8[%c76] : memref<98xf32, #tpu.memory_space<smem>>
    %537 = vector.extract_strided_slice %56 {offsets = [0, 131], sizes = [1, 256], strides = [1, 1]} : vector<1x512xf32> to vector<1x256xf32>
    %538 = vector.broadcast %536 : f32 to vector<1x256xf32>
    %539 = arith.mulf %538, %537 : vector<1x256xf32>
    %540 = arith.addf %535, %539 : vector<1x256xf32>
    %541 = arith.addf %531, %540 : vector<1x256xf32>
    %c34 = arith.constant 34 : index
    %542 = memref.load %arg8[%c34] : memref<98xf32, #tpu.memory_space<smem>>
    %543 = vector.extract_strided_slice %55 {offsets = [0, 147], sizes = [1, 256], strides = [1, 1]} : vector<1x512xf32> to vector<1x256xf32>
    %544 = vector.broadcast %542 : f32 to vector<1x256xf32>
    %545 = arith.mulf %544, %543 : vector<1x256xf32>
    %c83 = arith.constant 83 : index
    %546 = memref.load %arg8[%c83] : memref<98xf32, #tpu.memory_space<smem>>
    %547 = vector.extract_strided_slice %56 {offsets = [0, 147], sizes = [1, 256], strides = [1, 1]} : vector<1x512xf32> to vector<1x256xf32>
    %548 = vector.broadcast %546 : f32 to vector<1x256xf32>
    %549 = arith.mulf %548, %547 : vector<1x256xf32>
    %550 = arith.addf %545, %549 : vector<1x256xf32>
    %551 = arith.addf %541, %550 : vector<1x256xf32>
    %c41 = arith.constant 41 : index
    %552 = memref.load %arg8[%c41] : memref<98xf32, #tpu.memory_space<smem>>
    %553 = vector.extract_strided_slice %55 {offsets = [0, 163], sizes = [1, 256], strides = [1, 1]} : vector<1x512xf32> to vector<1x256xf32>
    %554 = vector.broadcast %552 : f32 to vector<1x256xf32>
    %555 = arith.mulf %554, %553 : vector<1x256xf32>
    %c90 = arith.constant 90 : index
    %556 = memref.load %arg8[%c90] : memref<98xf32, #tpu.memory_space<smem>>
    %557 = vector.extract_strided_slice %56 {offsets = [0, 163], sizes = [1, 256], strides = [1, 1]} : vector<1x512xf32> to vector<1x256xf32>
    %558 = vector.broadcast %556 : f32 to vector<1x256xf32>
    %559 = arith.mulf %558, %557 : vector<1x256xf32>
    %560 = arith.addf %555, %559 : vector<1x256xf32>
    %561 = arith.addf %551, %560 : vector<1x256xf32>
    %c48 = arith.constant 48 : index
    %562 = memref.load %arg8[%c48] : memref<98xf32, #tpu.memory_space<smem>>
    %563 = vector.extract_strided_slice %55 {offsets = [0, 179], sizes = [1, 256], strides = [1, 1]} : vector<1x512xf32> to vector<1x256xf32>
    %564 = vector.broadcast %562 : f32 to vector<1x256xf32>
    %565 = arith.mulf %564, %563 : vector<1x256xf32>
    %c97 = arith.constant 97 : index
    %566 = memref.load %arg8[%c97] : memref<98xf32, #tpu.memory_space<smem>>
    %567 = vector.extract_strided_slice %56 {offsets = [0, 179], sizes = [1, 256], strides = [1, 1]} : vector<1x512xf32> to vector<1x256xf32>
    %568 = vector.broadcast %566 : f32 to vector<1x256xf32>
    %569 = arith.mulf %568, %567 : vector<1x256xf32>
    %570 = arith.addf %565, %569 : vector<1x256xf32>
    %571 = arith.addf %561, %570 : vector<1x256xf32>
    %c6_45 = arith.constant 6 : index
    %c0_46 = arith.constant 0 : index
    %572 = vector.load %arg7[%c6_45, %c0_46] : memref<8x256xf32, #tpu.memory_space<vmem>>, vector<1x256xf32>
    %573 = arith.mulf %571, %572 : vector<1x256xf32>
    %574 = arith.addf %500, %573 : vector<1x256xf32>
    %575 = arith.negf %574 : vector<1x256xf32>
    %576 = math.exp %575 : vector<1x256xf32>
    %cst_47 = arith.constant 1.000000e+00 : f32
    %577 = vector.broadcast %cst_47 : f32 to vector<1x256xf32>
    %578 = arith.addf %577, %576 : vector<1x256xf32>
    %579 = arith.divf %577, %578 : vector<1x256xf32>
    %580 = arith.mulf %22, %579 : vector<1x256xf32>
    %581 = vector.broadcast %580 : vector<1x256xf32> to vector<4x256xf32>
    %582 = arith.mulf %1, %581 : vector<4x256xf32>
    %583 = vector.broadcast %47 : vector<4x1xf32> to vector<4x256xf32>
    %584 = arith.mulf %582, %583 : vector<4x256xf32>
    %c0_48 = arith.constant 0 : index
    %c0_49 = arith.constant 0 : index
    %c0_50 = arith.constant 0 : index
    %585 = vector.load %arg10[%c0_48, %c0_49, %c0_50] : memref<1x4x256xf32, #tpu.memory_space<vmem>>, vector<1x4x256xf32>
    %586 = vector.shape_cast %585 : vector<1x4x256xf32> to vector<4x256xf32>
    %587 = vector.shape_cast %584 : vector<4x256xf32> to vector<1x4x256xf32>
    tpu.vector_store %arg10[%c0_48, %c0_49, %c0_50], %587 {strides = array<i32>} : memref<1x4x256xf32, #tpu.memory_space<vmem>>, vector<1x4x256xf32>,
    return
  }
  func.func @transform_0(%arg0: i32) -> (i32, i32, i32) {
    %c0_i32 = arith.constant 0 : i32
    %c0_i32_0 = arith.constant 0 : i32
    %c0_i32_1 = arith.constant 0 : i32
    return %arg0, %c0_i32, %c0_i32_0 : i32, i32, i32
  }
  func.func @transform_1(%arg0: i32) -> (i32, i32) {
    %c0_i32 = arith.constant 0 : i32
    %c0_i32_0 = arith.constant 0 : i32
    %c0_i32_1 = arith.constant 0 : i32
    return %c0_i32, %c0_i32_0 : i32, i32
  }
  func.func @transform_2(%arg0: i32) -> (i32, i32) {
    %c0_i32 = arith.constant 0 : i32
    %c0_i32_0 = arith.constant 0 : i32
    %c0_i32_1 = arith.constant 0 : i32
    return %c0_i32, %c0_i32_0 : i32, i32
  }
  func.func @transform_3(%arg0: i32) -> (i32, i32) {
    %c0_i32 = arith.constant 0 : i32
    %c0_i32_0 = arith.constant 0 : i32
    %c0_i32_1 = arith.constant 0 : i32
    return %c0_i32, %c0_i32_0 : i32, i32
  }
  func.func @transform_4(%arg0: i32) -> (i32, i32) {
    %c0_i32 = arith.constant 0 : i32
    %c0_i32_0 = arith.constant 0 : i32
    %c0_i32_1 = arith.constant 0 : i32
    return %c0_i32, %c0_i32_0 : i32, i32
  }
  func.func @transform_5(%arg0: i32) -> (i32, i32) {
    %c0_i32 = arith.constant 0 : i32
    %c0_i32_0 = arith.constant 0 : i32
    %c0_i32_1 = arith.constant 0 : i32
    return %c0_i32, %c0_i32_0 : i32, i32
  }
  func.func @transform_6(%arg0: i32) -> (i32, i32) {
    %c0_i32 = arith.constant 0 : i32
    %c0_i32_0 = arith.constant 0 : i32
    %c0_i32_1 = arith.constant 0 : i32
    return %c0_i32, %c0_i32_0 : i32, i32
  }
  func.func @transform_7(%arg0: i32) -> i32 {
    %c0_i32 = arith.constant 0 : i32
    %c0_i32_0 = arith.constant 0 : i32
    return %c0_i32 : i32
  }
  func.func @transform_8(%arg0: i32) -> i32 {
    %c0_i32 = arith.constant 0 : i32
    %c0_i32_0 = arith.constant 0 : i32
    return %c0_i32 : i32
  }
  func.func @transform_9(%arg0: i32) -> (i32, i32, i32) {
    %c0_i32 = arith.constant 0 : i32
    %c0_i32_0 = arith.constant 0 : i32
    %c0_i32_1 = arith.constant 0 : i32
    return %arg0, %c0_i32, %c0_i32_0 : i32, i32, i32
  }
}

</mosaic_0001>

<bundles_post_ra>
// kernel: tpu_custom_call.1
= control target key start
LH: loop header
LB: loop body
LE: loop exit
PB: predicated region body
PF: predicated region fallthrough
CT: control target
= control target key end

     0   :  { %s4149_s0 = inlined_call_operand.vmem [shape: f32[2,4,256], index: 0, kind: input, shape index: {}]   ;;  %s4150_s1 = inlined_call_operand.vmem [shape: f32[8,4], index: 1, kind: input, shape index: {}]   ;;  %s4151_s2 = inlined_call_operand.vmem [shape: f32[4,2], index: 2, kind: input, shape index: {}]   ;;  %s4152_s3 = inlined_call_operand.hbm [shape: f32[1,2], index: 3, kind: input, shape index: {}]   ;;  %s4153_s4 = inlined_call_operand.vmem [shape: f32[4,2], index: 4, kind: input, shape index: {}]   ;;  %s4154_s5 = inlined_call_operand.vmem [shape: f32[4,1], index: 5, kind: input, shape index: {}]   ;;  %s4155_s6 = inlined_call_operand.vmem [shape: f32[8,256], index: 6, kind: input, shape index: {}]   ;;  %s4156_s7 = inlined_call_operand.vmem [shape: f32[98], index: 7, kind: input, shape index: {}]   ;;  %s4157_s8 = inlined_call_operand.vmem [shape: f32[3], index: 8, kind: input, shape index: {}]   ;;  %s4158_s9 = inlined_call_operand.hbm [shape: f32[2,4,256], index: 9, kind: output, shape index: {}]  }
   0x1   :  { %4215 = sst [smem:[#allocation77_spill]] %s4149_s0 }
   0x2   :  { %4216 = sst [smem:[#allocation78_spill]] %s4151_s2 }
   0x3   :  { %14 = vsyncpa [#allocation3], 0 }
   0x4   :  { %15 = vsyncpa [#allocation5], 0 }
   0x5   :  { %16 = vsyncpa [#allocation8], 0 }
   0x6   :  { %17 = vsyncpa [#allocation4], 0 }
   0x7   :  { %19 = vsyncpa [#allocation4 + $0x1], 0  ;;  %s2821_s30 = smov 0   ;;  %s2823_s10 = smov 0  }
   0x8   :  { %s2825_s11 = smov 0   ;;  %s2827_s12 = smov 0  }
   0x9 LB: > { %s2842_s13 = sadd.s32 4294967295, %s2743_s12   ;;  %s2352_s14 = sadd.s32 4294967294, %s2743_s12   ;;  %s2743_s12 = sphi %s2827_s12, %s4370_s12   ;;  %s2739_s11 = sphi %s2825_s11, %s4369_s11   ;;  %s2735_s10 = sphi %s2823_s10, %s4368_s10   ;;  %s2731_s30 = sphi %s2821_s30, %s4367_s30  }
   0xa   : > { %s2846_s15 = sadd.s32 1, %s2743_s12   ;;  %s226_s16 = sadd.s32 1, %s2739_s11 }
   0xb   : > { %s223_s17 = ssub.s32 %s2743_s12, %s2846_s15  ;;  %p236_p0 = scmp.ne.s32.totalorder %s2739_s11, %s2735_s10 }
   0xc   : > { %p224_p1 = scmp.eq.s32.totalorder %s223_s17, 0  ;;  %p237_p2 = scmp.eq.s32.totalorder %s2842_s13, 1 }
   0xd   : > { %p242_p3 = scmp.ne.s32.totalorder %s2735_s10, %s2731_s30  ;;  %p243_p4 = scmp.eq.s32.totalorder %s2352_s14, 1 }
   0xe   : > { %s2857_s18 = scalar_select %p224_p1, %s2739_s11, %s226_s16  }
   0xf   : > { %p2859_p5 = por %p237_p2, %p236_p0  ;;  %p2863_p6 = por %p243_p4, %p242_p3 }
  0x10   : > { %p2353_p7 = scmp.ge.s32.totalorder %s2743_s12, 1  ;;  %p250_p8 = scmp.lt.s32.totalorder %s2743_s12, 3 }
  0x11   : > { %s4217_s19 = scalar_select %p2859_p5, 1, 0 }
  0x12   : > { %s4218_s20 = scalar_select %p2863_p6, 1, 0 }
  0x13   : > { %p4159_p9 = scmp.eq.s32.totalorder %s2842_s13, 0  ;;  %p2870_p10 = pnand %p2353_p7, %p250_p8 }
  0x14   : > { %s2745_s22 = smov [#allocation2]   ;;  %s289_s26 = sshll.u32 %s4156_s7, 4  ;;  %s290_s26 = int_to_ptr.vmem [resolvable:$true] %s289_s26 }
  0x15   : > { %s4219_s21 = scalar_select %p2870_p10, 1, 0 }
  0x16   : > { %s269_s23 = sshll.u32 %s2745_s22, 4  ;;  %p2501_p11 = pneg %p2870_p10  ;;  %s270_s23 = int_to_ptr.vmem [resolvable:$true] %s269_s23 }
  0x17   : > { %s300_s14 = sshll.u32 %s4157_s8, 4  ;;  %s2626_s16 = scalar_lea.vmem %s270_s23, 16  ;;  %s2888_s14 = int_to_ptr.vmem [resolvable:$true] %s300_s14 }
  0x18   : > { %p2881_p12 = pnand %p4159_p9, %p2501_p11  ;;  %p2627_p0 = scmp.ne.s32.totalorder %s270_s23, %s2626_s16 }
  0x19   : > { %s2633_s17 = scalar_lea.vmem %s270_s23, 32  ;;  %p2634_p3 = scmp.lt.s32.totalorder %s270_s23, %s270_s23 }
  0x1a   : > { %p2617_p13 = pneg %p2881_p12  ;;  %p2635_p4 = scmp.lt.s32.totalorder %s2633_s17, %s2626_s16 }
  0x1c   : > { %p2629_p1 = pnand %p2627_p0, %p2617_p13  ;;  %p2636_p7 = por %p2635_p4, %p2634_p3 }
  0x1e   : > { %p2630_p2 = pneg %p2629_p1 }
  0x20   : > { %p2637_p8 = pnand %p2636_p7, %p2630_p2 }
  0x22   : > { %2640 = shalt.err (!%p2637_p8)
}
  0x23   : > { %2504 = dma.hbm_to_vmem [thread:$0]  (!%p2881_p12), %s4152_s3, 16, %s270_s23, [#allocation3]  }
  0x24   : > { %s2641_s25 = scalar_lea.vmem %s290_s26, 16  ;;  %p2649_p1 = scmp.lt.s32.totalorder %s290_s26, %s290_s26 }
  0x25   : > { %p2642_p11 = scmp.ne.s32.totalorder %s290_s26, %s2641_s25  ;;  %p2650_p6 = scmp.lt.s32.totalorder %s2641_s25, %s2641_s25 }
  0x27   : > { %p2644_p9 = pnand %p2642_p11, %p2617_p13  ;;  %p2651_p5 = por %p2650_p6, %p2649_p1 }
  0x29   : > { %p2645_p0 = pneg %p2644_p9 }
  0x2b   : > { %p2652_p10 = pnand %p2651_p5, %p2645_p0 }
  0x2d   : > { %2655 = shalt.err (!%p2652_p10)
}
  0x2e   : > { %s2746_s28 = smov [#allocation6]   ;;  %s2656_s23 = scalar_lea.vmem %s2888_s14, 16 }
  0x2f   : > { %2507 = dma.vmem_to_smem (!%p2881_p12), %s290_s26, 16, %s2746_s28, [#allocation5]  }
  0x30   : > { %p2657_p2 = scmp.ne.s32.totalorder %s2888_s14, %s2656_s23  ;;  %p2664_p9 = scmp.lt.s32.totalorder %s2888_s14, %s2888_s14 }
  0x31   : > { %p2665_p7 = scmp.lt.s32.totalorder %s2656_s23, %s2656_s23 }
  0x32   : > { %p2659_p3 = pnand %p2657_p2, %p2617_p13 }
  0x33   : > { %p2666_p6 = por %p2665_p7, %p2664_p9 }
  0x34   : > { %p2660_p4 = pneg %p2659_p3 }
  0x36   : > { %p2667_p5 = pnand %p2666_p6, %p2660_p4 }
  0x38   : > { %2670 = shalt.err (!%p2667_p5)
}
  0x39   : > { %s2747_s29 = smov [#allocation7]   ;;  %p4221_p10 = scmp.ne.s32.totalorder %s4219_s21, 0 }
  0x3a   : > { %2510 = dma.vmem_to_smem (!%p2881_p12), %s2888_s14, 16, %s2747_s29, [#allocation8]  }
  0x3b   : > { %321 = sbr.rel (%p4221_p10) target bundleno = 842 (0x34a), region = 56 }
  0x40   : > { %p4222_p8 = scmp.eq.s32.totalorder %s2842_s13, 0 }
  0x42   : > { %2714 = dma.done.wait (%p4222_p8), [#allocation3], 16   ;;  %p4223_p13 = pmov %p4222_p8 }
  0x43   : > { %p4224_p11 = pmov %p4222_p8 }
  0x44   : > { %2716 = vsyncadd (%p4223_p13), [#allocation3], 4294967280 }
  0x45   : > { %2718 = dma.done.wait (%p4224_p11), [#allocation5], 16   ;;  %p4225_p0 = pmov %p4222_p8 }
  0x47   : > { %2720 = vsyncadd (%p4225_p0), [#allocation5], 4294967280  ;;  %p4226_p1 = pmov %p4225_p0 }
  0x48   : > { %p4227_p12 = pmov %p4225_p0 }
  0x49   : > { %2722 = dma.done.wait (%p4226_p1), [#allocation8], 16  }
  0x4a   : > { %2724 = vsyncadd (%p4227_p12), [#allocation8], 4294967280 }
  0x4b   : > { %335 = sfence }
  0x4c   : > { %p366_p2 = scmp.lt.s32.totalorder %s2842_s13, 1  ;;  %s2376_s21 = sld [smem:[#allocation6 + $0x7]]  ;;  %vm379_vm0 = vcmask 1043456   ;;  %vm505_vm1 = vcmask 11264   ;;  %vm602_vm2 = vcmask 916480   ;;  %vm726_vm3 = vcmask 392192  }
  0x4d   : > { %s2377_s26 = sld [smem:[#allocation6 + $0x38]]  ;;  %s2748_s29 = smov 112   ;;  %vm664_vm4 = vcmask 654336   ;;  %vm633_vm5 = vcmask 785408   ;;  %vm695_vm6 = vcmask 523264   ;;  %vm757_vm7 = vcmask 261120  }
  0x4e   : > { %s367_s27 = scalar_select %p366_p2, %s2842_s13, 1  ;;  %vm1002_vm8 = vcmask 637952   ;;  %vm375_vm9 = vcmask 31744   ;;  %vm1239_vm10 = vcmask 646144   ;;  %vm1683_vm11 = vcmask 662528  }
  0x4f   : > { %s2378_s14 = sld [smem:[#allocation6 + $0xe]]  ;;  %vm1920_vm12 = vcmask 670720   ;;  %vm2157_vm13 = vcmask 678912   ;;  %vm780_vm14 = vcmask 629760   ;;  %vm1019_vm15 = vcmask 1039360   ;;  %p4365_p4 = scmp.ne.s32.totalorder %s4217_s19, 0 }
  0x50   : > { %s2485_s16 = sshll.u32 %s367_s27, 3  ;;  %s2379_s17 = sld [smem:[#allocation6 + $0x3f]] }
  0x51   : > { %s4228_s0 = sld [smem:[#allocation77_spill]]  ;;  %s4166_s27 = smov 96  }
  0x52   : > { %s2936_s28 = sld [smem:[#allocation6 + $0x15]]  ;;  %v2939_v1 = vstv %s2376_s21 }
  0x53   : > { %s2941_s23 = sld [smem:[#allocation6 + $0x46]]  ;;  %v582_v5 = vmul.f32 0.0, %v2939_v1  ;;  %v2946_v8 = vstv %s2377_s26 }
  0x54   : > { %v587_v11 = vmul.f32 0.0, %v2946_v8  ;;  %s2383_s21 = sld [smem:[#allocation6 + $0x4d]] }
  0x55   : > { %v2951_v12 = vstv %s2378_s14  ;;  %s2382_s26 = sld [smem:[#allocation6 + $0x1c]]  ;;  %s4164_s14 = smov 80  }
  0x56   : > { %v590_v18 = vadd.f32 %v587_v11, %v582_v5  ;;  %v613_v19 = vmul.f32 0.0, %v2951_v12  ;;  %v617_v20 = vstv %s2379_s17  ;;  %s2385_s17 = sld [smem:[#allocation6 + $0x54]] }
  0x57   : > { %s2934_s25 = scalar_lea.vmem %s4228_s0, %s2485_s16  ;;  %v618_v24 = vmul.f32 0.0, %v617_v20  ;;  %s2384_s16 = sld [smem:[#allocation6 + $0x23]] }
  0x58   : > { %v371_v0 = vld [vmem:[%s2934_s25] sm:$0xff]  ;;  %596 = vrot.lane.b32.xlu1 %v590_v18, %s2748_s29  ;;  %v643_v26 = vstv %s2936_s28  ;;  %s2386_s22 = sld [smem:[#allocation6 + $0x2a]]  ;;  %s4162_s28 = smov 64  }
  0x59   : > { %v374_v2 = vcombine.high %v371_v0, %v371_v0  ;;  %v496_v3 = vsel %vm379_vm0, %v371_v0, 0.0  ;;  %v548_v4 = vsel %vm379_vm0, %v371_v0, -inf  ;;  %v648_v27 = vstv %s2941_s23  ;;  %s2387_s24 = sld [smem:[#allocation6 + $0x5b]] }
  0x5a   : > { %v533_v6 = vrot.slane %v496_v3, 4  ;;  %v549_v7 = vrot.slane %v548_v4, 4  ;;  %v621_v31 = vadd.f32 %v618_v24, %v613_v19  ;;  %v644_v33 = vmul.f32 0.0, %v643_v26  ;;  %s2390_s23 = sld [smem:[#allocation6 + $0x8]] }
  0x5b   : > { %v497_v9 = vsel %vm379_vm0, %v374_v2, 0.0  ;;  %v555_v10 = vsel %vm379_vm0, %v374_v2, -inf  ;;  %2365 = vmatprep.subr.msk.mxu0 %vm379_vm0, %v374_v2  ;;  %v649_v34 = vmul.f32 0.0, %v648_v27  ;;  %v679_v46 = vstv %s2383_s21  ;;  %s2391_s21 = sld [smem:[#allocation6 + $0x39]] }
  0x5c   : > { %v498_v13 = vadd.f32 %v497_v9, %v496_v3  ;;  %v534_v14 = vadd.f32 %v533_v6, %v496_v3  ;;  %v539_v15 = vrot.slane %v497_v9, 4  ;;  %v550_v16 = vmax.f32 %v548_v4, %v549_v7  ;;  %2366 = vmatpush1.msk.msra.mxu0 %vm379_vm0, %v371_v0  ;;  %627 = vrot.lane.b32.xlu1 %v621_v31, %s4166_s27  ;;  %s4246_s2 = sld [smem:[#allocation78_spill]] }
  0x5d   : > { %v556_v17 = vrot.slane %v555_v10, 4  ;;  %v652_v39 = vadd.f32 %v649_v34, %v644_v33  ;;  %v674_v51 = vstv %s2382_s26  ;;  %v682_v5 = vmul.f32 0.0, %v679_v46  ;;  %s4170_s26 = smov 48   ;;  %s3545_s0 = sld [smem:[#allocation6 + $0x30]] }
  0x5e   : > { %v535_v21 = vrot.slane %v534_v14, 2  ;;  %v540_v22 = vadd.f32 %v539_v15, %v497_v9  ;;  %v551_v23 = vrot.slane %v550_v16, 2  ;;  %499 = vadd.xlane.f32.xlu0 %v498_v13  ;;  %v677_v4 = vmul.f32 0.0, %v674_v51 }
  0x5f   : > { %v557_v25 = vmax.f32 %v555_v10, %v556_v17  ;;  %v705_v9 = vstv %s2384_s16  ;;  %v710_v10 = vstv %s2385_s17  ;;  %v741_v17 = vstv %s2387_s24  ;;  %s2392_s16 = sld [smem:[#allocation6 + $0xf]] }
  0x60   : > { %v536_v28 = vadd.f32 %v535_v21, %v534_v14  ;;  %v541_v29 = vrot.slane %v540_v22, 2  ;;  %v552_v30 = vmax.f32 %v550_v16, %v551_v23  ;;  %658 = vrot.lane.b32.xlu1 %v652_v39, %s4164_s14  ;;  %v685_v11 = vadd.f32 %v682_v5, %v677_v4  ;;  %s2393_s17 = sld [smem:[#allocation6 + $0x40]] }
  0x61   : > { %v558_v32 = vrot.slane %v557_v25, 2  ;;  %v736_v16 = vstv %s2386_s22  ;;  %v517_v21 = vlaneseq  ;;  %v744_v31 = vmul.f32 0.0, %v741_v17  ;;  %s4168_s22 = smov 32   ;;  %s2397_s24 = sld [smem:[#allocation6 + $0x4e]] }
  0x62   : > { %v537_v35 = vrot.slane %v536_v28, 1  ;;  %v542_v36 = vadd.f32 %v541_v29, %v540_v22  ;;  %v553_v37 = vrot.slane %v552_v30, 1  ;;  %v713_v29 = vmul.f32 0.0, %v710_v10 }
  0x63   : > { %v559_v38 = vmax.f32 %v557_v25, %v558_v32  ;;  %v813_v39 = vstv %s2391_s21  ;;  %s2396_s21 = sld [smem:[#allocation6 + $0x1d]]  ;;  %vm1256_vm0 = vcmask 1031168  }
  0x64   : > { %v538_v40 = vadd.f32 %v537_v35, %v536_v28  ;;  %v543_v41 = vrot.slane %v542_v36, 1  ;;  %v2960_v42 = vmax.f32 %v552_v30, %v553_v37  ;;  %v739_v30 = vmul.f32 0.0, %v736_v16  ;;  %v766_v37 = vld [vmem:[%s4155_s6] ss:$8 sm:$0x3] }
  0x65   : > { %v560_v45 = vrot.slane %v559_v38, 1 }
  0x66   : > { %v2962_v43 = vmul.f32 0.25, %v538_v40  ;;  %v588_v44 = vmul.f32 %v2946_v8, %v2960_v42  ;;  %v544_v47 = vadd.f32 %v543_v41, %v542_v36  ;;  %v619_v50 = vmul.f32 %v617_v20, %v2960_v42 }
  0x67   : > { %v2972_v53 = vmax.f32 %v559_v38, %v560_v45  ;;  %v650_v54 = vmul.f32 %v648_v27, %v2960_v42  ;;  %v680_v55 = vmul.f32 %v679_v46, %v2960_v42  ;;  %v711_v19 = vmul.f32 %v710_v10, %v2960_v42 }
  0x68   : > { %v583_v48 = vmul.f32 %v2939_v1, %v2962_v43  ;;  %v614_v49 = vmul.f32 %v2951_v12, %v2962_v43  ;;  %v2976_v56 = vmul.f32 0.25, %v544_v47  ;;  %v645_v58 = vmul.f32 %v643_v26, %v2962_v43 }
  0x69   : > { %v675_v59 = vmul.f32 %v674_v51, %v2962_v43  ;;  %v620_v60 = vmul.f32 %v617_v20, %v2972_v53  ;;  %v589_v61 = vmul.f32 %v2946_v8, %v2972_v53  ;;  %v651_v3 = vmul.f32 %v648_v27, %v2972_v53 }
  0x6a   : > { %v591_v52 = vadd.f32 %v588_v44, %v583_v48  ;;  %v622_v57 = vadd.f32 %v619_v50, %v614_v49  ;;  %v653_v62 = vadd.f32 %v650_v54, %v645_v58  ;;  %v615_v0 = vmul.f32 %v2951_v12, %v2976_v56 }
  0x6b   : > { %v683_v63 = vadd.f32 %v680_v55, %v675_v59  ;;  %v584_v2 = vmul.f32 %v2939_v1, %v2976_v56  ;;  %v646_v8 = vmul.f32 %v643_v26, %v2976_v56  ;;  %v676_v1 = vmul.f32 %v674_v51, %v2976_v56 }
  0x6c   : > { %598 = vrot.lane.b32.xlu1 %v591_v52, %s2748_s29  ;;  %v623_v6 = vadd.f32 %v620_v60, %v615_v0  ;;  %v681_v12 = vmul.f32 %v679_v46, %v2972_v53  ;;  %v707_v14 = vmul.f32 %v705_v9, %v2976_v56  ;;  %v712_v15 = vmul.f32 %v710_v10, %v2972_v53 }
  0x6d   : > { %v592_v7 = vadd.f32 %v589_v61, %v584_v2  ;;  %v654_v13 = vadd.f32 %v651_v3, %v646_v8  ;;  %v706_v18 = vmul.f32 %v705_v9, %v2962_v43  ;;  %v737_v20 = vmul.f32 %v736_v16, %v2962_v43 }
  0x6e   : > { %v684_v22 = vadd.f32 %v681_v12, %v676_v1  ;;  %v715_v23 = vadd.f32 %v712_v15, %v707_v14  ;;  %v742_v24 = vmul.f32 %v741_v17, %v2960_v42  ;;  %v708_v26 = vmul.f32 0.0, %v705_v9 }
  0x6f   : > { %v714_v25 = vadd.f32 %v711_v19, %v706_v18  ;;  %v3005_v27 = vshrl.u32 %v517_v21, 7  ;;  %v738_v32 = vmul.f32 %v736_v16, %v2976_v56  ;;  %v747_v35 = vadd.f32 %v744_v31, %v739_v30 }
  0x70   : > { %629 = vrot.lane.b32.xlu1 %v622_v57, %s4166_s27  ;;  %v745_v28 = vadd.f32 %v742_v24, %v737_v20  ;;  %v716_v34 = vadd.f32 %v713_v29, %v708_v26  ;;  %v743_v36 = vmul.f32 %v741_v17, %v2972_v53  ;;  %v808_v38 = vstv %s2390_s23  ;;  %s2754_s23 = smov 77  }
  0x71   : > { %4229 = vst [vmem:[#allocation14_spill] sm:$0xff] %v3005_v27  ;;  %v3011_v33 = vsub.s32 1, %v3005_v27  ;;  %v3023_v44 = vsub.s32 0, %v3005_v27  ;;  %v810_v45 = vmul.f32 %v808_v38, %v2962_v43  ;;  %v815_v46 = vmul.f32 %v813_v39, %v2960_v42 }
  0x72   : > { %v746_v41 = vadd.f32 %v743_v36, %v738_v32  ;;  %v838_v47 = vstv %s2392_s16  ;;  %v843_v48 = vstv %s2393_s17  ;;  %v809_v49 = vmul.f32 0.0, %v808_v38  ;;  %s2398_s16 = sld [smem:[#allocation6 + $0x24]] }
  0x73   : > { %v775_v40 = vrot.slane %v766_v37, %v3011_v33  ;;  %4230 = vst [vmem:[#allocation15_spill] sm:$0xff] %v3023_v44  ;;  %v814_v50 = vmul.f32 0.0, %v813_v39  ;;  %v771_v51 = vrot.slane %v766_v37, %v3023_v44  ;;  %v818_v52 = vadd.f32 %v815_v46, %v810_v45  ;;  %s2399_s17 = sld [smem:[#allocation6 + $0x55]] }
  0x74   : > { %660 = vrot.lane.b32.xlu1 %v653_v62, %s4164_s14  ;;  %689 = vrot.lane.b32.xlu0 %v683_v63, %s4162_s28  ;;  %v839_v54 = vmul.f32 0.0, %v838_v47  ;;  %v844_v55 = vmul.f32 0.0, %v843_v48  ;;  %v811_v58 = vmul.f32 %v808_v38, %v2976_v56  ;;  %v816_v59 = vmul.f32 %v813_v39, %v2972_v53 }
  0x75   : > { %v817_v57 = vadd.f32 %v814_v50, %v809_v49  ;;  %v841_v61 = vmul.f32 %v838_v47, %v2976_v56  ;;  %v846_v62 = vmul.f32 %v843_v48, %v2972_v53  ;;  %v840_v3 = vmul.f32 %v838_v47, %v2962_v43 }
  0x76   : > { %v847_v60 = vadd.f32 %v844_v55, %v839_v54  ;;  %v819_v2 = vadd.f32 %v816_v59, %v811_v58  ;;  %v845_v4 = vmul.f32 %v843_v48, %v2960_v42  ;;  %v898_v8 = vstv %s2396_s21  ;;  %s4232_s21 = smov 64  }
  0x77   : > { %v849_v5 = vadd.f32 %v846_v62, %v841_v61  ;;  %v903_v9 = vstv %s2397_s24  ;;  %v901_v19 = vmul.f32 0.0, %v898_v8  ;;  %v900_v24 = vmul.f32 %v898_v8, %v2976_v56  ;;  %s2405_s24 = sld [smem:[#allocation6 + $0x9]] }
  0x78   : > { %631 = vrot.lane.b32.xlu1 %v623_v6, %s4166_s27  ;;  %600 = vrot.lane.b32.xlu0 %v592_v7, %s2748_s29  ;;  %v848_v10 = vadd.f32 %v845_v4, %v840_v3  ;;  %v904_v14 = vmul.f32 %v903_v9, %v2960_v42  ;;  %v906_v20 = vmul.f32 0.0, %v903_v9  ;;  %v928_v21 = vstv %s2398_s16  ;;  %s2407_s16 = sld [smem:[#allocation6 + $0x10]] }
  0x79   : > { %v931_v39 = vmul.f32 0.0, %v928_v21 }
  0x7a   : > { %v909_v26 = vadd.f32 %v906_v20, %v901_v19 }
  0x7c   : > { %662 = vrot.lane.b32.xlu1 %v654_v13, %s4164_s14  ;;  %693 = vrot.lane.b32.xlu0 %v685_v11, %s4162_s28  ;;  %s2394_s14 = sld [smem:[#allocation6 + $0x16]]  ;;  %v899_v13 = vmul.f32 %v898_v8, %v2962_v43 }
  0x7d   : > { %v1045_v48 = vstv %s2405_s24  ;;  %s2421_s24 = sld [smem:[#allocation6 + $0x3b]] }
  0x7e   : > { %v907_v18 = vadd.f32 %v904_v14, %v899_v13  ;;  %v1047_v55 = vmul.f32 %v1045_v48, %v2962_v43  ;;  %v1075_v58 = vstv %s2407_s16  ;;  %v1048_v4 = vmul.f32 %v1045_v48, %v2976_v56  ;;  %s4233_s16 = smov 96  }
  0x80   : > { %691 = vrot.lane.b32.xlu1 %v684_v22, %s4162_s28  ;;  %722 = vrot.lane.b32.xlu0 %v715_v23, %s4170_s26  ;;  %s2395_s28 = sld [smem:[#allocation6 + $0x47]]  ;;  %v933_v22 = vstv %s2399_s17 }
  0x81   : > { %v935_v29 = vmul.f32 %v933_v22, %v2972_v53  ;;  %s2408_s17 = sld [smem:[#allocation6 + $0x41]] }
  0x82   : > { %v868_v63 = vstv %s2394_s14  ;;  %s2400_s14 = sld [smem:[#allocation6 + $0x2b]] }
  0x83   : > { %v870_v6 = vmul.f32 %v868_v63, %v2962_v43  ;;  %v869_v11 = vmul.f32 0.0, %v868_v63  ;;  %v871_v15 = vmul.f32 %v868_v63, %v2976_v56 }
  0x84   : > { %720 = vrot.lane.b32.xlu1 %v714_v25, %s4170_s26  ;;  %751 = vrot.lane.b32.xlu0 %v745_v28, %s4168_s22  ;;  %v905_v25 = vmul.f32 %v903_v9, %v2972_v53  ;;  %v930_v28 = vmul.f32 %v928_v21, %v2976_v56 }
  0x86   : > { %v873_v0 = vstv %s2395_s28  ;;  %s2401_s28 = sld [smem:[#allocation6 + $0x5c]]  ;;  %v908_v32 = vadd.f32 %v905_v25, %v900_v24  ;;  %v938_v36 = vadd.f32 %v935_v29, %v930_v28 }
  0x87   : > { %v875_v7 = vmul.f32 %v873_v0, %v2960_v42  ;;  %v874_v12 = vmul.f32 0.0, %v873_v0  ;;  %v876_v16 = vmul.f32 %v873_v0, %v2972_v53  ;;  %v1080_v59 = vstv %s2408_s17  ;;  %s2434_s17 = sld [smem:[#allocation6 + $0xb]] }
  0x88   : > { %724 = vrot.lane.b32.xlu1 %v716_v34, %s4170_s26  ;;  %755 = vrot.lane.b32.xlu0 %v747_v35, %s4168_s22  ;;  %v958_v30 = vstv %s2400_s14  ;;  %v929_v34 = vmul.f32 %v928_v21, %v2962_v43  ;;  %v934_v35 = vmul.f32 %v933_v22, %v2960_v42  ;;  %s2409_s14 = sld [smem:[#allocation6 + $0x17]]  ;;  %v1076_v0 = vmul.f32 0.0, %v1075_v58 }
  0x89   : > { %v878_v1 = vadd.f32 %v875_v7, %v870_v6  ;;  %v877_v17 = vadd.f32 %v874_v12, %v869_v11  ;;  %v879_v23 = vadd.f32 %v876_v16, %v871_v15  ;;  %v959_v37 = vmul.f32 %v958_v30, %v2962_v43 }
  0x8a   : > { %v961_v46 = vmul.f32 0.0, %v958_v30  ;;  %v1078_v7 = vmul.f32 %v1075_v58, %v2976_v56  ;;  %v1083_v8 = vmul.f32 %v1080_v59, %v2972_v53  ;;  %v1082_v12 = vmul.f32 %v1080_v59, %v2960_v42 }
  0x8c   : > { %753 = vrot.lane.b32.xlu1 %v746_v41, %s4168_s22  ;;  %778 = vrot.lane.b32.xlu0 %v775_v40, %s2754_s23  ;;  %v963_v31 = vstv %s2401_s28  ;;  %v936_v40 = vmul.f32 0.0, %v933_v22  ;;  %v937_v41 = vadd.f32 %v934_v35, %v929_v34  ;;  %s2410_s28 = sld [smem:[#allocation6 + $0x48]]  ;;  %v1086_v13 = vadd.f32 %v1083_v8, %v1078_v7 }
  0x8d   : > { %v964_v38 = vmul.f32 %v963_v31, %v2960_v42  ;;  %v966_v47 = vmul.f32 0.0, %v963_v31 }
  0x8e   : > { %v939_v50 = vadd.f32 %v936_v40, %v931_v39  ;;  %v1105_v9 = vstv %s2409_s14  ;;  %s2411_s14 = sld [smem:[#allocation6 + $0x1e]] }
  0x8f   : > { %v967_v45 = vadd.f32 %v964_v38, %v959_v37  ;;  %v969_v54 = vadd.f32 %v966_v47, %v961_v46  ;;  %v1107_v14 = vmul.f32 %v1105_v9, %v2962_v43  ;;  %v1108_v25 = vmul.f32 %v1105_v9, %v2976_v56 }
  0x90   : > { %776 = vrot.lane.b32.xlu1 %v771_v51, %s2754_s23  ;;  %825 = vrot.lane.b32.xlu0 %v818_v52, %s2748_s29  ;;  %s4231_s23 = smov 80   ;;  %v960_v51 = vmul.f32 %v958_v30, %v2976_v56  ;;  %v965_v52 = vmul.f32 %v963_v31, %v2972_v53  ;;  %v1489_v31 = vstv %s2434_s17  ;;  %s2437_s17 = sld [smem:[#allocation6 + $0x43]] }
  0x91   : > { %v1491_v38 = vmul.f32 %v1489_v31, %v2962_v43  ;;  %v1490_v46 = vmul.f32 0.0, %v1489_v31 }
  0x92   : > { %v968_v62 = vadd.f32 %v965_v52, %v960_v51  ;;  %v1492_v51 = vmul.f32 %v1489_v31, %v2976_v56 }
  0x94   : > { %823 = vrot.lane.b32.xlu1 %v817_v57, %s2748_s29  ;;  %853 = vrot.lane.b32.xlu0 %v847_v60, %s4166_s27  ;;  %v1046_v60 = vmul.f32 0.0, %v1045_v48  ;;  %v1135_v40 = vstv %s2411_s14  ;;  %s2449_s14 = sld [smem:[#allocation6 + $0xc]] }
  0x98   : > { %827 = vrot.lane.b32.xlu1 %v819_v2, %s2748_s29  ;;  %857 = vrot.lane.b32.xlu0 %v849_v5, %s4166_s27  ;;  %v1081_v2 = vmul.f32 0.0, %v1080_v59 }
  0x9a   : > { %v1084_v6 = vadd.f32 %v1081_v2, %v1076_v0 }
  0x9c   : > { %855 = vrot.lane.b32.xlu1 %v848_v10, %s4166_s27  ;;  %885 = vrot.lane.b32.xlu0 %v878_v1, %s4231_s23  ;;  %s2406_s27 = sld [smem:[#allocation6 + $0x3a]]  ;;  %v1110_v10 = vstv %s2410_s28  ;;  %v1077_v1 = vmul.f32 %v1075_v58, %v2962_v43 }
  0x9d   : > { %v1112_v15 = vmul.f32 %v1110_v10, %v2960_v42  ;;  %v1111_v19 = vmul.f32 0.0, %v1110_v10  ;;  %s2412_s28 = sld [smem:[#allocation6 + $0x4f]] }
  0x9e   : > { %v1085_v20 = vadd.f32 %v1082_v12, %v1077_v1 }
  0x9f   : > { %v1115_v21 = vadd.f32 %v1112_v15, %v1107_v14 }
  0xa0   : > { %883 = vrot.lane.b32.xlu1 %v877_v17, %s4231_s23  ;;  %913 = vrot.lane.b32.xlu0 %v907_v18, %s4232_s21  ;;  %v1287_v17 = vstv %s2421_s24  ;;  %v1106_v18 = vmul.f32 0.0, %v1105_v9  ;;  %s2423_s24 = sld [smem:[#allocation6 + $0x42]] }
  0xa1   : > { %v1290_v30 = vmul.f32 %v1287_v17, %v2972_v53 }
  0xa2   : > { %v1050_v49 = vstv %s2406_s27  ;;  %s2420_s27 = sld [smem:[#allocation6 + $0xa]]  ;;  %v1114_v24 = vadd.f32 %v1111_v19, %v1106_v18 }
  0xa3   : > { %v1052_v57 = vmul.f32 %v1050_v49, %v2960_v42  ;;  %v1051_v61 = vmul.f32 0.0, %v1050_v49  ;;  %v1053_v5 = vmul.f32 %v1050_v49, %v2972_v53  ;;  %v1136_v49 = vmul.f32 %v1135_v40, %v2962_v43 }
  0xa4   : > { %887 = vrot.lane.b32.xlu1 %v879_v23, %s4231_s23  ;;  %917 = vrot.lane.b32.xlu0 %v909_v26, %s4232_s21  ;;  %v1288_v23 = vmul.f32 0.0, %v1287_v17  ;;  %v1113_v26 = vmul.f32 %v1110_v10, %v2972_v53 }
  0xa5   : > { %v1055_v63 = vadd.f32 %v1052_v57, %v1047_v55  ;;  %v1054_v3 = vadd.f32 %v1051_v61, %v1046_v60  ;;  %v1056_v11 = vadd.f32 %v1053_v5, %v1048_v4  ;;  %v1138_v57 = vmul.f32 0.0, %v1135_v40 }
  0xa6   : > { %v1116_v34 = vadd.f32 %v1113_v26, %v1108_v25  ;;  %v1317_v60 = vstv %s2423_s24  ;;  %s2414_s24 = sld [smem:[#allocation6 + $0x56]] }
  0xa7   : > { %v1318_v8 = vmul.f32 0.0, %v1317_v60  ;;  %v1320_v15 = vmul.f32 %v1317_v60, %v2972_v53 }
  0xa8   : > { %915 = vrot.lane.b32.xlu1 %v908_v32, %s4232_s21  ;;  %945 = vrot.lane.b32.xlu0 %v938_v36, %s4170_s26  ;;  %v1282_v16 = vstv %s2420_s27  ;;  %v1289_v36 = vmul.f32 %v1287_v17, %v2960_v42  ;;  %s2422_s27 = sld [smem:[#allocation6 + $0x11]] }
  0xa9   : > { %v1283_v22 = vmul.f32 0.0, %v1282_v16  ;;  %v1285_v29 = vmul.f32 %v1282_v16, %v2976_v56  ;;  %v1284_v35 = vmul.f32 %v1282_v16, %v2962_v43 }
  0xab   : > { %v1291_v28 = vadd.f32 %v1288_v23, %v1283_v22  ;;  %v1293_v37 = vadd.f32 %v1290_v30, %v1285_v29 }
  0xac   : > { %943 = vrot.lane.b32.xlu1 %v937_v41, %s4170_s26  ;;  %973 = vrot.lane.b32.xlu0 %v967_v45, %s4168_s22  ;;  %v1140_v41 = vstv %s2412_s28  ;;  %v1292_v45 = vadd.f32 %v1289_v36, %v1284_v35  ;;  %s2450_s28 = sld [smem:[#allocation6 + $0x3d]]  ;;  %v1170_v30 = vstv %s2414_s24 }
  0xad   : > { %v1143_v58 = vmul.f32 0.0, %v1140_v41  ;;  %s2452_s24 = sld [smem:[#allocation6 + $0x44]] }
  0xae   : > { %v1312_v59 = vstv %s2422_s27  ;;  %s2413_s27 = sld [smem:[#allocation6 + $0x25]] }
  0xaf   : > { %v1146_v0 = vadd.f32 %v1143_v58, %v1138_v57  ;;  %v1314_v2 = vmul.f32 %v1312_v59, %v2962_v43  ;;  %v1313_v7 = vmul.f32 0.0, %v1312_v59  ;;  %v1315_v14 = vmul.f32 %v1312_v59, %v2976_v56 }
  0xb0   : > { %947 = vrot.lane.b32.xlu1 %v939_v50, %s4170_s26  ;;  %977 = vrot.lane.b32.xlu0 %v969_v54, %s4168_s22  ;;  %v1141_v50 = vmul.f32 %v1140_v41, %v2960_v42  ;;  %v1172_v57 = vmul.f32 %v1170_v30, %v2972_v53 }
  0xb1   : > { %v1323_v22 = vadd.f32 %v1320_v15, %v1315_v14 }
  0xb2   : > { %v1144_v55 = vadd.f32 %v1141_v50, %v1136_v49 }
  0xb4   : > { %975 = vrot.lane.b32.xlu1 %v968_v62, %s4168_s22  ;;  %1062 = vrot.lane.b32.xlu0 %v1055_v63, %s2748_s29  ;;  %s2435_s22 = sld [smem:[#allocation6 + $0x3c]]  ;;  %v1137_v62 = vmul.f32 %v1135_v40, %v2976_v56  ;;  %v1142_v63 = vmul.f32 %v1140_v41, %v2972_v53  ;;  %v1165_v29 = vstv %s2413_s27 }
  0xb5   : > { %s2451_s27 = sld [smem:[#allocation6 + $0x13]] }
  0xb6   : > { %v1145_v9 = vadd.f32 %v1142_v63, %v1137_v62 }
  0xb8   : > { %1060 = vrot.lane.b32.xlu1 %v1054_v3, %s2748_s29  ;;  %1090 = vrot.lane.b32.xlu0 %v1084_v6, %s4233_s16  ;;  %v1319_v3 = vmul.f32 %v1317_v60, %v2960_v42  ;;  %v1524_v6 = vstv %s2437_s17  ;;  %s3132_s17 = sld [smem:[#allocation6 + $0x49]] }
  0xb9   : > { %v1525_v1 = vmul.f32 0.0, %v1524_v6  ;;  %v1527_v18 = vmul.f32 %v1524_v6, %v2972_v53 }
  0xba   : > { %v1494_v32 = vstv %s2435_s22  ;;  %s2436_s22 = sld [smem:[#allocation6 + $0x12]]  ;;  %v1322_v10 = vadd.f32 %v1319_v3, %v1314_v2 }
  0xbb   : > { %v1496_v39 = vmul.f32 %v1494_v32, %v2960_v42  ;;  %v1495_v48 = vmul.f32 0.0, %v1494_v32  ;;  %v1497_v52 = vmul.f32 %v1494_v32, %v2972_v53 }
  0xbc   : > { %1064 = vrot.lane.b32.xlu1 %v1056_v11, %s2748_s29  ;;  %1094 = vrot.lane.b32.xlu0 %v1086_v13, %s4233_s16  ;;  %v1321_v13 = vadd.f32 %v1318_v8, %v1313_v7 }
  0xbd   : > { %v1499_v47 = vadd.f32 %v1496_v39, %v1491_v38  ;;  %v1498_v54 = vadd.f32 %v1495_v48, %v1490_v46  ;;  %v1500_v61 = vadd.f32 %v1497_v52, %v1492_v51  ;;  %v1171_v38 = vmul.f32 %v1170_v30, %v2960_v42 }
  0xbe   : > { %v1173_v48 = vmul.f32 0.0, %v1170_v30  ;;  %v1346_v50 = vstv %s3132_s17  ;;  %s2465_s17 = sld [smem:[#allocation6 + $0x3e]] }
  0xbf   : > { %v1348_v60 = vmul.f32 %v1346_v50, %v2972_v53 }
  0xc0   : > { %1092 = vrot.lane.b32.xlu1 %v1085_v20, %s4233_s16  ;;  %1122 = vrot.lane.b32.xlu0 %v1115_v21, %s4231_s23  ;;  %v1519_v5 = vstv %s2436_s22  ;;  %v1726_v20 = vstv %s2449_s14  ;;  %s3130_s22 = sld [smem:[#allocation6 + $0x18]] }
  0xc1   : > { %v1520_v11 = vmul.f32 0.0, %v1519_v5  ;;  %v1522_v17 = vmul.f32 %v1519_v5, %v2976_v56  ;;  %v1731_v21 = vstv %s2450_s28  ;;  %v1521_v23 = vmul.f32 %v1519_v5, %v2962_v43  ;;  %s2438_s14 = sld [smem:[#allocation6 + $0x19]] }
  0xc2   : > { %v1728_v26 = vmul.f32 %v1726_v20, %v2962_v43  ;;  %v1732_v36 = vmul.f32 0.0, %v1731_v21  ;;  %s2439_s28 = sld [smem:[#allocation6 + $0x4a]]  ;;  %v1729_v40 = vmul.f32 %v1726_v20, %v2976_v56  ;;  %v1734_v41 = vmul.f32 %v1731_v21, %v2972_v53 }
  0xc3   : > { %v1528_v16 = vadd.f32 %v1525_v1, %v1520_v11  ;;  %v1530_v25 = vadd.f32 %v1527_v18, %v1522_v17  ;;  %v1347_v5 = vmul.f32 %v1346_v50, %v2960_v42 }
  0xc4   : > { %1120 = vrot.lane.b32.xlu1 %v1114_v24, %s4231_s23  ;;  %1297 = vrot.lane.b32.xlu0 %v1291_v28, %s2748_s29  ;;  %v1526_v24 = vmul.f32 %v1524_v6, %v2960_v42  ;;  %v1733_v28 = vmul.f32 %v1731_v21, %v2960_v42 }
  0xc6   : > { %v1529_v32 = vadd.f32 %v1526_v24, %v1521_v23  ;;  %v1736_v35 = vadd.f32 %v1733_v28, %v1728_v26  ;;  %v1342_v49 = vstv %s3130_s22  ;;  %s2464_s22 = sld [smem:[#allocation6 + $0xd]]  ;;  %v503_v26 = vld [vmem:[%s4246_s2] sm:$0xf] }
  0xc7   : > { %v1344_v59 = vmul.f32 %v1342_v49, %v2976_v56  ;;  %v1343_v3 = vmul.f32 %v1342_v49, %v2962_v43  ;;  %s3555_s2 = sld [smem:[#allocation6 + $0x61]] }
  0xc8   : > { %1124 = vrot.lane.b32.xlu1 %v1116_v34, %s4231_s23  ;;  %1301 = vrot.lane.b32.xlu0 %v1293_v37, %s2748_s29  ;;  %v1727_v34 = vmul.f32 0.0, %v1726_v20  ;;  %v1166_v37 = vmul.f32 %v1165_v29, %v2962_v43  ;;  %v1554_v62 = vstv %s2439_s28  ;;  %s2427_s28 = sld [smem:[#allocation6 + $0x50]] }
  0xc9   : > { %v1350_v6 = vadd.f32 %v1348_v60, %v1344_v59  ;;  %v1556_v8 = vmul.f32 %v1554_v62, %v2972_v53  ;;  %v1557_v24 = vmul.f32 0.0, %v1554_v62 }
  0xca   : > { %v3110_v4 = vpop.permute.xlu1 %596  ;;  %v1174_v46 = vadd.f32 %v1171_v38, %v1166_v37 }
  0xcb   : > { %4234 = vst [vmem:[#allocation16_spill] sm:$0xff] %v3110_v4 }
  0xcc   : > { %1299 = vrot.lane.b32.xlu1 %v1292_v45, %s2748_s29  ;;  %1506 = vrot.lane.b32.xlu0 %v1499_v47, %s2748_s29  ;;  %v1735_v45 = vadd.f32 %v1732_v36, %v1727_v34  ;;  %v1168_v47 = vmul.f32 0.0, %v1165_v29  ;;  %v1968_v34 = vstv %s2465_s17  ;;  %s2441_s17 = sld [smem:[#allocation6 + $0x51]] }
  0xce   : > { %v3114_v12 = vpop.permute.xlu1 %627  ;;  %v1176_v58 = vadd.f32 %v1173_v48, %v1168_v47  ;;  %v1970_v47 = vmul.f32 %v1968_v34, %v2960_v42 }
  0xcf   : > { %4235 = vst [vmem:[#allocation17_spill] sm:$0xff] %v3114_v12 }
  0xd0   : > { %1504 = vrot.lane.b32.xlu1 %v1498_v54, %s2748_s29  ;;  %1150 = vrot.lane.b32.xlu0 %v1144_v55, %s4232_s21  ;;  %v1737_v54 = vadd.f32 %v1734_v41, %v1729_v40  ;;  %v1167_v55 = vmul.f32 %v1165_v29, %v2976_v56 }
  0xd2   : > { %v3122_v19 = vpop.permute.xlu1 %658  ;;  %v1175_v2 = vadd.f32 %v1172_v57, %v1167_v55 }
  0xd3   : > { %4236 = vst [vmem:[#allocation18_spill] sm:$0xff] %v3122_v19 }
  0xd4   : > { %1508 = vrot.lane.b32.xlu1 %v1500_v61, %s2748_s29  ;;  %1154 = vrot.lane.b32.xlu0 %v1146_v0, %s4232_s21  ;;  %v1549_v61 = vstv %s2438_s14  ;;  %s2426_s14 = sld [smem:[#allocation6 + $0x1f]] }
  0xd5   : > { %v1551_v7 = vmul.f32 %v1549_v61, %v2976_v56  ;;  %v1550_v14 = vmul.f32 %v1549_v61, %v2962_v43  ;;  %v1552_v23 = vmul.f32 0.0, %v1549_v61 }
  0xd7   : > { %v1559_v15 = vadd.f32 %v1556_v8, %v1551_v7  ;;  %v1560_v38 = vadd.f32 %v1557_v24, %v1552_v23  ;;  %v1971_v7 = vmul.f32 %v1968_v34, %v2972_v53 }
  0xd8   : > { %1152 = vrot.lane.b32.xlu1 %v1145_v9, %s4232_s21  ;;  %1329 = vrot.lane.b32.xlu0 %v1322_v10, %s4233_s16  ;;  %v1756_v9 = vstv %s2451_s27  ;;  %v1761_v10 = vstv %s2452_s24  ;;  %s2415_s27 = sld [smem:[#allocation6 + $0x2c]] }
  0xd9   : > { %v1757_v17 = vmul.f32 0.0, %v1756_v9  ;;  %v1762_v18 = vmul.f32 0.0, %v1761_v10  ;;  %v1764_v30 = vmul.f32 %v1761_v10, %v2972_v53  ;;  %s2416_s24 = sld [smem:[#allocation6 + $0x5d]]  ;;  %v1758_v40 = vmul.f32 %v1756_v9, %v2962_v43 }
  0xda   : > { %v1763_v41 = vmul.f32 %v1761_v10, %v2960_v42 }
  0xdb   : > { %v1765_v29 = vadd.f32 %v1762_v18, %v1757_v17 }
  0xdc   : > { %1327 = vrot.lane.b32.xlu1 %v1321_v13, %s4233_s16  ;;  %1534 = vrot.lane.b32.xlu0 %v1528_v16, %s4233_s16  ;;  %v1349_v13 = vadd.f32 %v1347_v5, %v1343_v3  ;;  %v1555_v16 = vmul.f32 %v1554_v62, %v2960_v42  ;;  %v1766_v55 = vadd.f32 %v1763_v41, %v1758_v40 }
  0xde   : > { %v3134_v31 = vpop.permute.xlu1 %598  ;;  %v1558_v28 = vadd.f32 %v1555_v16, %v1550_v14  ;;  %v3205_v59 = vstv %s2415_s27  ;;  %s2755_s27 = smov 78  }
  0xdf   : > { %4237 = vst [vmem:[#allocation19_spill] sm:$0xff] %v3134_v31  ;;  %v3207_v60 = vstv %s2416_s24  ;;  %v1196_v8 = vmul.f32 %v3205_v59, %v2962_v43  ;;  %s4256_s24 = smov 32   ;;  %v1197_v24 = vmul.f32 %v3205_v59, %v2976_v56 }
  0xe0   : > { %1331 = vrot.lane.b32.xlu1 %v1323_v22, %s4233_s16  ;;  %1538 = vrot.lane.b32.xlu0 %v1530_v25, %s4233_s16  ;;  %v1759_v25 = vmul.f32 %v1756_v9, %v2976_v56  ;;  %v1201_v9 = vmul.f32 %v3207_v60, %v2960_v42 }
  0xe2   : > { %v3140_v39 = vpop.permute.xlu1 %629  ;;  %v1204_v16 = vadd.f32 %v1201_v9, %v1196_v8 }
  0xe3   : > { %4238 = vst [vmem:[#allocation20_spill] sm:$0xff] %v3140_v39 }
  0xe4   : > { %1536 = vrot.lane.b32.xlu1 %v1529_v32, %s4233_s16  ;;  %1743 = vrot.lane.b32.xlu0 %v1736_v35, %s2748_s29  ;;  %v1963_v32 = vstv %s2464_s22  ;;  %s2440_s22 = sld [smem:[#allocation6 + $0x20]] }
  0xe5   : > { %v1964_v50 = vmul.f32 0.0, %v1963_v32 }
  0xe6   : > { %v3148_v51 = vpop.permute.xlu1 %660 }
  0xe7   : > { %4239 = vst [vmem:[#allocation21_spill] sm:$0xff] %v3148_v51  ;;  %v500_v52 = vpop.xlane.xlu0 %499 }
  0xe8   : > { %1741 = vrot.lane.b32.xlu1 %v1735_v45, %s2748_s29  ;;  %1180 = vrot.lane.b32.xlu0 %v1174_v46, %s4170_s26  ;;  %v502_v21 = vmul.f32 0.00390625, %v500_v52  ;;  %v1767_v45 = vadd.f32 %v1764_v30, %v1759_v25  ;;  %v1965_v46 = vmul.f32 %v1963_v32, %v2962_v43  ;;  %v1969_v52 = vmul.f32 0.0, %v1968_v34 }
  0xe9   : > { %v1202_v25 = vmul.f32 %v3207_v60, %v2972_v53 }
  0xea   : > { %v3156_v63 = vpop.permute.xlu1 %631  ;;  %v504_v36 = vmul.f32 %v503_v26, %v502_v21  ;;  %v1973_v57 = vadd.f32 %v1970_v47, %v1965_v46  ;;  %v1972_v3 = vadd.f32 %v1969_v52, %v1964_v50  ;;  %v3238_v26 = vstv %s2426_s14  ;;  %s2466_s14 = sld [smem:[#allocation6 + $0x14]] }
  0xeb   : > { %4240 = vst [vmem:[#allocation22_spill] sm:$0xff] %v3156_v63  ;;  %v3158_v0 = vpop.permute.xlu0 %689  ;;  %v1205_v34 = vadd.f32 %v1202_v25, %v1197_v24  ;;  %v1368_v47 = vmul.f32 0.0, %v3238_v26  ;;  %v3257_v52 = vstv %s2440_s22  ;;  %s2443_s22 = sld [smem:[#allocation6 + $0x58]] }
  0xec   : > { %4241 = vst [vmem:[#allocation23_spill] sm:$0xff] %v3158_v0  ;;  %1745 = vrot.lane.b32.xlu1 %v1737_v54, %s2748_s29  ;;  %1184 = vrot.lane.b32.xlu0 %v1176_v58, %s4170_s26  ;;  %v506_v54 = vsel %vm505_vm1, %v504_v36, 0.0  ;;  %v2402_v58 = vld [vmem:[%s4155_s6 + $0x1] ss:$8 sm:$0x3]  ;;  %v1366_v36 = vmul.f32 %v3238_v26, %v2962_v43  ;;  %v1582_v31 = vmul.f32 0.0, %v3257_v52 }
  0xed   : > { %v507_v62 = vrot.slane %v506_v54, 4  ;;  %v993_v5 = vrot.slane %v2402_v58, %v3023_v44  ;;  %v997_v23 = vrot.slane %v2402_v58, %v3011_v33 }
  0xee   : > { %v3166_v11 = vpop.permute.xlu1 %662 }
  0xef   : > { %4242 = vst [vmem:[#allocation24_spill] sm:$0xff] %v3166_v11  ;;  %v3168_v1 = vpop.permute.xlu0 %600 }
  0xf0   : > { %4243 = vst [vmem:[#allocation25_spill] sm:$0xff] %v3168_v1  ;;  %1182 = vrot.lane.b32.xlu1 %v1175_v2, %s4170_s26  ;;  %1355 = vrot.lane.b32.xlu0 %v1350_v6, %s4231_s23  ;;  %v1966_v6 = vmul.f32 %v1963_v32, %v2976_v56  ;;  %s2454_s26 = sld [smem:[#allocation6 + $0x4b]] }
  0xf2   : > { %v3174_v20 = vpop.permute.xlu1 %691 }
  0xf3   : > { %4244 = vst [vmem:[#allocation26_spill] sm:$0xff] %v3174_v20  ;;  %v3176_v22 = vpop.permute.xlu0 %693 }
  0xf4   : > { %4245 = vst [vmem:[#allocation27_spill] sm:$0xff] %v3176_v22  ;;  %1353 = vrot.lane.b32.xlu1 %v1349_v13, %s4231_s23  ;;  %1566 = vrot.lane.b32.xlu0 %v1559_v15, %s4231_s23  ;;  %v508_v13 = vadd.f32 %v507_v62, %v506_v54  ;;  %v1974_v15 = vadd.f32 %v1971_v7, %v1966_v6  ;;  %v3259_v54 = vstv %s2441_s17  ;;  %v513_v62 = vld [vmem:[#allocation2] sm:$0x1]  ;;  %s2455_s17 = sld [smem:[#allocation6 + $0x21]]  ;;  %v1203_v22 = vmul.f32 0.0, %v3207_v60 }
  0xf5   : > { %v1586_v6 = vmul.f32 %v3259_v54, %v2972_v53 }
  0xf6   : > { %v3185_v35 = vpop.permute.xlu1 %720  ;;  %v509_v18 = vrot.slane %v508_v13, 2  ;;  %v3272_v8 = vstv %s2454_s26  ;;  %s2428_s26 = sld [smem:[#allocation6 + $0x26]] }
  0xf7   : > { %4247 = vst [vmem:[#allocation28_spill] sm:$0xff] %v3185_v35  ;;  %v3187_v37 = vpop.permute.xlu0 %722 }
  0xf8   : > { %4248 = vst [vmem:[#allocation29_spill] sm:$0xff] %v3187_v37  ;;  %1564 = vrot.lane.b32.xlu1 %v1558_v28, %s4231_s23  ;;  %1771 = vrot.lane.b32.xlu0 %v1765_v29, %s4233_s16  ;;  %v3240_v28 = vstv %s2427_s28  ;;  %v510_v30 = vadd.f32 %v509_v18, %v508_v13  ;;  %s2467_s28 = sld [smem:[#allocation6 + $0x45]] }
  0xf9   : > { %v1373_v50 = vmul.f32 0.0, %v3240_v28 }
  0xfa   : > { %v3195_v48 = vpop.permute.xlu1 %724  ;;  %v511_v41 = vrot.slane %v510_v30, 1 }
  0xfb   : > { %4249 = vst [vmem:[#allocation30_spill] sm:$0xff] %v3195_v48  ;;  %v3197_v49 = vpop.permute.xlu0 %751 }
  0xfc   : > { %4250 = vst [vmem:[#allocation31_spill] sm:$0xff] %v3197_v49  ;;  %1568 = vrot.lane.b32.xlu1 %v1560_v38, %s4231_s23  ;;  %1775 = vrot.lane.b32.xlu0 %v1767_v45, %s4233_s16  ;;  %v1371_v38 = vmul.f32 %v3240_v28, %v2960_v42  ;;  %v3342_v49 = vstv %s2443_s22  ;;  %s2430_s22 = sld [smem:[#allocation6 + $0x2d]] }
  0xfe   : > { %v3209_v61 = vpop.permute.xlu1 %753  ;;  %v1374_v46 = vadd.f32 %v1371_v38, %v1366_v36  ;;  %v1794_v38 = vmul.f32 0.0, %v3272_v8 }
  0xff   : > { %4251 = vst [vmem:[#allocation32_spill] sm:$0xff] %v3209_v61  ;;  %v3211_v2 = vpop.permute.xlu0 %755 }
 0x100   : > { %4252 = vst [vmem:[#allocation33_spill] sm:$0xff] %v3211_v2  ;;  %1773 = vrot.lane.b32.xlu1 %v1766_v55, %s4233_s16  ;;  %1980 = vrot.lane.b32.xlu0 %v1973_v57, %s2748_s29  ;;  %v512_v57 = vadd.f32 %v511_v41, %v510_v30  ;;  %v3290_v41 = vstv %s2466_s14  ;;  %s4265_s14 = smov 48  }
 0x102   : > { %v3222_v10 = vpop.permute.xlu1 %776  ;;  %v514_v13 = vadd.f32 %v513_v62, %v512_v57  ;;  %v516_v62 = vld [vmem:[%s4153_s4] sm:$0xf] }
 0x103   : > { %4253 = vst [vmem:[#allocation34_spill] sm:$0xff] %v3222_v10  ;;  %v3224_v14 = vpop.permute.xlu0 %778 }
 0x104   : > { %4254 = vst [vmem:[#allocation35_spill] sm:$0xff] %v3224_v14  ;;  %1978 = vrot.lane.b32.xlu1 %v1972_v3, %s2748_s29  ;;  %998 = vrot.lane.b32.xlu0 %v993_v5, %s2755_s27  ;;  %v1376_v3 = vadd.f32 %v1373_v50, %v1368_v47  ;;  %v1581_v5 = vmul.f32 %v3257_v52, %v2976_v56  ;;  %v515_v25 = vmax.f32 %v514_v13, 0.0 }
 0x106   : > { %v3227_v17 = vpop.permute.xlu1 %823  ;;  %v520_v50 = vrot.slane %v515_v25, %v3023_v44  ;;  %v3315_v25 = vld [vmem:[%s4155_s6 + $0x2] ss:$8 sm:$0x3] }
 0x107   : > { %4255 = vst [vmem:[#allocation36_spill] sm:$0xff] %v3227_v17  ;;  %v3229_v21 = vpop.permute.xlu0 %825 }
 0x108   : > { %1982 = vrot.lane.b32.xlu1 %v1974_v15, %s2748_s29  ;;  %1210 = vrot.lane.b32.xlu0 %v1204_v16, %s4256_s24  ;;  %s2453_s29 = sld [smem:[#allocation6 + $0x1a]]  ;;  %v1589_v16 = vadd.f32 %v1586_v6, %v1581_v5  ;;  %v1995_v5 = vmul.f32 %v3290_v41, %v2962_v43 }
 0x10a   : > { %v3242_v29 = vpop.permute.xlu1 %827 }
 0x10b   : > { %4257 = vst [vmem:[#allocation37_spill] sm:$0xff] %v3242_v29  ;;  %v3244_v32 = vpop.permute.xlu0 %853 }
 0x10c   : > { %4258 = vst [vmem:[#allocation38_spill] sm:$0xff] %v3244_v32  ;;  %1000 = vrot.lane.b32.xlu1 %v997_v23, %s2755_s27  ;;  %v1792_v23 = vmul.f32 %v3272_v8, %v2960_v42  ;;  %s2429_s27 = sld [smem:[#allocation6 + $0x57]] }
 0x10e   : > { %v3250_v40 = vpop.permute.xlu1 %855  ;;  %v3270_v7 = vstv %s2453_s29  ;;  %s2442_s29 = sld [smem:[#allocation6 + $0x27]] }
 0x10f   : > { %v3252_v45 = vpop.permute.xlu0 %857  ;;  %v1787_v18 = vmul.f32 %v3270_v7, %v2962_v43  ;;  %v1789_v36 = vmul.f32 0.0, %v3270_v7 }
 0x110   : > { %1212 = vrot.lane.b32.xlu1 %v1205_v34, %s4256_s24 }
 0x111   : > { %v1795_v34 = vadd.f32 %v1792_v23, %v1787_v18 }
 0x112   : > { %v3261_v55 = vpop.permute.xlu1 %883 }
 0x113   : > { %4259 = vst [vmem:[#allocation39_spill] sm:$0xff] %v3261_v55  ;;  %v3263_v58 = vpop.permute.xlu0 %885 }
 0x114   : > { %1380 = vrot.lane.b32.xlu1 %v1374_v46, %s4232_s21  ;;  %v3292_v46 = vstv %s2467_s28  ;;  %v3340_v10 = vstv %s2442_s29  ;;  %s2468_s29 = sld [smem:[#allocation6 + $0x1b]] }
 0x115   : > { %v2000_v6 = vmul.f32 %v3292_v46, %v2960_v42  ;;  %v1611_v2 = vmul.f32 %v3340_v10, %v2976_v56  ;;  %s2469_s28 = sld [smem:[#allocation6 + $0x4c]] }
 0x116   : > { %v3274_v9 = vpop.permute.xlu1 %887 }
 0x117   : > { %v3276_v15 = vpop.permute.xlu0 %913  ;;  %v2003_v23 = vadd.f32 %v2000_v6, %v1995_v5 }
 0x118   : > { %1384 = vrot.lane.b32.xlu1 %v1376_v3, %s4232_s21  ;;  %v1797_v3 = vadd.f32 %v1794_v38, %v1789_v36  ;;  %v3319_v36 = vstv %s2429_s27  ;;  %s2756_s27 = smov 79  }
 0x119   : > { %v1401_v6 = vmul.f32 %v3319_v36, %v2960_v42 }
 0x11a   : > { %v3283_v24 = vpop.permute.xlu1 %915  ;;  %v3379_v60 = vstv %s2468_s29  ;;  %s2445_s29 = sld [smem:[#allocation6 + $0x5f]] }
 0x11b   : > { %v3285_v30 = vpop.permute.xlu0 %917  ;;  %v2025_v1 = vmul.f32 %v3379_v60, %v2976_v56 }
 0x11c   : > { %4260 = vst [vmem:[#allocation40_spill] sm:$0xff] %v3285_v30  ;;  %1596 = vrot.lane.b32.xlu1 %v1589_v16, %s4232_s21  ;;  %v521_v16 = vmul.f32 %v520_v50, %v516_v62  ;;  %v2001_v30 = vmul.f32 %v3292_v46, %v2972_v53 }
 0x11e   : > { %v3294_v47 = vpop.permute.xlu1 %943  ;;  %v522_v50 = vsel %vm505_vm1, %v521_v16, 0.0  ;;  %vm1463_vm1 = vcmask 1022976  }
 0x11f   : > { %v3297_v57 = vpop.permute.xlu0 %945 }
 0x120   : > { %1801 = vrot.lane.b32.xlu1 %v1795_v34, %s4231_s23  ;;  %v3317_v34 = vstv %s2428_s26  ;;  %s2456_s26 = sld [smem:[#allocation6 + $0x52]] }
 0x121   : > { %v1396_v5 = vmul.f32 %v3317_v34, %v2962_v43 }
 0x122   : > { %v3307_v13 = vpop.permute.xlu1 %947 }
 0x123   : > { %4261 = vst [vmem:[#allocation41_spill] sm:$0xff] %v3307_v13  ;;  %v3309_v18 = vpop.permute.xlu0 %973  ;;  %v1404_v16 = vadd.f32 %v1401_v6, %v1396_v5  ;;  %v3353_v5 = vstv %s2455_s17  ;;  %s2431_s17 = sld [smem:[#allocation6 + $0x5e]] }
 0x124   : > { %1805 = vrot.lane.b32.xlu1 %v1797_v3, %s4231_s23  ;;  %v1230_v3 = vrot.slane %v3315_v25, %v3023_v44  ;;  %v1817_v20 = vmul.f32 %v3353_v5, %v2962_v43  ;;  %v1819_v63 = vmul.f32 0.0, %v3353_v5 }
 0x126   : > { %v3321_v38 = vpop.permute.xlu1 %975  ;;  %v3355_v6 = vstv %s2456_s26  ;;  %s2444_s26 = sld [smem:[#allocation6 + $0x2e]] }
 0x127   : > { %523 = vadd.xlane.f32.xlu0 %v522_v50  ;;  %v3324_v62 = vpop.permute.xlu0 %977  ;;  %v1403_v50 = vmul.f32 0.0, %v3319_v36  ;;  %v1824_v12 = vmul.f32 0.0, %v3355_v6 }
 0x128   : > { %4262 = vst [vmem:[#allocation42_spill] sm:$0xff] %v3324_v62  ;;  %2010 = vrot.lane.b32.xlu1 %v2003_v23, %s4233_s16  ;;  %v1398_v23 = vmul.f32 0.0, %v3317_v34  ;;  %v1587_v62 = vmul.f32 0.0, %v3259_v54 }
 0x12a   : > { %v3333_v27 = vpop.permute.xlu1 %1060  ;;  %v1406_v0 = vadd.f32 %v1403_v50, %v1398_v23  ;;  %v1198_v50 = vmul.f32 0.0, %v3205_v59  ;;  %v1372_v59 = vmul.f32 %v3240_v28, %v2972_v53  ;;  %v1585_v28 = vmul.f32 %v3259_v54, %v2960_v42 }
 0x12b   : > { %4263 = vst [vmem:[#allocation43_spill] sm:$0xff] %v3333_v27  ;;  %v3335_v14 = vpop.permute.xlu0 %1062  ;;  %v1590_v54 = vadd.f32 %v1587_v62, %v1582_v31  ;;  %v1999_v31 = vmul.f32 0.0, %v3292_v46 }
 0x12c   : > { %1235 = vrot.lane.b32.xlu1 %v1230_v3, %s2756_s27  ;;  %v1616_v3 = vmul.f32 %v3342_v49, %v2972_v53 }
 0x12e   : > { %v3344_v35 = vpop.permute.xlu1 %1064  ;;  %v1619_v23 = vadd.f32 %v1616_v3, %v1611_v2  ;;  %v1206_v2 = vadd.f32 %v1203_v22, %v1198_v50  ;;  %v3381_v3 = vstv %s2469_s28  ;;  %v1580_v22 = vmul.f32 %v3257_v52, %v2962_v43  ;;  %s2457_s28 = sld [smem:[#allocation6 + $0x28]] }
 0x12f   : > { %v3346_v61 = vpop.permute.xlu0 %1090  ;;  %v3397_v50 = vstv %s2430_s22  ;;  %s2458_s22 = sld [smem:[#allocation6 + $0x59]]  ;;  %v1793_v52 = vmul.f32 %v3272_v8, %v2972_v53 }
 0x130   : > { %4264 = vst [vmem:[#allocation44_spill] sm:$0xff] %v3346_v61  ;;  %1410 = vrot.lane.b32.xlu1 %v1404_v16, %s4265_s14  ;;  %v1822_v16 = vmul.f32 %v3355_v6, %v2960_v42  ;;  %v1588_v4 = vadd.f32 %v1585_v28, %v1580_v22  ;;  %v3425_v22 = vstv %s2444_s26  ;;  %v3427_v28 = vstv %s2445_s29  ;;  %s2471_s26 = sld [smem:[#allocation6 + $0x53]] }
 0x131   : > { %v1646_v8 = vmul.f32 %v3427_v28, %v2972_v53  ;;  %s2459_s29 = sld [smem:[#allocation6 + $0x2f]] }
 0x132   : > { %v3357_v37 = vpop.permute.xlu1 %1092  ;;  %v1825_v51 = vadd.f32 %v1822_v16, %v1817_v20  ;;  %v1827_v16 = vadd.f32 %v1824_v12, %v1819_v63 }
 0x133   : > { %v3359_v48 = vpop.permute.xlu0 %1094 }
 0x134   : > { %1414 = vrot.lane.b32.xlu1 %v1406_v0, %s4265_s14  ;;  %v1367_v0 = vmul.f32 %v3238_v26, %v2976_v56  ;;  %v2030_v26 = vmul.f32 %v3381_v3, %v2972_v53  ;;  %v3441_v62 = vstv %s2457_s28  ;;  %s2460_s28 = sld [smem:[#allocation6 + $0x60]] }
 0x136   : > { %v3368_v11 = vpop.permute.xlu1 %1120 }
 0x137   : > { %4266 = vst [vmem:[#allocation45_spill] sm:$0xff] %v3368_v11  ;;  %v3370_v19 = vpop.permute.xlu0 %1122  ;;  %v1823_v11 = vmul.f32 %v3355_v6, %v2972_v53 }
 0x138   : > { %1626 = vrot.lane.b32.xlu1 %v1619_v23, %s4265_s14  ;;  %v1375_v23 = vadd.f32 %v1372_v59, %v1367_v0  ;;  %v2033_v0 = vadd.f32 %v2030_v26, %v2025_v1  ;;  %v1426_v59 = vmul.f32 %v3397_v50, %v2962_v43  ;;  %v1428_v1 = vmul.f32 0.0, %v3397_v50 }
 0x13a   : > { %v3383_v39 = vpop.permute.xlu1 %1124 }
 0x13b   : > { %v3385_v20 = vpop.permute.xlu0 %1297 }
 0x13c   : > { %1831 = vrot.lane.b32.xlu1 %v1825_v51, %s4232_s21  ;;  %v3399_v51 = vstv %s2431_s17  ;;  %s2470_s17 = sld [smem:[#allocation6 + $0x22]] }
 0x13d   : > { %1214 = vrot.lane.b32.xlu0 %v1206_v2, %s4256_s24  ;;  %v1431_v2 = vmul.f32 %v3399_v51, %v2960_v42  ;;  %v1433_v26 = vmul.f32 0.0, %v3399_v51 }
 0x13e   : > { %v3401_v12 = vpop.permute.xlu1 %1299 }
 0x13f   : > { %v3403_v63 = vpop.permute.xlu0 %1301 }
 0x140   : > { %4267 = vst [vmem:[#allocation46_spill] sm:$0xff] %v3403_v63  ;;  %1835 = vrot.lane.b32.xlu1 %v1827_v16, %s4232_s21  ;;  %v1434_v16 = vadd.f32 %v1431_v2, %v1426_v59  ;;  %v3443_v2 = vstv %s2458_s22  ;;  %s3492_s22 = sld [smem:[#allocation6 + $0x29]] }
 0x141   : > { %1382 = vrot.lane.b32.xlu0 %v1375_v23, %s4232_s21  ;;  %v1788_v23 = vmul.f32 %v3270_v7, %v2976_v56  ;;  %v1641_v7 = vmul.f32 %v3425_v22, %v2976_v56 }
 0x142   : > { %v3413_v13 = vpop.permute.xlu1 %1504 }
 0x143   : > { %4268 = vst [vmem:[#allocation47_spill] sm:$0xff] %v3413_v13  ;;  %v3415_v63 = vpop.permute.xlu0 %1506  ;;  %v1796_v59 = vadd.f32 %v1793_v52, %v1788_v23  ;;  %v1847_v23 = vmul.f32 %v3441_v62, %v2962_v43  ;;  %v1852_v52 = vmul.f32 %v3443_v2, %v2960_v42 }
 0x144   : > { %4269 = vst [vmem:[#allocation48_spill] sm:$0xff] %v3415_v63  ;;  %2040 = vrot.lane.b32.xlu1 %v2033_v0, %s4231_s23  ;;  %v1436_v0 = vadd.f32 %v1433_v26, %v1428_v1  ;;  %v1649_v26 = vadd.f32 %v1646_v8, %v1641_v7  ;;  %v1854_v7 = vmul.f32 0.0, %v3443_v2 }
 0x145   : > { %1594 = vrot.lane.b32.xlu0 %v1588_v4, %s4232_s21  ;;  %v1994_v4 = vmul.f32 0.0, %v3290_v41  ;;  %v1855_v8 = vadd.f32 %v1852_v52, %v1847_v23  ;;  %v1234_v52 = vrot.slane %v3315_v25, %v3011_v33  ;;  %v1610_v25 = vmul.f32 %v3340_v10, %v2962_v43 }
 0x146   : > { %v3429_v13 = vpop.permute.xlu1 %1508 }
 0x147   : > { %4270 = vst [vmem:[#allocation49_spill] sm:$0xff] %v3429_v13  ;;  %v3431_v63 = vpop.permute.xlu0 %1150  ;;  %v1996_v13 = vmul.f32 %v3290_v41, %v2976_v56  ;;  %v3469_v41 = vstv %s2471_s26  ;;  %s2757_s26 = smov 81  }
 0x148   : > { %1440 = vrot.lane.b32.xlu1 %v1434_v16, %s4256_s24  ;;  %v2060_v23 = vmul.f32 %v3469_v41, %v2972_v53 }
 0x149   : > { %1598 = vrot.lane.b32.xlu0 %v1590_v54, %s4232_s21  ;;  %v2002_v54 = vadd.f32 %v1999_v31, %v1994_v4  ;;  %v3467_v4 = vstv %s2470_s17  ;;  %s3531_s17 = sld [smem:[#allocation6 + $0x32]] }
 0x14a   : > { %v3445_v1 = vpop.permute.xlu1 %1152 }
 0x14b   : > { %v3447_v16 = vpop.permute.xlu0 %1154 }
 0x14c   : > { %4271 = vst [vmem:[#allocation50_spill] sm:$0xff] %v3447_v16  ;;  %1444 = vrot.lane.b32.xlu1 %v1436_v0, %s4256_s24  ;;  %v1849_v0 = vmul.f32 0.0, %v3441_v62 }
 0x14d   : > { %1803 = vrot.lane.b32.xlu0 %v1796_v59, %s4231_s23  ;;  %v2004_v59 = vadd.f32 %v2001_v30, %v1996_v13  ;;  %v1397_v30 = vmul.f32 %v3317_v34, %v2976_v56  ;;  %v1402_v13 = vmul.f32 %v3319_v36, %v2972_v53  ;;  %v3498_v34 = vld [vmem:[%s4155_s6 + $0x4] ss:$8 sm:$0x3]  ;;  %v1615_v36 = vmul.f32 %v3342_v49, %v2960_v42 }
 0x14e   : > { %v3459_v55 = vpop.permute.xlu1 %1327  ;;  %v1857_v32 = vadd.f32 %v1854_v7, %v1849_v0  ;;  %4278 = vst [vmem:[#allocation57_spill] sm:$0xff] %v3498_v34 }
 0x14f   : > { %4272 = vst [vmem:[#allocation51_spill] sm:$0xff] %v3459_v55  ;;  %v3461_v16 = vpop.permute.xlu0 %1329  ;;  %v3616_v55 = vstv %s3555_s2  ;;  %s2765_s2 = smov 123  }
 0x150   : > { %4273 = vst [vmem:[#allocation52_spill] sm:$0xff] %v3461_v16  ;;  %1656 = vrot.lane.b32.xlu1 %v1649_v26, %s4256_s24  ;;  %v2055_v26 = vmul.f32 %v3467_v4, %v2976_v56  ;;  %4292 = vst [vmem:[#allocation71_spill] sm:$0xff] %v3616_v55 }
 0x151   : > { %2008 = vrot.lane.b32.xlu0 %v2002_v54, %s4233_s16 }
 0x152   : > { %v3471_v46 = vpop.permute.xlu1 %1331  ;;  %v2063_v7 = vadd.f32 %v2060_v23, %v2055_v26 }
 0x153   : > { %4274 = vst [vmem:[#allocation53_spill] sm:$0xff] %v3471_v46  ;;  %v3473_v31 = vpop.permute.xlu0 %1534 }
 0x154   : > { %4275 = vst [vmem:[#allocation54_spill] sm:$0xff] %v3473_v31  ;;  %1861 = vrot.lane.b32.xlu1 %v1855_v8, %s4265_s14  ;;  %v1405_v8 = vadd.f32 %v1402_v13, %v1397_v30  ;;  %v1674_v13 = vrot.slane %v3498_v34, %v3023_v44  ;;  %v2031_v34 = vmul.f32 0.0, %v3381_v3 }
 0x155   : > { %2012 = vrot.lane.b32.xlu0 %v2004_v59, %s4233_s16  ;;  %v3504_v59 = vstv %s2459_s29  ;;  %s3508_s16 = sld [smem:[#allocation6 + $0x5a]] }
 0x156   : > { %v3487_v54 = vpop.permute.xlu1 %1536  ;;  %4279 = vst [vmem:[#allocation58_spill] sm:$0xff] %v3504_v59  ;;  %s3522_s29 = sld [smem:[#allocation6 + $0x5]] }
 0x157   : > { %4276 = vst [vmem:[#allocation55_spill] sm:$0xff] %v3487_v54  ;;  %v3489_v0 = vpop.permute.xlu0 %1538  ;;  %v1618_v54 = vadd.f32 %v1615_v36, %v1610_v25 }
 0x158   : > { %4277 = vst [vmem:[#allocation56_spill] sm:$0xff] %v3489_v0  ;;  %1865 = vrot.lane.b32.xlu1 %v1857_v32, %s4265_s14  ;;  %v3506_v32 = vstv %s2460_s28  ;;  %v1617_v0 = vmul.f32 0.0, %v3342_v49  ;;  %s3527_s28 = sld [smem:[#allocation6 + $0x36]] }
 0x159   : > { %1237 = vrot.lane.b32.xlu0 %v1234_v52, %s2756_s27  ;;  %4280 = vst [vmem:[#allocation59_spill] sm:$0xff] %v3506_v32  ;;  %s3510_s27 = sld [smem:[#allocation6 + $0x1]]  ;;  %v1877_v52 = vmul.f32 %v3504_v59, %v2962_v43  ;;  %v1882_v31 = vmul.f32 %v3506_v32, %v2960_v42  ;;  %v1884_v25 = vmul.f32 0.0, %v3506_v32 }
 0x15a   : > { %v1742_v26 = vpop.permute.xlu1 %1741 }
 0x15b   : > { %v1744_v23 = vpop.permute.xlu0 %1743  ;;  %v1885_v49 = vadd.f32 %v1882_v31, %v1877_v52  ;;  %v3553_v61 = vstv %s3508_s16  ;;  %s3588_s16 = sld [smem:[#allocation6 + $0x33]] }
 0x15c   : > { %v3513_v30 = vsel %vm602_vm2, %v1742_v26, %v1744_v23  ;;  %2070 = vrot.lane.b32.xlu1 %v2063_v7, %s4232_s21  ;;  %v1612_v26 = vmul.f32 0.0, %v3340_v10  ;;  %v3543_v10 = vstv %s3492_s22  ;;  %4283 = vst [vmem:[#allocation62_spill] sm:$0xff] %v3553_v61  ;;  %v2090_v52 = vmul.f32 %v3553_v61, %v2972_v53  ;;  %s3577_s22 = sld [smem:[#allocation6 + $0x2]] }
 0x15d   : > { %1412 = vrot.lane.b32.xlu0 %v1405_v8, %s4265_s14  ;;  %v1879_v8 = vmul.f32 0.0, %v3504_v59  ;;  %4282 = vst [vmem:[#allocation61_spill] sm:$0xff] %v3543_v10  ;;  %v3608_v59 = vld [vmem:[%s4155_s6 + $0x5] ss:$8 sm:$0x3] }
 0x15e   : > { %v3529_v7 = vpop.permute.xlu1 %1745  ;;  %v1620_v36 = vadd.f32 %v1617_v0, %v1612_v26  ;;  %v2024_v26 = vmul.f32 %v3379_v60, %v2962_v43  ;;  %4291 = vst [vmem:[#allocation70_spill] sm:$0xff] %v3608_v59 }
 0x15f   : > { %v3535_v46 = vsel %vm602_vm2, %v1744_v23, %v3529_v7  ;;  %v3537_v17 = vpop.permute.xlu0 %1180  ;;  %v1818_v23 = vmul.f32 %v3353_v5, %v2976_v56  ;;  %v1887_v0 = vadd.f32 %v1884_v25, %v1879_v8  ;;  %v2085_v5 = vmul.f32 %v3543_v10, %v2976_v56 }
 0x160   : > { %4281 = vst [vmem:[#allocation60_spill] sm:$0xff] %v3537_v17  ;;  %1679 = vrot.lane.b32.xlu1 %v1674_v13, %s2757_s26  ;;  %v3575_v25 = vstv %s3510_s27  ;;  %s3596_s27 = sld [smem:[#allocation6 + $0x3]] }
 0x161   : > { %1624 = vrot.lane.b32.xlu0 %v1618_v54, %s4265_s14  ;;  %v1826_v8 = vadd.f32 %v1823_v11, %v1818_v23  ;;  %4286 = vst [vmem:[#allocation65_spill] sm:$0xff] %v3575_v25  ;;  %v794_v27 = vmul.f32 %v3575_v25, %v2962_v43  ;;  %v2093_v25 = vadd.f32 %v2090_v52, %v2085_v5  ;;  %v3646_v16 = vstv %s3588_s16  ;;  %s2760_s16 = smov 127  }
 0x162   : > { %v1183_v31 = vpop.permute.xlu1 %1182 }
 0x163   : > { %v3559_v13 = vsel %vm726_vm3, %v3537_v17, %v1183_v31  ;;  %v1185_v54 = vpop.permute.xlu0 %1184  ;;  %v2029_v17 = vmul.f32 %v3381_v3, %v2960_v42 }
 0x164   : > { %4284 = vst [vmem:[#allocation63_spill] sm:$0xff] %v3559_v13  ;;  %v3564_v6 = vsel %vm726_vm3, %v1183_v31, %v1185_v54  ;;  %1891 = vrot.lane.b32.xlu1 %v1885_v49, %s4256_s24  ;;  %v1710_v31 = vstv %s3522_s29  ;;  %v1715_v54 = vstv %s3527_s28  ;;  %v3613_v13 = vstv %s3545_s0  ;;  %s2758_s0 = smov 82   ;;  %s455_s29 = sld [smem:[#allocation7]] }
 0x165   : > { %4285 = vst [vmem:[#allocation64_spill] sm:$0xff] %v3564_v6  ;;  %1628 = vrot.lane.b32.xlu0 %v1620_v36, %s4265_s14  ;;  %v3584_v6 = vstv %s3531_s17  ;;  %v1713_v11 = vmul.f32 %v1710_v31, %v2976_v56  ;;  %v1718_v36 = vmul.f32 %v1715_v54, %v2972_v53  ;;  %v2032_v32 = vadd.f32 %v2029_v17, %v2024_v26  ;;  %s3618_s17 = sld [smem:[#allocation6 + $0x34]]  ;;  %s363_s28 = sand.u32 1, %s2735_s10  }
 0x166   : > { %v3581_v49 = vpop.permute.xlu1 %1353  ;;  %4288 = vst [vmem:[#allocation67_spill] sm:$0xff] %v3584_v6  ;;  %v799_v61 = vmul.f32 %v3584_v6, %v2960_v42  ;;  %v2026_v6 = vmul.f32 0.0, %v3379_v60  ;;  %v1716_v5 = vmul.f32 0.0, %v1715_v54  ;;  %v1712_v52 = vmul.f32 %v1710_v31, %v2962_v43 }
 0x167   : > { %4287 = vst [vmem:[#allocation66_spill] sm:$0xff] %v3581_v49  ;;  %v3592_v23 = vpop.permute.xlu0 %1355  ;;  %v1717_v26 = vmul.f32 %v1715_v54, %v2960_v42 }
 0x168   : > { %4289 = vst [vmem:[#allocation68_spill] sm:$0xff] %v3592_v23  ;;  %v3601_v10 = vsel %vm664_vm4, %v3581_v49, %v3592_v23  ;;  %1895 = vrot.lane.b32.xlu1 %v1887_v0, %s4256_s24  ;;  %v1711_v0 = vmul.f32 0.0, %v1710_v31  ;;  %v1911_v23 = vrot.slane %v3608_v59, %v3023_v44  ;;  %v2119_v31 = vmul.f32 %v3616_v55, %v2960_v42 }
 0x169   : > { %4290 = vst [vmem:[#allocation69_spill] sm:$0xff] %v3601_v10  ;;  %1833 = vrot.lane.b32.xlu0 %v1826_v8, %s4232_s21  ;;  %v1721_v8 = vadd.f32 %v1718_v36, %v1713_v11  ;;  %v2114_v10 = vmul.f32 %v3613_v13, %v2962_v43  ;;  %v802_v49 = vadd.f32 %v799_v61, %v794_v27  ;;  %v3641_v36 = vstv %s3577_s22  ;;  %s2759_s22 = smov 83  }
 0x16a   : > { %v3620_v17 = vpop.permute.xlu1 %1564  ;;  %v2034_v54 = vadd.f32 %v2031_v34, %v2026_v6  ;;  %v1427_v11 = vmul.f32 %v3397_v50, %v2976_v56  ;;  %v2116_v44 = vmul.f32 0.0, %v3613_v13  ;;  %v2121_v59 = vmul.f32 0.0, %v3616_v55 }
 0x16b   : > { %4293 = vst [vmem:[#allocation72_spill] sm:$0xff] %v3620_v17  ;;  %v1567_v60 = vpop.permute.xlu0 %1566  ;;  %v1031_v27 = vmul.f32 %v3641_v36, %v2962_v43  ;;  %v1720_v61 = vadd.f32 %v1717_v26, %v1712_v52  ;;  %v1754_v6 = vadd.f32 %v3529_v7, %v1721_v8  ;;  %v1640_v26 = vmul.f32 %v3425_v22, %v2962_v43 }
 0x16c   : > { %v3626_v3 = vsel %vm664_vm4, %v3620_v17, %v1567_v60  ;;  %2100 = vrot.lane.b32.xlu1 %v2093_v25, %s4265_s14  ;;  %v1432_v25 = vmul.f32 %v3399_v51, %v2972_v53  ;;  %v1719_v17 = vadd.f32 %v1716_v5, %v1711_v0  ;;  %v1036_v51 = vmul.f32 %v3646_v16, %v2960_v42 }
 0x16d   : > { %4294 = vst [vmem:[#allocation73_spill] sm:$0xff] %v3626_v3  ;;  %2038 = vrot.lane.b32.xlu0 %v2032_v32, %s4231_s23  ;;  %v3656_v32 = vstv %s3596_s27  ;;  %v2122_v0 = vadd.f32 %v2119_v31, %v2114_v10  ;;  %v830_v5 = vsel %vm602_vm2, %v3229_v21, %v3242_v29  ;;  %v1642_v10 = vmul.f32 0.0, %v3425_v22  ;;  %s2463_s27 = sld [smem:[#allocation6 + $0x37]] }
 0x16e   : > { %v1569_v3 = vpop.permute.xlu1 %1568  ;;  %v1435_v52 = vadd.f32 %v1432_v25, %v1427_v11  ;;  %v1752_v7 = vadd.f32 %v3513_v30, %v1719_v17  ;;  %v860_v31 = vsel %vm633_vm5, %v3250_v40, %v3252_v45  ;;  %v835_v29 = vadd.f32 %v830_v5, %v802_v49 }
 0x16f   : > { %v3651_v50 = vsel %vm664_vm4, %v1567_v60, %v1569_v3  ;;  %v1772_v34 = vpop.permute.xlu0 %1771  ;;  %v1645_v60 = vmul.f32 %v3427_v28, %v2960_v42  ;;  %v3669_v3 = vstv %s3618_s17  ;;  %v1039_v49 = vadd.f32 %v1036_v51, %v1031_v27  ;;  %s2763_s17 = smov 125  }
 0x170   : > { %4295 = vst [vmem:[#allocation74_spill] sm:$0xff] %v3651_v50  ;;  %1916 = vrot.lane.b32.xlu1 %v1911_v23, %s2758_s0  ;;  %v2124_v23 = vadd.f32 %v2121_v59, %v2116_v44  ;;  %v1647_v50 = vmul.f32 0.0, %v3427_v28  ;;  %v890_v44 = vsel %vm664_vm4, %v3263_v58, %v3274_v9  ;;  %v3694_v28 = vld [vmem:[%s4155_s6 + $0x6] ss:$8 sm:$0x3]  ;;  %v865_v59 = vadd.f32 %v860_v31, %v835_v29 }
 0x171   : > { %2042 = vrot.lane.b32.xlu0 %v2034_v54, %s4231_s23  ;;  %v1753_v54 = vadd.f32 %v3535_v46, %v1720_v61  ;;  %v1648_v46 = vadd.f32 %v1645_v60, %v1640_v26  ;;  %v1272_v5 = vmul.f32 0.0, %v3669_v3  ;;  %v2152_v27 = vrot.slane %v3694_v28, %v3011_v33  ;;  %s2766_s23 = smov 122  }
 0x172   : > { %v1774_v8 = vpop.permute.xlu1 %1773  ;;  %v895_v26 = vadd.f32 %v890_v44, %v865_v59  ;;  %v1650_v29 = vadd.f32 %v1647_v50, %v1642_v10  ;;  %v949_v51 = vsel %vm726_vm3, %v3294_v47, %v3297_v57 }
 0x173   : > { %v1777_v11 = vsel %vm633_vm5, %v1772_v34, %v1774_v8  ;;  %v1776_v25 = vpop.permute.xlu0 %1775  ;;  %v919_v34 = vsel %vm695_vm6, %v3276_v15, %v3283_v24 }
 0x174   : > { %v3679_v55 = vadd.f32 %v1777_v11, %v1752_v7  ;;  %v1778_v30 = vsel %vm633_vm5, %v1774_v8, %v1776_v25  ;;  %v3682_v17 = vadd.f32 %v1776_v25, %v1754_v6  ;;  %2128 = vrot.lane.b32.xlu1 %v2122_v0, %s4256_s24  ;;  %v1067_v6 = vsel %vm602_vm2, %v3335_v14, %v3344_v35 }
 0x175   : > { %v3688_v22 = vadd.f32 %v1778_v30, %v1753_v54  ;;  %1442 = vrot.lane.b32.xlu0 %v1435_v52, %s4256_s24  ;;  %v1267_v0 = vmul.f32 0.0, %v3656_v32  ;;  %v1097_v7 = vsel %vm633_vm5, %v3357_v37, %v3359_v48  ;;  %v1848_v8 = vmul.f32 %v3441_v62, %v2976_v56 }
 0x176   : > { %v1979_v61 = vpop.permute.xlu1 %1978  ;;  %v925_v50 = vadd.f32 %v919_v34, %v895_v26  ;;  %v1072_v10 = vadd.f32 %v1067_v6, %v1039_v49  ;;  %v979_v54 = vsel %vm757_vm7, %v3309_v18, %v3321_v38  ;;  %v1127_v11 = vsel %vm664_vm4, %v3370_v19, %v3383_v39 }
 0x177   : > { %v1981_v52 = vpop.permute.xlu0 %1980  ;;  %v2054_v49 = vmul.f32 %v3467_v4, %v2962_v43 }
 0x178   : > { %v3705_v60 = vsel %vm602_vm2, %v1979_v61, %v1981_v52  ;;  %2132 = vrot.lane.b32.xlu1 %v2124_v23, %s4256_s24  ;;  %v1853_v23 = vmul.f32 %v3443_v2, %v2972_v53  ;;  %v955_v62 = vadd.f32 %v949_v51, %v925_v50  ;;  %v1102_v30 = vadd.f32 %v1097_v7, %v1072_v10 }
 0x179   : > { %1654 = vrot.lane.b32.xlu0 %v1648_v46, %s4256_s24  ;;  %v1275_v2 = vadd.f32 %v1272_v5, %v1267_v0  ;;  %v1156_v46 = vsel %vm695_vm6, %v3431_v63, %v3445_v1  ;;  %v2059_v61 = vmul.f32 %v3469_v41, %v2960_v42  ;;  %v1303_v0 = vsel %vm602_vm2, %v3385_v20, %v3401_v12  ;;  %v4300_v20 = vld [vmem:[#allocation63_spill] sm:$0xff] }
 0x17a   : > { %v3721_v31 = vpop.permute.xlu1 %1982  ;;  %v1856_v59 = vadd.f32 %v1853_v23, %v1848_v8  ;;  %v985_v34 = vadd.f32 %v979_v54, %v955_v62  ;;  %v1132_v6 = vadd.f32 %v1127_v11, %v1102_v30  ;;  %v2056_v50 = vmul.f32 0.0, %v3467_v4 }
 0x17b   : > { %4296 = vst [vmem:[#allocation75_spill] sm:$0xff] %v3721_v31  ;;  %v3731_v25 = vsel %vm602_vm2, %v1981_v52, %v3721_v31  ;;  %v3733_v44 = vpop.permute.xlu0 %998  ;;  %v1308_v8 = vadd.f32 %v1303_v0, %v1275_v2  ;;  %v2062_v23 = vadd.f32 %v2059_v61, %v2054_v49  ;;  %v2061_v10 = vmul.f32 0.0, %v3469_v41  ;;  %v4305_v0 = vld [vmem:[#allocation58_spill] sm:$0xff] }
 0x17c   : > { %4297 = vst [vmem:[#allocation76_spill] sm:$0xff] %v3731_v25  ;;  %2155 = vrot.lane.b32.xlu1 %v2152_v27, %s2759_s22  ;;  %v1162_v26 = vadd.f32 %v1156_v46, %v1132_v6  ;;  %v4299_v27 = vld [vmem:[#allocation51_spill] sm:$0xff] }
 0x17d   : > { %1658 = vrot.lane.b32.xlu0 %v1650_v29, %s4256_s24  ;;  %v4298_v29 = vld [vmem:[#allocation52_spill] sm:$0xff]  ;;  %v2064_v4 = vadd.f32 %v2061_v10, %v2056_v50  ;;  %v4307_v50 = vld [vmem:[#allocation61_spill] sm:$0xff] }
 0x17e   : > { %v3747_v5 = vpop.permute.xlu1 %1000  ;;  %v1333_v51 = vsel %vm633_vm5, %v4299_v27, %v4298_v29  ;;  %v1192_v54 = vadd.f32 %v4300_v20, %v1162_v26  ;;  %v4306_v26 = vld [vmem:[#allocation59_spill] sm:$0xff]  ;;  %v2084_v10 = vmul.f32 %v4307_v50, %v2962_v43  ;;  %v4308_v20 = vld [vmem:[#allocation62_spill] sm:$0xff] }
 0x17f   : > { %v1003_v52 = vsel %vm1002_vm8, %v3733_v44, %v3747_v5  ;;  %v1211_v11 = vpop.permute.xlu0 %1210  ;;  %v1338_v30 = vadd.f32 %v1333_v51, %v1308_v8  ;;  %v1883_v27 = vmul.f32 %v4306_v26, %v2972_v53  ;;  %v1035_v8 = vmul.f32 0.0, %v3646_v16 }
 0x180   : > { %v1008_v7 = vmul.f32 %v1003_v52, %v985_v34  ;;  %v4304_v34 = vld [vmem:[#allocation57_spill] sm:$0xff]  ;;  %v1878_v52 = vmul.f32 %v4305_v0, %v2976_v56  ;;  %v4311_v0 = vld [vmem:[#allocation43_spill] sm:$0xff] }
 0x181   : > { %1863 = vrot.lane.b32.xlu0 %v1856_v59, %s4265_s14  ;;  %v4302_v59 = vld [vmem:[#allocation66_spill] sm:$0xff]  ;;  %v1678_v6 = vrot.slane %v4304_v34, %v3011_v33  ;;  %v1066_v26 = vsel %vm602_vm2, %v4311_v0, %v3335_v14 }
 0x182   : > { %v3758_v62 = vpop.permute.xlu1 %1212  ;;  %1015 = vrot.lane.b32.xlu1 %v1008_v7, %s2760_s16  ;;  %v1361_v49 = vadd.f32 %v4302_v59, %v1338_v30  ;;  %v1030_v7 = vmul.f32 0.0, %v3641_v36  ;;  %v4309_v59 = vld [vmem:[#allocation65_spill] sm:$0xff] }
 0x183   : > { %v1216_v46 = vsel %vm757_vm7, %v1211_v11, %v3758_v62  ;;  %v795_v14 = vmul.f32 %v4309_v59, %v2976_v56 }
 0x184   : > { %v3763_v2 = vadd.f32 %v1216_v46, %v1192_v54  ;;  %v2089_v54 = vmul.f32 %v4308_v20, %v2960_v42  ;;  %v1038_v46 = vadd.f32 %v1035_v8, %v1030_v7 }
 0x185   : > { %2068 = vrot.lane.b32.xlu0 %v2062_v23, %s4232_s21  ;;  %v1886_v23 = vadd.f32 %v1883_v27, %v1878_v52  ;;  %v2086_v52 = vmul.f32 0.0, %v4307_v50  ;;  %v2091_v27 = vmul.f32 0.0, %v4308_v20  ;;  %v4313_v50 = vld [vmem:[#allocation45_spill] sm:$0xff] }
 0x186   : > { %4301 = vst [vmem:[#allocation52_spill] sm:$0xff] %v3763_v2  ;;  %v3767_v41 = vpop.permute.xlu1 %1380  ;;  %v1071_v8 = vadd.f32 %v1066_v26, %v1038_v46  ;;  %v4317_v26 = vld [vmem:[#allocation71_spill] sm:$0xff] }
 0x187   : > { %v3770_v61 = vadd.f32 %v3767_v41, %v1361_v49  ;;  %v793_v49 = vmul.f32 0.0, %v4309_v59 }
 0x189   : > { %4303 = vst [vmem:[#allocation51_spill] sm:$0xff] %v3770_v61  ;;  %2072 = vrot.lane.b32.xlu0 %v2064_v4, %s4232_s21  ;;  %v4310_v4 = vld [vmem:[#allocation67_spill] sm:$0xff]  ;;  %v4312_v61 = vld [vmem:[#allocation44_spill] sm:$0xff]  ;;  %s2761_s21 = smov 126  }
 0x18a   : > { %v3779_v51 = vpop.permute.xlu1 %1384  ;;  %v798_v34 = vmul.f32 0.0, %v4310_v4  ;;  %v1096_v2 = vsel %vm633_vm5, %v4312_v61, %v3357_v37  ;;  %v4314_v37 = vld [vmem:[#allocation36_spill] sm:$0xff] }
 0x18b   : > { %v829_v61 = vsel %vm602_vm2, %v4314_v37, %v3229_v21  ;;  %v1101_v20 = vadd.f32 %v1096_v2, %v1071_v8  ;;  %v2115_v2 = vmul.f32 %v3613_v13, %v2976_v56  ;;  %v4319_v8 = vld [vmem:[#allocation60_spill] sm:$0xff] }
 0x18c   : > { %v801_v31 = vadd.f32 %v798_v34, %v793_v49  ;;  %v4315_v34 = vld [vmem:[#allocation38_spill] sm:$0xff] }
 0x18d   : > { %1681 = vrot.lane.b32.xlu0 %v1678_v6, %s2757_s26  ;;  %v2092_v6 = vadd.f32 %v2089_v54, %v2084_v10  ;;  %v1126_v10 = vsel %vm664_vm4, %v4313_v50, %v3370_v19  ;;  %v4316_v19 = vld [vmem:[#allocation70_spill] sm:$0xff]  ;;  %s2462_s26 = sld [smem:[#allocation6 + $0x6]] }
 0x18e   : > { %v3788_v30 = vpop.permute.xlu1 %1596  ;;  %v1131_v46 = vadd.f32 %v1126_v10, %v1101_v20  ;;  %v834_v49 = vadd.f32 %v829_v61, %v801_v31  ;;  %v1915_v21 = vrot.slane %v4316_v19, %v3011_v33  ;;  %v4318_v31 = vld [vmem:[#allocation39_spill] sm:$0xff] }
 0x18f   : > { %v4321_v20 = vld [vmem:[#allocation15_spill] sm:$0xff] }
 0x190   : > { %v1161_v0 = vadd.f32 %v3431_v63, %v1131_v46 }
 0x191   : > { %1893 = vrot.lane.b32.xlu0 %v1886_v23, %s4256_s24  ;;  %v800_v23 = vmul.f32 %v4310_v4, %v2972_v53  ;;  %v859_v4 = vsel %vm633_vm5, %v4315_v34, %v3250_v40  ;;  %v4323_v34 = vld [vmem:[#allocation41_spill] sm:$0xff] }
 0x192   : > { %v3801_v7 = vpop.permute.xlu1 %1801  ;;  %v864_v40 = vadd.f32 %v859_v4, %v834_v49  ;;  %v1191_v63 = vadd.f32 %v4319_v8, %v1161_v0  ;;  %v1032_v49 = vmul.f32 %v3641_v36, %v2976_v56  ;;  %v950_v4 = vsel %vm726_vm3, %v3297_v57, %v4323_v34 }
 0x193   : > { %v3805_v25 = vadd.f32 %v3801_v7, %v3679_v55  ;;  %v2094_v55 = vadd.f32 %v2091_v27, %v2086_v52  ;;  %v803_v59 = vadd.f32 %v800_v23, %v795_v14  ;;  %v889_v52 = vsel %vm664_vm4, %v4318_v31, %v3263_v58  ;;  %v4320_v14 = vld [vmem:[#allocation37_spill] sm:$0xff] }
 0x194   : > { %v894_v50 = vadd.f32 %v889_v52, %v864_v40  ;;  %v1221_v10 = vadd.f32 %v1211_v11, %v1191_v63  ;;  %v4322_v11 = vld [vmem:[#allocation40_spill] sm:$0xff]  ;;  %v4325_v63 = vld [vmem:[#allocation50_spill] sm:$0xff] }
 0x195   : > { %2098 = vrot.lane.b32.xlu0 %v2092_v6, %s4265_s14  ;;  %v2120_v6 = vmul.f32 %v4317_v26, %v2972_v53  ;;  %v836_v23 = vadd.f32 %v4320_v14, %v803_v59  ;;  %v920_v46 = vsel %vm695_vm6, %v3283_v24, %v4322_v11  ;;  %v4324_v24 = vld [vmem:[#allocation42_spill] sm:$0xff] }
 0x196   : > { %v3818_v54 = vpop.permute.xlu1 %1805  ;;  %v924_v58 = vadd.f32 %v3276_v15, %v894_v50  ;;  %v980_v36 = vsel %vm757_vm7, %v3321_v38, %v4324_v24  ;;  %v1273_v38 = vmul.f32 %v3669_v3, %v2960_v42 }
 0x197   : > { %v2123_v33 = vadd.f32 %v2120_v6, %v2115_v2  ;;  %v866_v61 = vadd.f32 %v3252_v45, %v836_v23  ;;  %v1037_v45 = vmul.f32 %v3646_v16, %v2972_v53  ;;  %v1268_v2 = vmul.f32 %v3656_v32, %v2962_v43 }
 0x198   : > { %v954_v59 = vadd.f32 %v3294_v47, %v924_v58  ;;  %v1274_v6 = vmul.f32 %v3669_v3, %v2972_v53 }
 0x199   : > { %2102 = vrot.lane.b32.xlu0 %v2094_v55, %s4265_s14  ;;  %v2148_v55 = vrot.slane %v3694_v28, %v4321_v20  ;;  %v896_v15 = vadd.f32 %v3274_v9, %v866_v61  ;;  %v1040_v19 = vadd.f32 %v1037_v45, %v1032_v49  ;;  %s2433_s14 = sld [smem:[#allocation6 + $0x35]]  ;;  %v1276_v52 = vadd.f32 %v1273_v38, %v1268_v2  ;;  %v4328_v49 = vld [vmem:[#allocation64_spill] sm:$0xff] }
 0x19a   : > { %v3834_v27 = vpop.permute.xlu1 %2010  ;;  %v984_v28 = vadd.f32 %v3309_v18, %v954_v59  ;;  %v4330_v59 = vld [vmem:[#allocation48_spill] sm:$0xff] }
 0x19b   : > { %v926_v0 = vadd.f32 %v920_v46, %v896_v15  ;;  %v1073_v18 = vadd.f32 %v3344_v35, %v1040_v19  ;;  %v4329_v15 = vld [vmem:[#allocation49_spill] sm:$0xff]  ;;  %v4332_v19 = vld [vmem:[#allocation55_spill] sm:$0xff] }
 0x19c   : > { %v1007_v9 = vmul.f32 %v3733_v44, %v984_v28  ;;  %v1269_v44 = vmul.f32 %v3656_v32, %v2976_v56  ;;  %v1511_v34 = vsel %vm602_vm2, %v4330_v59, %v4329_v15 }
 0x19d   : > { %1918 = vrot.lane.b32.xlu0 %v1915_v21, %s2758_s0  ;;  %v956_v16 = vadd.f32 %v950_v4, %v926_v0  ;;  %v2762_v21 = vmov 0.0   ;;  %v1103_v35 = vadd.f32 %v3359_v48, %v1073_v18  ;;  %v4326_v48 = vld [vmem:[#allocation46_spill] sm:$0xff]  ;;  %v4334_v18 = vld [vmem:[#allocation68_spill] sm:$0xff]  ;;  %s2764_s0 = smov 124  }
 0x19e   : > { %v3839_v13 = vpop.permute.xlu1 %1235  ;;  %448 = vmatprep.mubr.f32.mxu0 %v2762_v21  ;;  %v1277_v14 = vadd.f32 %v1274_v6, %v1269_v44  ;;  %v4333_v21 = vld [vmem:[#allocation69_spill] sm:$0xff] }
 0x19f   : > { %v1244_v37 = vmul.f32 %v3839_v13, %v1221_v10  ;;  %v986_v57 = vadd.f32 %v980_v36, %v956_v16  ;;  %v3885_v8 = vstv %s2433_s14  ;;  %v1133_v32 = vadd.f32 %v3383_v39, %v1103_v35  ;;  %v4331_v36 = vld [vmem:[#allocation56_spill] sm:$0xff] }
 0x1a0   : > { %v1480_v23 = vmul.f32 %v3885_v8, %v2960_v42  ;;  %v1304_v10 = vsel %vm602_vm2, %v3401_v12, %v4326_v48  ;;  %v1310_v11 = vadd.f32 %v4326_v48, %v1277_v14  ;;  %v1541_v16 = vsel %vm633_vm5, %v4332_v19, %v4331_v36 }
 0x1a1   : > { %2130 = vrot.lane.b32.xlu0 %v2123_v33, %s4256_s24  ;;  %1250 = vrot.lane.b32.xlu1 %v1244_v37, %s2761_s21  ;;  %s2432_s24 = sld [smem:[#allocation6 + $0x4]]  ;;  %v1009_v26 = vmul.f32 %v3747_v5, %v986_v57  ;;  %v1157_v5 = vsel %vm695_vm6, %v3445_v1, %v4325_v63  ;;  %v1481_v1 = vmul.f32 %v3885_v8, %v2972_v53  ;;  %v4327_v37 = vld [vmem:[#allocation53_spill] sm:$0xff] }
 0x1a2   : > { %v3866_v47 = vpop.permute.xlu1 %1410  ;;  %v1163_v39 = vadd.f32 %v1157_v5, %v1133_v32  ;;  %v1334_v61 = vsel %vm633_vm5, %v4298_v29, %v4327_v37  ;;  %v1340_v28 = vadd.f32 %v4327_v37, %v1310_v11  ;;  %v4335_v5 = vld [vmem:[#allocation73_spill] sm:$0xff] }
 0x1a4   : > { %v1193_v45 = vadd.f32 %v4328_v49, %v1163_v39  ;;  %v1363_v2 = vadd.f32 %v4334_v18, %v1340_v28 }
 0x1a5   : > { %2153 = vrot.lane.b32.xlu0 %v2148_v55, %s2759_s22  ;;  %v1309_v55 = vadd.f32 %v1304_v10, %v1276_v52  ;;  %s564_s22 = sld [smem:[#allocation6]] }
 0x1a6   : > { %v3879_v31 = vpop.permute.xlu1 %1414 }
 0x1a7   : > { %v3883_v40 = vstv %s2432_s24  ;;  %v1339_v29 = vadd.f32 %v1334_v61, %v1309_v55  ;;  %s2245_s24 = scalar_lea.sflag [#allocation4], %s363_s28 }
 0x1a8   : > { %v1475_v3 = vmul.f32 %v3883_v40, %v2962_v43  ;;  %v1476_v33 = vmul.f32 %v3883_v40, %v2976_v56 }
 0x1a9   : > { %1013 = vrot.lane.b32.xlu0 %v1007_v9, %s2760_s16  ;;  %v1362_v57 = vadd.f32 %v4333_v21, %v1339_v29 }
 0x1aa   : > { %v3907_v58 = vpop.permute.xlu1 %1626  ;;  %v1483_v46 = vadd.f32 %v1480_v23, %v1475_v3  ;;  %v1484_v0 = vadd.f32 %v1481_v1, %v1476_v33  ;;  %v1947_v3 = vstv %s2462_s26  ;;  %v1952_v23 = vstv %s2463_s27  ;;  %v4336_v33 = vld [vmem:[#allocation74_spill] sm:$0xff]  ;;  %s2768_s26 = smov 51   ;;  %s2370_s27 = sld [smem:[#allocation7 + $0x1]] }
 0x1ab   : > { %v1948_v39 = vmul.f32 0.0, %v1947_v3  ;;  %v1953_v37 = vmul.f32 0.0, %v1952_v23  ;;  %v1955_v49 = vmul.f32 %v1952_v23, %v2972_v53 }
 0x1ac   : > { %v1516_v9 = vadd.f32 %v1511_v34, %v1483_v46  ;;  %v1517_v6 = vadd.f32 %v4329_v15, %v1484_v0  ;;  %v1950_v46 = vmul.f32 %v1947_v3, %v2976_v56  ;;  %v1954_v15 = vmul.f32 %v1952_v23, %v2960_v42  ;;  %v4339_v23 = vld [vmem:[#allocation52_spill] sm:$0xff] }
 0x1ad   : > { %1017 = vrot.lane.b32.xlu0 %v1009_v26, %s2760_s16  ;;  %s2375_s16 = sld [smem:[#allocation6 + $0x31]] }
 0x1ae   : > { %v3922_v26 = vpop.permute.xlu1 %1831  ;;  %v1546_v35 = vadd.f32 %v1541_v16, %v1516_v9  ;;  %v1547_v48 = vadd.f32 %v4331_v36, %v1517_v6  ;;  %v1958_v16 = vadd.f32 %v1955_v49, %v1950_v46 }
 0x1b0   : > { %v3895_v50 = vpop.xlane.xlu0 %523  ;;  %v1576_v32 = vadd.f32 %v4335_v5, %v1546_v35  ;;  %v1577_v1 = vadd.f32 %v4336_v33, %v1547_v48  ;;  %v4340_v48 = vld [vmem:[#allocation51_spill] sm:$0xff] }
 0x1b1   : > { %v1421_v33 = vadd.f32 %v3866_v47, %v4340_v48 }
 0x1b2   : > { %v1836_v10 = vpop.permute.xlu1 %1835 }
 0x1b4   : > { %v1215_v12 = vpop.permute.xlu0 %1214 }
 0x1b5   : > { %v1217_v4 = vsel %vm757_vm7, %v3758_v62, %v1215_v12  ;;  %v1949_v12 = vmul.f32 %v1947_v3, %v2962_v43 }
 0x1b6   : > { %v1223_v24 = vadd.f32 %v1217_v4, %v1193_v45  ;;  %v1956_v45 = vadd.f32 %v1953_v37, %v1948_v39  ;;  %v372_v4 = vld [vmem:[%s4150_s1] sm:$0xff]  ;;  %v2041_v0 = vpop.permute.xlu1 %2040 }
 0x1b7   : > { %2367 = vmatmul.mubr.msk.f32.vlgmr.msra.gmra.mxu0 %vm375_vm9, %v372_v4  ;;  %v1957_v21 = vadd.f32 %v1954_v15, %v1949_v12 }
 0x1b8   : > { %v1383_v38 = vpop.permute.xlu0 %1382  ;;  %v1989_v9 = vadd.f32 %v3705_v60, %v1956_v45 }
 0x1b9   : > { %v1386_v62 = vsel %vm695_vm6, %v3767_v41, %v1383_v38  ;;  %v1387_v44 = vsel %vm695_vm6, %v1383_v38, %v3779_v51  ;;  %v4337_v38 = vld [vmem:[#allocation75_spill] sm:$0xff] }
 0x1ba   : > { %v3929_v52 = vadd.f32 %v1386_v62, %v1362_v57  ;;  %v3931_v63 = vadd.f32 %v1387_v44, %v1363_v2  ;;  %v1441_v62 = vpop.permute.xlu1 %1440  ;;  %v4338_v44 = vld [vmem:[#allocation76_spill] sm:$0xff] }
 0x1bb   : > { %v1451_v39 = vadd.f32 %v1441_v62, %v1421_v33 }
 0x1bc   : > { %v3934_v14 = vpop.permute.xlu0 %1594 }
 0x1bd   : > { %v1600_v41 = vsel %vm695_vm6, %v3934_v14, %v3788_v30 }
 0x1be   : > { %v3940_v51 = vadd.f32 %v1600_v41, %v1576_v32  ;;  %v1445_v5 = vpop.permute.xlu1 %1444 }
 0x1c0   : > { %v1599_v61 = vpop.permute.xlu0 %1598 }
 0x1c1   : > { %v1601_v55 = vsel %vm695_vm6, %v3788_v30, %v1599_v61 }
 0x1c2   : > { %v3945_v11 = vadd.f32 %v1601_v55, %v1577_v1 }
 0x1c4   : > { %v1804_v34 = vpop.permute.xlu0 %1803 }
 0x1c5   : > { %v1807_v30 = vsel %vm664_vm4, %v3801_v7, %v1804_v34  ;;  %v1808_v29 = vsel %vm664_vm4, %v1804_v34, %v3818_v54  ;;  %v1991_v7 = vadd.f32 %v4337_v38, %v1958_v16  ;;  %v1990_v54 = vadd.f32 %v4338_v44, %v1957_v21  ;;  %v4342_v16 = vld [vmem:[#allocation54_spill] sm:$0xff]  ;;  %v4343_v44 = vld [vmem:[#allocation72_spill] sm:$0xff] }
 0x1c6   : > { %v1813_v28 = vadd.f32 %v1807_v30, %v3688_v22  ;;  %v1814_v36 = vadd.f32 %v1808_v29, %v3682_v17  ;;  %v4341_v30 = vld [vmem:[#allocation47_spill] sm:$0xff] }
 0x1c7   : > { %v1510_v29 = vsel %vm602_vm2, %v4341_v30, %v4330_v59 }
 0x1c8   : > { %v2009_v57 = vpop.permute.xlu0 %2008 }
 0x1c9   : > { %v2014_v18 = vsel %vm633_vm5, %v2009_v57, %v3834_v27 }
 0x1ca   : > { %v3963_v2 = vadd.f32 %v2014_v18, %v1989_v9 }
 0x1cc   : > { %v2013_v6 = vpop.permute.xlu0 %2012 }
 0x1cd   : > { %v2015_v22 = vsel %vm633_vm5, %v3834_v27, %v2013_v6  ;;  %v2021_v17 = vadd.f32 %v2013_v6, %v1991_v7  ;;  %v1657_v27 = vpop.permute.xlu1 %1656 }
 0x1ce   : > { %v2020_v35 = vadd.f32 %v2015_v22, %v1990_v54 }
 0x1d0   : > { %v1238_v60 = vpop.permute.xlu0 %1237 }
 0x1d1   : > { %v1240_v32 = vsel %vm1239_vm10, %v3839_v13, %v1238_v60  ;;  %v1246_v3 = vmul.f32 %v1238_v60, %v1223_v24  ;;  %v3976_v55 = vpop.permute.xlu1 %1861  ;;  %v1474_v13 = vmul.f32 0.0, %v3883_v40  ;;  %v1479_v24 = vmul.f32 0.0, %v3885_v8 }
 0x1d2   : > { %v1245_v41 = vmul.f32 %v1240_v32, %v4339_v23 }
 0x1d3   : > { %1254 = vrot.lane.b32.xlu1 %v1246_v3, %s2761_s21  ;;  %v1482_v34 = vadd.f32 %v1479_v24, %v1474_v13 }
 0x1d4   : > { %1252 = vrot.lane.b32.xlu0 %v1245_v41, %s2761_s21  ;;  %v1413_v1 = vpop.permute.xlu0 %1412  ;;  %s2374_s21 = sld [smem:[#allocation7 + $0x2]] }
 0x1d5   : > { %v3987_v4 = vpop.permute.xlu1 %1865  ;;  %v1416_v18 = vsel %vm726_vm3, %v3866_v47, %v1413_v1  ;;  %v1417_v59 = vsel %vm726_vm3, %v1413_v1, %v3879_v31 }
 0x1d6   : > { %v1423_v6 = vadd.f32 %v1417_v59, %v3931_v63 }
 0x1d8   : > { %1457 = vrot.lane.b32.xlu0 %v1451_v39, %s2763_s17  ;;  %v1625_v37 = vpop.permute.xlu0 %1624 }
 0x1d9   : > { %v4001_v57 = vpop.permute.xlu1 %2070  ;;  %v1630_v33 = vsel %vm726_vm3, %v1625_v37, %v3907_v58 }
 0x1dc   : > { %v1629_v61 = vpop.permute.xlu0 %1628 }
 0x1dd   : > { %v1680_v31 = vpop.permute.xlu1 %1679 }
 0x1e0   : > { %v1834_v46 = vpop.permute.xlu0 %1833 }
 0x1e1   : > { %v1837_v49 = vsel %vm695_vm6, %v3922_v26, %v1834_v46  ;;  %v1838_v45 = vsel %vm695_vm6, %v1834_v46, %v1836_v10  ;;  %v1540_v10 = vsel %vm633_vm5, %v4342_v16, %v4332_v19  ;;  %v1422_v19 = vadd.f32 %v1416_v18, %v3929_v52  ;;  %v1892_v63 = vpop.permute.xlu1 %1891 }
 0x1e2   : > { %v3983_v12 = vadd.f32 %v1837_v49, %v1813_v28  ;;  %v3985_v15 = vadd.f32 %v1838_v45, %v1814_v36  ;;  %v1515_v36 = vadd.f32 %v1510_v29, %v1482_v34  ;;  %v1636_v49 = vadd.f32 %v1630_v33, %v3940_v51 }
 0x1e3   : > { %v1842_v34 = vadd.f32 %v3922_v26, %v3805_v25 }
 0x1e4   : > { %v3992_v40 = vpop.permute.xlu0 %2038  ;;  %v1545_v21 = vadd.f32 %v1540_v10, %v1515_v36 }
 0x1e5   : > { %v2044_v8 = vsel %vm664_vm4, %v3992_v40, %v2041_v0  ;;  %v1896_v48 = vpop.permute.xlu1 %1895 }
 0x1e6   : > { %v3999_v28 = vadd.f32 %v2044_v8, %v2020_v35  ;;  %v1575_v54 = vadd.f32 %v4343_v44, %v1545_v21  ;;  %v2049_v44 = vadd.f32 %v3992_v40, %v3963_v2 }
 0x1e8   : > { %v2043_v9 = vpop.permute.xlu0 %2042  ;;  %v1605_v35 = vadd.f32 %v3934_v14, %v1575_v54 }
 0x1e9   : > { %v2045_v38 = vsel %vm664_vm4, %v2041_v0, %v2043_v9  ;;  %v2101_v24 = vpop.permute.xlu1 %2100 }
 0x1ea   : > { %v4008_v7 = vadd.f32 %v2045_v38, %v2021_v17  ;;  %v1635_v23 = vadd.f32 %v1625_v37, %v1605_v35 }
 0x1ec   : > { %v1443_v22 = vpop.permute.xlu0 %1442 }
 0x1ed   : > { %v1446_v60 = vsel %vm757_vm7, %v1441_v62, %v1443_v22  ;;  %v1447_v47 = vsel %vm757_vm7, %v1443_v22, %v1445_v5  ;;  %v1631_v5 = vsel %vm726_vm3, %v3907_v58, %v1629_v61  ;;  %v1872_v58 = vadd.f32 %v3976_v55, %v1842_v34  ;;  %v1917_v16 = vpop.permute.xlu1 %1916 }
 0x1ee   : > { %v1452_v32 = vadd.f32 %v1446_v60, %v1422_v19  ;;  %v1453_v3 = vadd.f32 %v1447_v47, %v1423_v6  ;;  %v1637_v13 = vadd.f32 %v1631_v5, %v3945_v11 }
 0x1ef   : > { %v1902_v11 = vadd.f32 %v1892_v63, %v1872_v58  ;;  %v4345_v58 = vld [vmem:[#allocation16_spill] sm:$0xff] }
 0x1f0   : > { %1461 = vrot.lane.b32.xlu0 %v1453_v3, %s2763_s17  ;;  %1459 = vrot.lane.b32.xlu1 %v1452_v32, %s2763_s17  ;;  %v1655_v0 = vpop.permute.xlu0 %1654  ;;  %s2362_s17 = sshll.u32 %s363_s28, 3 }
 0x1f1   : > { %v1665_v17 = vadd.f32 %v1655_v0, %v1635_v23  ;;  %v1660_v46 = vsel %vm757_vm7, %v1655_v0, %v1657_v27  ;;  %v2129_v26 = vpop.permute.xlu1 %2128 }
 0x1f2   : > { %v1666_v30 = vadd.f32 %v1660_v46, %v1636_v49 }
 0x1f3   : > { %v1688_v52 = vmul.f32 %v1680_v31, %v1665_v17 }
 0x1f4   : > { %v1659_v41 = vpop.permute.xlu0 %1658 }
 0x1f5   : > { %1694 = vrot.lane.b32.xlu1 %v1688_v52, %s2764_s0  ;;  %v1661_v1 = vsel %vm757_vm7, %v1657_v27, %v1659_v41  ;;  %v1925_v27 = vmul.f32 %v1917_v16, %v1902_v11  ;;  %v2133_v60 = vpop.permute.xlu1 %2132  ;;  %v4346_v11 = vld [vmem:[#allocation25_spill] sm:$0xff] }
 0x1f6   : > { %v1667_v45 = vadd.f32 %v1661_v1, %v1637_v13  ;;  %v565_v1 = vstv %s564_s22 }
 0x1f7   : > { %v566_v13 = vmul.f32 0.0, %v565_v1  ;;  %v568_v46 = vmul.f32 %v565_v1, %v2976_v56 }
 0x1f8   : > { %v1864_v14 = vpop.permute.xlu0 %1863 }
 0x1f9   : > { %v1868_v36 = vsel %vm726_vm3, %v1864_v14, %v3987_v4  ;;  %v1867_v25 = vsel %vm726_vm3, %v3976_v55, %v1864_v14  ;;  %v2156_v41 = vpop.permute.xlu1 %2155 }
 0x1fa   : > { %v1874_v18 = vadd.f32 %v1868_v36, %v3985_v15  ;;  %v1873_v38 = vadd.f32 %v1867_v25, %v3983_v12  ;;  %v4348_v36 = vld [vmem:[#allocation17_spill] sm:$0xff] }
 0x1fc   : > { %v2069_v62 = vpop.permute.xlu0 %2068 }
 0x1fd   : > { %v2074_v55 = vsel %vm695_vm6, %v2069_v62, %v4001_v57  ;;  %v2079_v6 = vadd.f32 %v2069_v62, %v2049_v44  ;;  %v4350_v44 = vld [vmem:[#allocation21_spill] sm:$0xff] }
 0x1fe   : > { %v2080_v2 = vadd.f32 %v2074_v55, %v3999_v28  ;;  %v4352_v55 = vld [vmem:[#allocation24_spill] sm:$0xff] }
 0x200   : > { %v2073_v39 = vpop.permute.xlu0 %2072 }
 0x201   : > { %v2075_v15 = vsel %vm695_vm6, %v4001_v57, %v2073_v39  ;;  %v570_v39 = vstv %s2375_s16 }
 0x202   : > { %v573_v49 = vmul.f32 %v570_v39, %v2972_v53  ;;  %v572_v34 = vmul.f32 %v570_v39, %v2960_v42  ;;  %v1016_v53 = vpop.permute.xlu1 %1015 }
 0x204   : > { %v1682_v61 = vpop.permute.xlu0 %1681 }
 0x205   : > { %v1684_v29 = vsel %vm1683_vm11, %v1680_v31, %v1682_v61  ;;  %v1690_v8 = vmul.f32 %v1682_v61, %v1667_v45  ;;  %v2081_v31 = vadd.f32 %v2075_v15, %v4008_v7  ;;  %v2767_v7 = vmov 0  }
 0x206   : > { %v1689_v37 = vmul.f32 %v1684_v29, %v1666_v30  ;;  %2579 = vset.pattern.permute.xlu1 %v2767_v7  ;;  %2580 = vset.pattern.permute.xlu0 %v2767_v7  ;;  %v567_v45 = vmul.f32 %v565_v1, %v2962_v43  ;;  %v576_v29 = vadd.f32 %v573_v49, %v568_v46  ;;  %v4347_v43 = vld [vmem:[#allocation20_spill] sm:$0xff]  ;;  %v4361_v1 = vld [vmem:[#allocation31_spill] sm:$0xff]  ;;  %v4362_v49 = vld [vmem:[#allocation34_spill] sm:$0xff] }
 0x207   : > { %1698 = vrot.lane.b32.xlu1 %v1690_v8, %s2764_s0  ;;  %v4344_v8 = vld [vmem:[#allocation19_spill] sm:$0xff]  ;;  %v634_v42 = vsel %vm633_vm5, %v4348_v36, %v4347_v43 }
 0x208   : > { %1696 = vrot.lane.b32.xlu0 %v1689_v37, %s2764_s0  ;;  %v1894_v10 = vpop.permute.xlu0 %1893  ;;  %v603_v37 = vsel %vm602_vm2, %v4345_v58, %v4344_v8  ;;  %v610_v56 = vadd.f32 %v4346_v11, %v576_v29  ;;  %s2486_s0 = sshll.u32 %s2842_s13, 7 }
 0x209   : > { %v1898_v9 = vsel %vm757_vm7, %v1894_v10, %v1896_v48  ;;  %v1897_v59 = vsel %vm757_vm7, %v1892_v63, %v1894_v10  ;;  %v604_v10 = vsel %vm602_vm2, %v4344_v8, %v4346_v11  ;;  %vm1700_vm2 = vcmask 1014784  }
 0x20a   : > { %v1904_v54 = vadd.f32 %v1898_v9, %v1874_v18  ;;  %v1903_v19 = vadd.f32 %v1897_v59, %v1873_v38 }
 0x20c   : > { %1931 = vrot.lane.b32.xlu0 %v1925_v27, %s2765_s2  ;;  %v2099_v51 = vpop.permute.xlu0 %2098 }
 0x20d   : > { %v2104_v12 = vsel %vm726_vm3, %v2099_v51, %v2101_v24  ;;  %v2109_v32 = vadd.f32 %v2099_v51, %v2079_v6  ;;  %v666_v6 = vsel %vm664_vm4, %v4350_v44, %v4352_v55 }
 0x20e   : > { %v2110_v0 = vadd.f32 %v2104_v12, %v2080_v2  ;;  %v4354_v12 = vld [vmem:[#allocation26_spill] sm:$0xff] }
 0x20f   : > { %v2139_v52 = vadd.f32 %v2129_v26, %v2109_v32 }
 0x210   : > { %v2103_v21 = vpop.permute.xlu0 %2102 }
 0x211   : > { %v2105_v40 = vsel %vm726_vm3, %v2101_v24, %v2103_v21  ;;  %v571_v24 = vmul.f32 0.0, %v570_v39 }
 0x212   : > { %v2111_v57 = vadd.f32 %v2105_v40, %v2081_v31  ;;  %v4355_v40 = vld [vmem:[#allocation30_spill] sm:$0xff] }
 0x213   : > { %v574_v61 = vadd.f32 %v571_v24, %v566_v13  ;;  %v1251_v59 = vpop.permute.xlu1 %1250 }
 0x214   : > { %v1919_v4 = vpop.permute.xlu0 %1918 }
 0x215   : > { %v1921_v22 = vsel %vm1920_vm12, %v1917_v16, %v1919_v4  ;;  %v1927_v35 = vmul.f32 %v1919_v4, %v1904_v54  ;;  %v575_v16 = vadd.f32 %v572_v34, %v567_v45  ;;  %v608_v27 = vadd.f32 %v603_v37, %v574_v61  ;;  %v4351_v54 = vld [vmem:[#allocation18_spill] sm:$0xff]  ;;  %v4363_v34 = vld [vmem:[#allocation35_spill] sm:$0xff] }
 0x216   : > { %v1926_v47 = vmul.f32 %v1921_v22, %v1903_v19  ;;  %v665_v19 = vsel %vm664_vm4, %v4351_v54, %v4350_v44  ;;  %v781_v61 = vsel %vm780_vm14, %v4362_v49, %v4363_v34  ;;  %v563_v37 = vstv %s2374_s21  ;;  %s2257_s21 = scalar_lea.hbm %s4158_s9, %s2486_s0 }
 0x217   : > { %1935 = vrot.lane.b32.xlu0 %v1927_v35, %s2765_s2  ;;  %v609_v25 = vadd.f32 %v604_v10, %v575_v16  ;;  %v639_v21 = vadd.f32 %v634_v42, %v608_v27  ;;  %vm2174_vm4 = vcmask 998400  }
 0x218   : > { %1933 = vrot.lane.b32.xlu1 %v1926_v47, %s2765_s2  ;;  %v2131_v3 = vpop.permute.xlu0 %2130  ;;  %v4353_v47 = vld [vmem:[#allocation27_spill] sm:$0xff]  ;;  %s365_s2 = scalar_lea.vmem [#allocation9], %s2362_s17 }
 0x219   : > { %v2134_v23 = vsel %vm757_vm7, %v2129_v26, %v2131_v3  ;;  %v2135_v17 = vsel %vm757_vm7, %v2131_v3, %v2133_v60  ;;  %v4349_v26 = vld [vmem:[#allocation22_spill] sm:$0xff]  ;;  %v670_v22 = vadd.f32 %v665_v19, %v639_v21  ;;  %v697_v32 = vsel %vm695_vm6, %v4354_v12, %v4353_v47  ;;  %v4356_v3 = vld [vmem:[#allocation29_spill] sm:$0xff] }
 0x21a   : > { %v2140_v63 = vadd.f32 %v2134_v23, %v2110_v0  ;;  %v2141_v48 = vadd.f32 %v2135_v17, %v2111_v57  ;;  %v635_v9 = vsel %vm633_vm5, %v4347_v43, %v4349_v26  ;;  %v641_v18 = vadd.f32 %v4349_v26, %v610_v56  ;;  %v4357_v23 = vld [vmem:[#allocation23_spill] sm:$0xff] }
 0x21b   : > { %v640_v4 = vadd.f32 %v635_v9, %v609_v25  ;;  %v728_v31 = vsel %vm726_vm3, %v4356_v3, %v4355_v40  ;;  %v701_v0 = vadd.f32 %v4357_v23, %v670_v22  ;;  %v696_v17 = vsel %vm695_vm6, %v4357_v23, %v4354_v12 }
 0x21c   : > { %v2154_v14 = vpop.permute.xlu0 %2153  ;;  %v2164_v33 = vmul.f32 %v2156_v41, %v2141_v48  ;;  %v672_v35 = vadd.f32 %v4352_v55, %v641_v18  ;;  %vm2210_vm5 = vcmask 416768  }
 0x21d   : > { %v2158_v62 = vsel %vm2157_vm13, %v2154_v14, %v2156_v41  ;;  %v2162_v28 = vmul.f32 %v2154_v14, %v2139_v52  ;;  %v671_v15 = vadd.f32 %v666_v6, %v640_v4  ;;  %v4359_v14 = vld [vmem:[#allocation32_spill] sm:$0xff] }
 0x21e   : > { %v2163_v5 = vmul.f32 %v2158_v62, %v2140_v63  ;;  %v703_v57 = vadd.f32 %v697_v32, %v672_v35  ;;  %v4358_v63 = vld [vmem:[#allocation33_spill] sm:$0xff]  ;;  %v4360_v62 = vld [vmem:[#allocation28_spill] sm:$0xff]  ;;  %v758_v13 = vsel %vm757_vm7, %v4361_v1, %v4359_v14 }
 0x21f   : > { %2168 = vrot.lane.b32.xlu1 %v2162_v28, %s2766_s23  ;;  %v702_v41 = vadd.f32 %v696_v17, %v671_v15  ;;  %v759_v48 = vsel %vm757_vm7, %v4359_v14, %v4358_v63  ;;  %v732_v28 = vadd.f32 %v4360_v62, %v701_v0 }
 0x220   : > { %2170 = vrot.lane.b32.xlu0 %v2163_v5, %s2766_s23  ;;  %v1014_v30 = vpop.permute.xlu0 %1013  ;;  %v727_v5 = vsel %vm726_vm3, %v4360_v62, %v4356_v3  ;;  %vm1937_vm3 = vcmask 1006592  }
 0x221   : > { %v763_v39 = vadd.f32 %v4361_v1, %v732_v28  ;;  %v733_v46 = vadd.f32 %v727_v5, %v702_v41  ;;  %v1020_v10 = vsel %vm1019_vm15, %v1014_v30, %v1016_v53 }
 0x223   : > { %2172 = vrot.lane.b32.xlu1 %v2164_v33, %s2766_s23  ;;  %v734_v33 = vadd.f32 %v728_v31, %v703_v57  ;;  %v785_v45 = vmul.f32 %v4362_v49, %v763_v39  ;;  %v764_v58 = vadd.f32 %v758_v13, %v733_v46  ;;  %s2259_s23 = sshll.u32 %s365_s2, 4  ;;  %s2260_s23 = int_to_ptr.vmem [resolvable:$true] %s2259_s23 }
 0x224   : > { %v1018_v51 = vpop.permute.xlu0 %1017  ;;  %s2671_s14 = scalar_lea.vmem %s2260_s23, 128 }
 0x225   : > { %v765_v24 = vadd.f32 %v759_v48, %v734_v33  ;;  %v786_v11 = vmul.f32 %v781_v61, %v764_v58  ;;  %v788_v27 = vadd.f32 %v785_v45, %v563_v37  ;;  %v1021_v25 = vsel %vm1019_vm15, %v1016_v53, %v1018_v51  ;;  %p2672_p3 = scmp.ne.s32.totalorder %s2260_s23, %s2671_s14 }
 0x226   : > { %v472_v58 = vstv %s2370_s27 }
 0x227   : > { %v787_v16 = vmul.f32 %v4363_v34, %v765_v24  ;;  %v1025_v36 = vadd.f32 %v1020_v10, %v788_v27  ;;  %v789_v9 = vadd.f32 %v786_v11, %v563_v37  ;;  %v456_v11 = vstv %s455_s29  ;;  %p2673_p9 = pnand %p2672_p3, %p4365_p4 }
 0x229   : > { %v790_v42 = vadd.f32 %v787_v16, %v563_v37  ;;  %v1026_v4 = vadd.f32 %v1021_v25, %v789_v9  ;;  %p2674_p7 = pneg %p2673_p9 }
 0x22b   : > { %v1027_v18 = vadd.f32 %v1018_v51, %v790_v42 }
 0x245   : > { %v1255_v60 = vpop.permute.xlu1 %1254 }
 0x246   : > { %v1253_v38 = vpop.permute.xlu0 %1252  ;;  %v1264_v55 = vadd.f32 %v1255_v60, %v1027_v18 }
 0x247   : > { %v1257_v43 = vsel %vm1256_vm0, %v1251_v59, %v1253_v38  ;;  %v1258_v44 = vsel %vm1256_vm0, %v1253_v38, %v1255_v60  ;;  %v525_v59 = vld [vmem:[%s4154_s5] sm:$0xf] }
 0x248   : > { %v1262_v54 = vadd.f32 %v1257_v43, %v1025_v36  ;;  %v1263_v35 = vadd.f32 %v1258_v44, %v1026_v4  ;;  %v526_v12 = vadd.f32 %v525_v59, %v3895_v50 }
 0x24a   : > { %v1458_v2 = vpop.permute.xlu0 %1457 }
 0x262   : > { %v1460_v52 = vpop.permute.xlu1 %1459  ;;  %v1462_v7 = vpop.permute.xlu0 %1461 }
 0x263   : > { %v1464_v21 = vsel %vm1463_vm1, %v1458_v2, %v1460_v52  ;;  %v1465_v53 = vsel %vm1463_vm1, %v1460_v52, %v1462_v7  ;;  %v1471_v51 = vadd.f32 %v1462_v7, %v1264_v55  ;;  %v2373_v52 = vmul.f32 -1.442695, %v526_v12 }
 0x264   : > { %v1469_v6 = vadd.f32 %v1464_v21, %v1262_v54  ;;  %v1470_v32 = vadd.f32 %v1465_v53, %v1263_v35 }
 0x267   : > { %v1695_v29 = vpop.permute.xlu1 %1694 }
 0x279   : > { %v1699_v56 = vpop.permute.xlu1 %1698 }
 0x27a   : > { %v1697_v8 = vpop.permute.xlu0 %1696  ;;  %v1708_v40 = vadd.f32 %v1699_v56, %v1471_v51 }
 0x27b   : > { %v1701_v30 = vsel %vm1700_vm2, %v1695_v29, %v1697_v8  ;;  %v1702_v38 = vsel %vm1700_vm2, %v1697_v8, %v1699_v56  ;;  %v450_v8 = vpop.f32.mrf.mxu0 }
 0x27c   : > { %v1706_v47 = vadd.f32 %v1701_v30, %v1469_v6  ;;  %v1707_v23 = vadd.f32 %v1702_v38, %v1470_v32  ;;  %v473_v16 = vadd.f32 %v472_v58, %v450_v8  ;;  %v457_v27 = vadd.f32 %v456_v11, %v450_v8 }
 0x27d   : > { %v452_v37 = vpop.f32.mrf.mxu0 }
 0x27e   : > { %v1932_v26 = vpop.permute.xlu0 %1931  ;;  %v474_v10 = vadd.f32 %v472_v58, %v452_v37  ;;  %v2371_v56 = vmul.f32 -1.442695, %v473_v16  ;;  %v458_v43 = vadd.f32 %v456_v11, %v452_v37  ;;  %v2368_v42 = vmul.f32 -1.442695, %v457_v27 }
 0x280   : > { %v2372_v36 = vmul.f32 -1.442695, %v474_v10  ;;  %v2369_v25 = vmul.f32 -1.442695, %v458_v43 }
 0x289   : > { %v1936_v22 = vpop.permute.xlu0 %1935 }
 0x28a   : > { %v1934_v19 = vpop.permute.xlu1 %1933  ;;  %v1945_v17 = vadd.f32 %v1936_v22, %v1708_v40  ;;  %v2769_v40 = vmov 839922192  }
 0x28b   : > { %v1938_v15 = vsel %vm1937_vm3, %v1932_v26, %v1934_v19  ;;  %v1939_v3 = vsel %vm1937_vm3, %v1934_v19, %v1936_v22 }
 0x28c   : > { %v1943_v60 = vadd.f32 %v1938_v15, %v1706_v47  ;;  %v1944_v41 = vadd.f32 %v1939_v3, %v1707_v23  ;;  %v2235_v3 = vunpack.c.l.s4 %v2769_v40 }
 0x291   : > { %v2169_v2 = vpop.permute.xlu1 %2168 }
 0x292   : > { %v2171_v31 = vpop.permute.xlu0 %2170 }
 0x293   : > { %v2175_v0 = vsel %vm2174_vm4, %v2169_v2, %v2171_v31 }
 0x294   : > { %v2180_v57 = vadd.f32 %v2175_v0, %v1943_v60  ;;  %v2236_v0 = vunpack.c.0.s8 %v2235_v3 }
 0x295   : > { %v2173_v63 = vpop.permute.xlu1 %2172 }
 0x296   : > { %v2477_v14 = vmul.f32 -1.442695, %v2180_v57  ;;  %v2176_v48 = vsel %vm2174_vm4, %v2171_v31, %v2173_v63  ;;  %v2182_v62 = vadd.f32 %v2173_v63, %v1945_v17  ;;  %v4364_v17 = vld [vmem:[#allocation14_spill] sm:$0xff]  ;;  %v2614_v63 = vld [vmem:[%s2934_s25] sm:$0xff] }
 0x297   : > { %v2181_v50 = vadd.f32 %v2176_v48, %v1944_v41  ;;  %v2239_v57 = vsub.s32 %v2236_v0, %v4364_v17 }
 0x298   : > { %2582 = vpow2.f32 %v2477_v14  ;;  %v2479_v28 = vmul.f32 -1.442695, %v2182_v62 }
 0x299   : > { %2584 = vpow2.f32 %v2373_v52  ;;  %v2478_v5 = vmul.f32 -1.442695, %v2181_v50 }
 0x29a   : > { %2586 = vpow2.f32 %v2479_v28 }
 0x29b   : > { %2588 = vpow2.f32 %v2478_v5 }
 0x2a5   : > { %v2583_v33 = vpop.eup %2582 }
 0x2a6   : > { %v2585_v7 = vpop.eup %2584  ;;  %v2192_v1 = vadd.f32 1.0, %v2583_v33 }
 0x2a7   : > { %v2587_v39 = vpop.eup %2586  ;;  %v530_v49 = vadd.f32 1.0, %v2585_v7 }
 0x2a8   : > { %v2589_v13 = vpop.eup %2588  ;;  %2590 = vrcp.f32 %v2192_v1  ;;  %v2194_v24 = vadd.f32 1.0, %v2587_v39 }
 0x2a9   : > { %v2193_v46 = vadd.f32 1.0, %v2589_v13 }
 0x2ab   : > { %2592 = vrcp.f32 %v2193_v46 }
 0x2ac   : > { %2594 = vrcp.f32 %v2194_v24 }
 0x2ad   : > { %2596 = vrcp.f32 %v530_v49 }
 0x2ae   : > { %2598 = vpow2.f32 %v2371_v56 }
 0x2af   : > { %2600 = vpow2.f32 %v2372_v36 }
 0x2b0   : > { %2602 = vpow2.f32 %v2368_v42 }
 0x2b1   : > { %2604 = vpow2.f32 %v2369_v25 }
 0x2b5   : > { %v2591_v45 = vpop.eup %2590 }
 0x2b6   : > { %2204 = vrot.lane.b32.xlu0 %v2591_v45, %s2768_s26 }
 0x2b8   : > { %v2593_v34 = vpop.eup %2592 }
 0x2b9   : > { %v2595_v61 = vpop.eup %2594  ;;  %2206 = vrot.lane.b32.xlu1 %v2593_v34, %s2768_s26 }
 0x2ba   : > { %2208 = vrot.lane.b32.xlu0 %v2595_v61, %s2768_s26  ;;  %v2597_v29 = vpop.eup %2596  ;;  %s2770_s26 = smov [#allocation9]  }
 0x2bb   : > { %v2599_v26 = vpop.eup %2598  ;;  %s2675_s13 = sshll.u32 %s2770_s26, 4  ;;  %s2676_s13 = int_to_ptr.vmem [resolvable:$false] %s2675_s13 }
 0x2bc   : > { %v2601_v9 = vpop.eup %2600  ;;  %v481_v21 = vadd.f32 1.0, %v2599_v26  ;;  %s2677_s27 = scalar_lea.vmem %s2676_s13, 256  ;;  %p2678_p6 = scmp.lt.s32.totalorder %s2260_s23, %s2676_s13 }
 0x2bd   : > { %2232 = vperm.xlu1 %2579, %v2597_v29   ;;  %v2603_v18 = vpop.eup %2602  ;;  %v482_v44 = vadd.f32 1.0, %v2601_v9  ;;  %p2679_p5 = scmp.lt.s32.totalorder %s2677_s27, %s2671_s14 }
 0x2be   : > { %v2605_v54 = vpop.eup %2604  ;;  %v465_v19 = vadd.f32 1.0, %v2603_v18  ;;  %2606 = vrcp.f32 %v481_v21 }
 0x2bf   : > { %v466_v4 = vadd.f32 1.0, %v2605_v54  ;;  %2608 = vrcp.f32 %v482_v44  ;;  %p2680_p10 = por %p2679_p5, %p2678_p6 }
 0x2c0   : > { %2610 = vrcp.f32 %v465_v19 }
 0x2c1   : > { %2612 = vrcp.f32 %v466_v4  ;;  %p2681_p8 = pnand %p2680_p10, %p2674_p7 }
 0x2cb   : > { %v2607_v30 = vpop.eup %2606 }
 0x2cc   : > { %v2609_v59 = vpop.eup %2608  ;;  %v489_v55 = vrot.slane %v2607_v30, 1 }
 0x2cd   : > { %v2611_v6 = vpop.eup %2610  ;;  %v490_v53 = vrot.slane %v2609_v59, 1 }
 0x2ce   : > { %v2613_v22 = vpop.eup %2612  ;;  %v493_v15 = vmul.f32 %v2611_v6, %v489_v55 }
 0x2cf   : > { %v494_v51 = vmul.f32 %v2613_v22, %v490_v53 }
 0x328   : > { %v2205_v35 = vpop.permute.xlu0 %2204 }
 0x32b   : > { %v2207_v38 = vpop.permute.xlu1 %2206 }
 0x32c   : > { %v2211_v47 = vsel %vm2210_vm5, %v2205_v35, %v2207_v38  ;;  %v2209_v12 = vpop.permute.xlu0 %2208 }
 0x32d   : > { %v2215_v32 = vmul.f32 %v2211_v47, %v493_v15  ;;  %v2212_v2 = vsel %vm2210_vm5, %v2207_v38, %v2209_v12 }
 0x32e   : > { %v2216_v60 = vmul.f32 %v2212_v2, %v494_v51 }
 0x32f   : > { %v2220_v31 = vrot.slane %v2215_v32, %v4321_v20 }
 0x330   : > { %v2224_v23 = vrot.slane %v2216_v60, %v4321_v20 }
 0x332   : > { %v2227_v52 = vcombine.low %v2220_v31, %v2224_v23 }
 0x334   : > { %v2229_v14 = vmul.f32 %v2614_v63, %v2227_v52 }
 0x338   : > { %v2233_v41 = vpop.permute.xlu1 %2232 }
 0x339   : > { %v2240_v48 = vrot.slane %v2233_v41, %v2239_v57 }
 0x33b   : > { %v2242_v62 = vmul.f32 %v2240_v48, %v2229_v14 }
 0x33d   : > { %2243 = vst [vmem:[%s365_s2] sm:$0xff] %v2242_v62 }
 0x33e   : > { %2684 = shalt.err (!%p2681_p8)
}
 0x33f   : > { %s2685_s25 = scalar_lea.hbm %s2257_s21, 128  ;;  %s2689_s17 = scalar_lea.hbm %s4158_s9, 256 }
 0x340   : > { %p2686_p13 = scmp.ne.s32.totalorder %s2257_s21, %s2685_s25  ;;  %p2690_p1 = scmp.lt.s32.totalorder %s2257_s21, %s4158_s9 }
 0x341   : > { %p2691_p12 = scmp.lt.s32.totalorder %s2689_s17, %s2685_s25 }
 0x342   : > { %p2687_p11 = pnand %p2686_p13, %p4365_p4 }
 0x343   : > { %p2692_p2 = por %p2691_p12, %p2690_p1 }
 0x344   : > { %p2688_p0 = pneg %p2687_p11 }
 0x346   : > { %p2693_p3 = pnand %p2692_p2, %p2688_p0 }
 0x348   : > { %2696 = shalt.err (!%p2693_p3)
}
 0x349   : > { %2499 = dma.vmem_to_hbm [thread:$0]  (%p4365_p4), %s2260_s23, 128, %s2257_s21, %s2245_s24  }
 0x34a PF: > { %p2521_p9 = scmp.ge.s32.totalorder %s2743_s12, 2  ;;  %s2271_s22 = sand.u32 1, %s2731_s30  }
 0x34b   : > { %p4366_p7 = scmp.ne.s32.totalorder %s4218_s20, 0  ;;  %s2272_s16 = scalar_lea.sflag [#allocation4], %s2271_s22 }
 0x34d   : > { %p2512_p6 = pnand %p2521_p9, %p4366_p7 }
 0x34f   : > { %p2513_p5 = pneg %p2512_p6 }
 0x351   : > { %2726 = dma.done.wait (%p2513_p5), %s2272_s16, 128  }
 0x352   : > { %2728 = vsyncadd (%p2513_p5), %s2272_s16, 4294967168  ;;  %p22_p10 = scmp.ge.s32.totalorder %s2846_s15, 4   ;;  %s4367_s30 = smov %s2735_s10 }
 0x353   : > { %s4368_s10 = smov %s2739_s11  ;;  %s4369_s11 = smov %s2857_s18 }
 0x354   : > { %s4370_s12 = smov %s2846_s15  ;;  %24 = sbr.rel (!%p22_p10) target bundleno = 9 (0x9), region = 110 }
 0x359   :  { %2277 = vsyncpa [#allocation3], 1 }
 0x35a   :  { %2279 = vsyncpa [#allocation3 + $0x1], 1 }
 0x35b   :  { %2280 = vsyncpa [#allocation4], 1 }
 0x35c   :  { %2282 = vsyncpa [#allocation4 + $0x1], 1 }
 0x35d   :  { %2283 = vsyncpa [#allocation5], 1 }
 0x35e   :  { %2285 = vsyncpa [#allocation5 + $0x1], 1 }
 0x35f   :  { %2286 = vsyncpa [#allocation8], 1 }

</bundles_post_ra>
